<compile_context>
chip_gen: v7x
topology: tpu7x:2x2x1
jax: 0.10.0
libtpu: 0.0.40
codegen_flags: <defaults>
</compile_context>

<pallas_src>
import jax
import jax.numpy as jnp
from jax.experimental import pallas as pl
from jax.experimental.pallas import tpu as pltpu

N_EMBD = 384
NUM_HEADS = 6
HEAD_SIZE = N_EMBD // NUM_HEADS   # 64
BLOCK_SIZE = 128                  # max sequence length (causal mask buffer size)

MXU_DTYPE = jnp.bfloat16          # MXU operand dtype (f32 accumulation)


def mha_fused_kernel(x_ref, wqkv_ref, wp_ref, bp_ref, out_ref):
    """One batch element: fused QKV + per-head causal attention + output proj."""
    T, C = x_ref.shape

    x = x_ref[...].astype(MXU_DTYPE)          # [T, C]
    wqkv = wqkv_ref[...].astype(MXU_DTYPE)    # [C, 3C]  (Q | K | V, torch.cat head order)

    # Fused QKV projection: single wide MXU matmul, f32 accumulation.
    qkv = jnp.dot(x, wqkv, preferred_element_type=jnp.float32)   # [T, 3C] f32
    q_all = qkv[:, 0 * C:1 * C]
    k_all = qkv[:, 1 * C:2 * C]
    v_all = qkv[:, 2 * C:3 * C]

    # NOTE: the PyTorch module scales by C**-0.5 where C = n_embd (not head_size).
    scale = jnp.float32(C) ** -0.5

    # Causal mask, computed once per batch (hoisted out of the head loop).
    row = jax.lax.broadcasted_iota(jnp.int32, (T, T), 0)
    col = jax.lax.broadcasted_iota(jnp.int32, (T, T), 1)
    causal = col <= row
    neg_big = jnp.float32(-1e30)   # large finite negative (robust vs -inf rows)

    head_outs = []
    for h in range(NUM_HEADS):            # unrolled, static slices
        lo = h * HEAD_SIZE
        hi = lo + HEAD_SIZE
        q = q_all[:, lo:hi].astype(MXU_DTYPE)   # [T, hs]
        k = k_all[:, lo:hi].astype(MXU_DTYPE)
        v = v_all[:, lo:hi].astype(MXU_DTYPE)

        # q @ k^T without materializing a transpose (contract last dims).
        wei = jax.lax.dot_general(
            q, k, (((1,), (1,)), ((), ())),
            preferred_element_type=jnp.float32) * scale           # [T, T] f32
        wei = jnp.where(causal, wei, neg_big)

        # numerically-stable softmax (f32)
        wei = wei - jnp.max(wei, axis=-1, keepdims=True)
        p = jnp.exp(wei)
        p = p * pl.reciprocal(jnp.sum(p, axis=-1, keepdims=True), approx=True)
        # TODO(synk): attention-weight dropout omitted (eval-mode identity)

        head_outs.append(
            jnp.dot(p.astype(MXU_DTYPE), v, preferred_element_type=jnp.float32))

    # torch.cat([...], dim=-1): head h occupies columns [h*hs : (h+1)*hs]
    cat = jnp.concatenate(head_outs, axis=-1)                     # [T, C] f32

    # Fused output projection: y = cat @ proj.weight.T + proj.bias
    wp = wp_ref[...].astype(MXU_DTYPE)                            # [C, C]
    bp = bp_ref[...]                                              # [1, C] f32
    y = jnp.dot(cat.astype(MXU_DTYPE), wp,
                preferred_element_type=jnp.float32) + bp
    # TODO(synk): output dropout omitted (eval-mode identity)
    out_ref[...] = y


def multi_head_attention(x, wq, wk, wv, wp_t, bp):
    """x: [B, T, C]; wq/wk/wv: [H, C, hs] (input-major); wp_t: [C, C] (= proj.weight.T); bp: [1, C]."""
    B, T, C = x.shape
    H, _, hs = wq.shape

    # Fuse per-head weights into one [C, 3C] matrix so the kernel does a single
    # wide QKV matmul.  Column block h of each C-wide section == head h's weight.
    wq_cat = jnp.transpose(wq, (1, 0, 2)).reshape(C, H * hs)
    wk_cat = jnp.transpose(wk, (1, 0, 2)).reshape(C, H * hs)
    wv_cat = jnp.transpose(wv, (1, 0, 2)).reshape(C, H * hs)
    wqkv = jnp.concatenate([wq_cat, wk_cat, wv_cat], axis=-1)     # [C, 3C]

    out = pl.pallas_call(
        mha_fused_kernel,
        out_shape=jax.ShapeDtypeStruct((B, T, C), jnp.float32),
        grid=(B,),
        in_specs=[
            pl.BlockSpec((None, T, C), lambda b: (b, 0, 0)),      # x[b]      -> [T, C]
            pl.BlockSpec((C, 3 * C), lambda b: (0, 0)),           # fused QKV weight
            pl.BlockSpec((C, C), lambda b: (0, 0)),               # proj.weight.T
            pl.BlockSpec((1, C), lambda b: (0, 0)),               # proj.bias
        ],
        out_specs=pl.BlockSpec((None, T, C), lambda b: (b, 0, 0)),  # lane-dense [T, C]
        compiler_params=pltpu.CompilerParams(
            dimension_semantics=("parallel",)),                   # v7x: one batch per TC
    )(x, wqkv, wp_t, bp)
    return out


def reference(x, wq, wk, wv, wp_t, bp):
    """Pure-JAX f32 reference of the PyTorch forward (eval mode)."""
    B, T, C = x.shape
    H = wq.shape[0]
    outs = []
    for h in range(H):
        q = x @ wq[h]
        k = x @ wk[h]
        v = x @ wv[h]
        wei = (q @ jnp.swapaxes(k, -2, -1)) * (C ** -0.5)
        mask = jnp.tril(jnp.ones((T, T), jnp.bool_))
        wei = jnp.where(mask, wei, -jnp.inf)
        wei = jax.nn.softmax(wei, axis=-1)
        outs.append(wei @ v)
    cat = jnp.concatenate(outs, axis=-1)
    return cat @ wp_t + bp


if __name__ == "__main__":
    B, T = 2, 16
    assert T <= BLOCK_SIZE

    key = jax.random.PRNGKey(0)
    kx, kq, kk, kv, kp, kb = jax.random.split(key, 6)

    x = jax.random.normal(kx, (B, T, N_EMBD), dtype=jnp.float32)
    # PyTorch Linear stores weight as [out, in]; we generate input-major
    # weights directly ([in, out]) so the kernel computes x @ W.
    wq = jax.random.normal(kq, (NUM_HEADS, N_EMBD, HEAD_SIZE), jnp.float32) * 0.02
    wk = jax.random.normal(kk, (NUM_HEADS, N_EMBD, HEAD_SIZE), jnp.float32) * 0.02
    wv = jax.random.normal(kv, (NUM_HEADS, N_EMBD, HEAD_SIZE), jnp.float32) * 0.02
    wp_t = jax.random.normal(kp, (N_EMBD, N_EMBD), jnp.float32) * 0.02   # proj.weight.T
    bp = jax.random.normal(kb, (1, N_EMBD), jnp.float32) * 0.02          # proj.bias

    out = multi_head_attention(x, wq, wk, wv, wp_t, bp)
    out = jax.block_until_ready(out)

    ref = reference(x, wq, wk, wv, wp_t, bp)
    assert out.shape == (B, T, N_EMBD)
    # Tolerance loosened vs the pure-f32 reference because MXU operands are fed
    # in bf16 (f32 accumulation) and the softmax denominator uses the EUP
    # approximate reciprocal; observed error is a few 1e-3 absolute.
    assert jnp.allclose(out, ref, atol=2e-2, rtol=2e-2)

    print("KERNEL_OK")
</pallas_src>

<mosaic_0001>
module attributes {stable_mosaic.version = 11 : i64} {
  func.func @mha_fused_kernel(%arg0: i32, %arg1: memref<1x16x384xf32, #tpu.memory_space<vmem>>, %arg2: memref<384x1152xf32, #tpu.memory_space<vmem>>, %arg3: memref<384x384xf32, #tpu.memory_space<vmem>>, %arg4: memref<1x384xf32, #tpu.memory_space<vmem>>, %arg5: memref<1x16x384xf32, #tpu.memory_space<vmem>>) attributes {dimension_semantics = [#tpu.dimension_semantics<parallel>], iteration_bounds = array<i64: 2>, scalar_prefetch = 0 : i64, scratch_operands = 0 : i64, tpu.core_type = #tpu.core_type<tc>, window_params = [{transform_indices = @transform_0, window_bounds = array<i64: 1, 16, 384>}, {pipeline_mode = #tpu.pipeline_mode<synchronous>, transform_indices = @transform_1, window_bounds = array<i64: 384, 1152>}, {pipeline_mode = #tpu.pipeline_mode<synchronous>, transform_indices = @transform_2, window_bounds = array<i64: 384, 384>}, {pipeline_mode = #tpu.pipeline_mode<synchronous>, transform_indices = @transform_3, window_bounds = array<i64: 1, 384>}, {transform_indices = @transform_4, window_bounds = array<i64: 1, 16, 384>}]} {
    %c0 = arith.constant 0 : index
    %c0_0 = arith.constant 0 : index
    %c0_1 = arith.constant 0 : index
    %0 = vector.load %arg1[%c0, %c0_0, %c0_1] : memref<1x16x384xf32, #tpu.memory_space<vmem>>, vector<1x16x384xf32>
    %1 = vector.shape_cast %0 : vector<1x16x384xf32> to vector<16x384xf32>
    %2 = arith.truncf %1 : vector<16x384xf32> to vector<16x384xbf16>
    %c0_2 = arith.constant 0 : index
    %c0_3 = arith.constant 0 : index
    %3 = vector.load %arg2[%c0_2, %c0_3] : memref<384x1152xf32, #tpu.memory_space<vmem>>, vector<384x1152xf32>
    %4 = arith.truncf %3 : vector<384x1152xf32> to vector<384x1152xbf16>
    %cst = arith.constant dense<0.000000e+00> : vector<16x1152xf32>
    %5 = tpu.matmul %2, %4, %cst {dimension_numbers = #tpu.dot_dimension_numbers<[1], [0], [0], [1], [0, 0, 1, 1], [], []>} : vector<16x384xbf16>, vector<384x1152xbf16>, vector<16x1152xf32> -> vector<16x1152xf32>
    %6 = vector.extract_strided_slice %5 {offsets = [0, 0], sizes = [16, 384], strides = [1, 1]} : vector<16x1152xf32> to vector<16x384xf32>
    %7 = vector.extract_strided_slice %5 {offsets = [0, 384], sizes = [16, 384], strides = [1, 1]} : vector<16x1152xf32> to vector<16x384xf32>
    %8 = vector.extract_strided_slice %5 {offsets = [0, 768], sizes = [16, 384], strides = [1, 1]} : vector<16x1152xf32> to vector<16x384xf32>
    %cst_4 = arith.constant 3.840000e+02 : f32
    %cst_5 = arith.constant -5.000000e-01 : f32
    %9 = math.powf %cst_4, %cst_5 : f32
    %10 = tpu.iota {dimensions = array<i32: 0>} : vector<16x16xi32>
    %11 = tpu.iota {dimensions = array<i32: 1>} : vector<16x16xi32>
    %12 = arith.cmpi sle, %11, %10 : vector<16x16xi32>
    %13 = vector.extract_strided_slice %6 {offsets = [0, 0], sizes = [16, 64], strides = [1, 1]} : vector<16x384xf32> to vector<16x64xf32>
    %14 = arith.truncf %13 : vector<16x64xf32> to vector<16x64xbf16>
    %15 = vector.extract_strided_slice %7 {offsets = [0, 0], sizes = [16, 64], strides = [1, 1]} : vector<16x384xf32> to vector<16x64xf32>
    %16 = arith.truncf %15 : vector<16x64xf32> to vector<16x64xbf16>
    %17 = vector.extract_strided_slice %8 {offsets = [0, 0], sizes = [16, 64], strides = [1, 1]} : vector<16x384xf32> to vector<16x64xf32>
    %18 = arith.truncf %17 : vector<16x64xf32> to vector<16x64xbf16>
    %cst_6 = arith.constant dense<0.000000e+00> : vector<16x16xf32>
    %19 = tpu.matmul %14, %16, %cst_6 {dimension_numbers = #tpu.dot_dimension_numbers<[1], [1], [0], [0], [0, 0, 1, 0], [], []>} : vector<16x64xbf16>, vector<16x64xbf16>, vector<16x16xf32> -> vector<16x16xf32>
    %20 = vector.broadcast %9 : f32 to vector<16x16xf32>
    %21 = arith.mulf %19, %20 : vector<16x16xf32>
    %cst_7 = arith.constant -1.000000e+30 : f32
    %22 = vector.broadcast %cst_7 : f32 to vector<16x16xf32>
    %23 = arith.select %12, %21, %22 : vector<16x16xi1>, vector<16x16xf32>
    %cst_8 = arith.constant dense<0xFF800000> : vector<16xf32>
    %24 = vector.multi_reduction <maximumf>, %23, %cst_8 [1] : vector<16x16xf32> to vector<16xf32>
    %25 = vector.shape_cast %24 : vector<16xf32> to vector<16x1xf32>
    %26 = vector.broadcast %25 : vector<16x1xf32> to vector<16x16xf32>
    %27 = arith.subf %23, %26 : vector<16x16xf32>
    %28 = math.exp %27 : vector<16x16xf32>
    %cst_9 = arith.constant dense<0.000000e+00> : vector<16xf32>
    %29 = vector.multi_reduction <add>, %28, %cst_9 [1] : vector<16x16xf32> to vector<16xf32>
    %30 = vector.shape_cast %29 : vector<16xf32> to vector<16x1xf32>
    %31 = tpu.reciprocal %30 {approx = true} : vector<16x1xf32> -> vector<16x1xf32>
    %32 = vector.broadcast %31 : vector<16x1xf32> to vector<16x16xf32>
    %33 = arith.mulf %28, %32 : vector<16x16xf32>
    %34 = arith.truncf %33 : vector<16x16xf32> to vector<16x16xbf16>
    %cst_10 = arith.constant dense<0.000000e+00> : vector<16x64xf32>
    %35 = tpu.matmul %34, %18, %cst_10 {dimension_numbers = #tpu.dot_dimension_numbers<[1], [0], [0], [1], [0, 0, 1, 1], [], []>} : vector<16x16xbf16>, vector<16x64xbf16>, vector<16x64xf32> -> vector<16x64xf32>
    %36 = vector.extract_strided_slice %6 {offsets = [0, 64], sizes = [16, 64], strides = [1, 1]} : vector<16x384xf32> to vector<16x64xf32>
    %37 = arith.truncf %36 : vector<16x64xf32> to vector<16x64xbf16>
    %38 = vector.extract_strided_slice %7 {offsets = [0, 64], sizes = [16, 64], strides = [1, 1]} : vector<16x384xf32> to vector<16x64xf32>
    %39 = arith.truncf %38 : vector<16x64xf32> to vector<16x64xbf16>
    %40 = vector.extract_strided_slice %8 {offsets = [0, 64], sizes = [16, 64], strides = [1, 1]} : vector<16x384xf32> to vector<16x64xf32>
    %41 = arith.truncf %40 : vector<16x64xf32> to vector<16x64xbf16>
    %cst_11 = arith.constant dense<0.000000e+00> : vector<16x16xf32>
    %42 = tpu.matmul %37, %39, %cst_11 {dimension_numbers = #tpu.dot_dimension_numbers<[1], [1], [0], [0], [0, 0, 1, 0], [], []>} : vector<16x64xbf16>, vector<16x64xbf16>, vector<16x16xf32> -> vector<16x16xf32>
    %43 = vector.broadcast %9 : f32 to vector<16x16xf32>
    %44 = arith.mulf %42, %43 : vector<16x16xf32>
    %cst_12 = arith.constant -1.000000e+30 : f32
    %45 = vector.broadcast %cst_12 : f32 to vector<16x16xf32>
    %46 = arith.select %12, %44, %45 : vector<16x16xi1>, vector<16x16xf32>
    %cst_13 = arith.constant dense<0xFF800000> : vector<16xf32>
    %47 = vector.multi_reduction <maximumf>, %46, %cst_13 [1] : vector<16x16xf32> to vector<16xf32>
    %48 = vector.shape_cast %47 : vector<16xf32> to vector<16x1xf32>
    %49 = vector.broadcast %48 : vector<16x1xf32> to vector<16x16xf32>
    %50 = arith.subf %46, %49 : vector<16x16xf32>
    %51 = math.exp %50 : vector<16x16xf32>
    %cst_14 = arith.constant dense<0.000000e+00> : vector<16xf32>
    %52 = vector.multi_reduction <add>, %51, %cst_14 [1] : vector<16x16xf32> to vector<16xf32>
    %53 = vector.shape_cast %52 : vector<16xf32> to vector<16x1xf32>
    %54 = tpu.reciprocal %53 {approx = true} : vector<16x1xf32> -> vector<16x1xf32>
    %55 = vector.broadcast %54 : vector<16x1xf32> to vector<16x16xf32>
    %56 = arith.mulf %51, %55 : vector<16x16xf32>
    %57 = arith.truncf %56 : vector<16x16xf32> to vector<16x16xbf16>
    %cst_15 = arith.constant dense<0.000000e+00> : vector<16x64xf32>
    %58 = tpu.matmul %57, %41, %cst_15 {dimension_numbers = #tpu.dot_dimension_numbers<[1], [0], [0], [1], [0, 0, 1, 1], [], []>} : vector<16x16xbf16>, vector<16x64xbf16>, vector<16x64xf32> -> vector<16x64xf32>
    %59 = vector.extract_strided_slice %6 {offsets = [0, 128], sizes = [16, 64], strides = [1, 1]} : vector<16x384xf32> to vector<16x64xf32>
    %60 = arith.truncf %59 : vector<16x64xf32> to vector<16x64xbf16>
    %61 = vector.extract_strided_slice %7 {offsets = [0, 128], sizes = [16, 64], strides = [1, 1]} : vector<16x384xf32> to vector<16x64xf32>
    %62 = arith.truncf %61 : vector<16x64xf32> to vector<16x64xbf16>
    %63 = vector.extract_strided_slice %8 {offsets = [0, 128], sizes = [16, 64], strides = [1, 1]} : vector<16x384xf32> to vector<16x64xf32>
    %64 = arith.truncf %63 : vector<16x64xf32> to vector<16x64xbf16>
    %cst_16 = arith.constant dense<0.000000e+00> : vector<16x16xf32>
    %65 = tpu.matmul %60, %62, %cst_16 {dimension_numbers = #tpu.dot_dimension_numbers<[1], [1], [0], [0], [0, 0, 1, 0], [], []>} : vector<16x64xbf16>, vector<16x64xbf16>, vector<16x16xf32> -> vector<16x16xf32>
    %66 = vector.broadcast %9 : f32 to vector<16x16xf32>
    %67 = arith.mulf %65, %66 : vector<16x16xf32>
    %cst_17 = arith.constant -1.000000e+30 : f32
    %68 = vector.broadcast %cst_17 : f32 to vector<16x16xf32>
    %69 = arith.select %12, %67, %68 : vector<16x16xi1>, vector<16x16xf32>
    %cst_18 = arith.constant dense<0xFF800000> : vector<16xf32>
    %70 = vector.multi_reduction <maximumf>, %69, %cst_18 [1] : vector<16x16xf32> to vector<16xf32>
    %71 = vector.shape_cast %70 : vector<16xf32> to vector<16x1xf32>
    %72 = vector.broadcast %71 : vector<16x1xf32> to vector<16x16xf32>
    %73 = arith.subf %69, %72 : vector<16x16xf32>
    %74 = math.exp %73 : vector<16x16xf32>
    %cst_19 = arith.constant dense<0.000000e+00> : vector<16xf32>
    %75 = vector.multi_reduction <add>, %74, %cst_19 [1] : vector<16x16xf32> to vector<16xf32>
    %76 = vector.shape_cast %75 : vector<16xf32> to vector<16x1xf32>
    %77 = tpu.reciprocal %76 {approx = true} : vector<16x1xf32> -> vector<16x1xf32>
    %78 = vector.broadcast %77 : vector<16x1xf32> to vector<16x16xf32>
    %79 = arith.mulf %74, %78 : vector<16x16xf32>
    %80 = arith.truncf %79 : vector<16x16xf32> to vector<16x16xbf16>
    %cst_20 = arith.constant dense<0.000000e+00> : vector<16x64xf32>
    %81 = tpu.matmul %80, %64, %cst_20 {dimension_numbers = #tpu.dot_dimension_numbers<[1], [0], [0], [1], [0, 0, 1, 1], [], []>} : vector<16x16xbf16>, vector<16x64xbf16>, vector<16x64xf32> -> vector<16x64xf32>
    %82 = vector.extract_strided_slice %6 {offsets = [0, 192], sizes = [16, 64], strides = [1, 1]} : vector<16x384xf32> to vector<16x64xf32>
    %83 = arith.truncf %82 : vector<16x64xf32> to vector<16x64xbf16>
    %84 = vector.extract_strided_slice %7 {offsets = [0, 192], sizes = [16, 64], strides = [1, 1]} : vector<16x384xf32> to vector<16x64xf32>
    %85 = arith.truncf %84 : vector<16x64xf32> to vector<16x64xbf16>
    %86 = vector.extract_strided_slice %8 {offsets = [0, 192], sizes = [16, 64], strides = [1, 1]} : vector<16x384xf32> to vector<16x64xf32>
    %87 = arith.truncf %86 : vector<16x64xf32> to vector<16x64xbf16>
    %cst_21 = arith.constant dense<0.000000e+00> : vector<16x16xf32>
    %88 = tpu.matmul %83, %85, %cst_21 {dimension_numbers = #tpu.dot_dimension_numbers<[1], [1], [0], [0], [0, 0, 1, 0], [], []>} : vector<16x64xbf16>, vector<16x64xbf16>, vector<16x16xf32> -> vector<16x16xf32>
    %89 = vector.broadcast %9 : f32 to vector<16x16xf32>
    %90 = arith.mulf %88, %89 : vector<16x16xf32>
    %cst_22 = arith.constant -1.000000e+30 : f32
    %91 = vector.broadcast %cst_22 : f32 to vector<16x16xf32>
    %92 = arith.select %12, %90, %91 : vector<16x16xi1>, vector<16x16xf32>
    %cst_23 = arith.constant dense<0xFF800000> : vector<16xf32>
    %93 = vector.multi_reduction <maximumf>, %92, %cst_23 [1] : vector<16x16xf32> to vector<16xf32>
    %94 = vector.shape_cast %93 : vector<16xf32> to vector<16x1xf32>
    %95 = vector.broadcast %94 : vector<16x1xf32> to vector<16x16xf32>
    %96 = arith.subf %92, %95 : vector<16x16xf32>
    %97 = math.exp %96 : vector<16x16xf32>
    %cst_24 = arith.constant dense<0.000000e+00> : vector<16xf32>
    %98 = vector.multi_reduction <add>, %97, %cst_24 [1] : vector<16x16xf32> to vector<16xf32>
    %99 = vector.shape_cast %98 : vector<16xf32> to vector<16x1xf32>
    %100 = tpu.reciprocal %99 {approx = true} : vector<16x1xf32> -> vector<16x1xf32>
    %101 = vector.broadcast %100 : vector<16x1xf32> to vector<16x16xf32>
    %102 = arith.mulf %97, %101 : vector<16x16xf32>
    %103 = arith.truncf %102 : vector<16x16xf32> to vector<16x16xbf16>
    %cst_25 = arith.constant dense<0.000000e+00> : vector<16x64xf32>
    %104 = tpu.matmul %103, %87, %cst_25 {dimension_numbers = #tpu.dot_dimension_numbers<[1], [0], [0], [1], [0, 0, 1, 1], [], []>} : vector<16x16xbf16>, vector<16x64xbf16>, vector<16x64xf32> -> vector<16x64xf32>
    %105 = vector.extract_strided_slice %6 {offsets = [0, 256], sizes = [16, 64], strides = [1, 1]} : vector<16x384xf32> to vector<16x64xf32>
    %106 = arith.truncf %105 : vector<16x64xf32> to vector<16x64xbf16>
    %107 = vector.extract_strided_slice %7 {offsets = [0, 256], sizes = [16, 64], strides = [1, 1]} : vector<16x384xf32> to vector<16x64xf32>
    %108 = arith.truncf %107 : vector<16x64xf32> to vector<16x64xbf16>
    %109 = vector.extract_strided_slice %8 {offsets = [0, 256], sizes = [16, 64], strides = [1, 1]} : vector<16x384xf32> to vector<16x64xf32>
    %110 = arith.truncf %109 : vector<16x64xf32> to vector<16x64xbf16>
    %cst_26 = arith.constant dense<0.000000e+00> : vector<16x16xf32>
    %111 = tpu.matmul %106, %108, %cst_26 {dimension_numbers = #tpu.dot_dimension_numbers<[1], [1], [0], [0], [0, 0, 1, 0], [], []>} : vector<16x64xbf16>, vector<16x64xbf16>, vector<16x16xf32> -> vector<16x16xf32>
    %112 = vector.broadcast %9 : f32 to vector<16x16xf32>
    %113 = arith.mulf %111, %112 : vector<16x16xf32>
    %cst_27 = arith.constant -1.000000e+30 : f32
    %114 = vector.broadcast %cst_27 : f32 to vector<16x16xf32>
    %115 = arith.select %12, %113, %114 : vector<16x16xi1>, vector<16x16xf32>
    %cst_28 = arith.constant dense<0xFF800000> : vector<16xf32>
    %116 = vector.multi_reduction <maximumf>, %115, %cst_28 [1] : vector<16x16xf32> to vector<16xf32>
    %117 = vector.shape_cast %116 : vector<16xf32> to vector<16x1xf32>
    %118 = vector.broadcast %117 : vector<16x1xf32> to vector<16x16xf32>
    %119 = arith.subf %115, %118 : vector<16x16xf32>
    %120 = math.exp %119 : vector<16x16xf32>
    %cst_29 = arith.constant dense<0.000000e+00> : vector<16xf32>
    %121 = vector.multi_reduction <add>, %120, %cst_29 [1] : vector<16x16xf32> to vector<16xf32>
    %122 = vector.shape_cast %121 : vector<16xf32> to vector<16x1xf32>
    %123 = tpu.reciprocal %122 {approx = true} : vector<16x1xf32> -> vector<16x1xf32>
    %124 = vector.broadcast %123 : vector<16x1xf32> to vector<16x16xf32>
    %125 = arith.mulf %120, %124 : vector<16x16xf32>
    %126 = arith.truncf %125 : vector<16x16xf32> to vector<16x16xbf16>
    %cst_30 = arith.constant dense<0.000000e+00> : vector<16x64xf32>
    %127 = tpu.matmul %126, %110, %cst_30 {dimension_numbers = #tpu.dot_dimension_numbers<[1], [0], [0], [1], [0, 0, 1, 1], [], []>} : vector<16x16xbf16>, vector<16x64xbf16>, vector<16x64xf32> -> vector<16x64xf32>
    %128 = vector.extract_strided_slice %6 {offsets = [0, 320], sizes = [16, 64], strides = [1, 1]} : vector<16x384xf32> to vector<16x64xf32>
    %129 = arith.truncf %128 : vector<16x64xf32> to vector<16x64xbf16>
    %130 = vector.extract_strided_slice %7 {offsets = [0, 320], sizes = [16, 64], strides = [1, 1]} : vector<16x384xf32> to vector<16x64xf32>
    %131 = arith.truncf %130 : vector<16x64xf32> to vector<16x64xbf16>
    %132 = vector.extract_strided_slice %8 {offsets = [0, 320], sizes = [16, 64], strides = [1, 1]} : vector<16x384xf32> to vector<16x64xf32>
    %133 = arith.truncf %132 : vector<16x64xf32> to vector<16x64xbf16>
    %cst_31 = arith.constant dense<0.000000e+00> : vector<16x16xf32>
    %134 = tpu.matmul %129, %131, %cst_31 {dimension_numbers = #tpu.dot_dimension_numbers<[1], [1], [0], [0], [0, 0, 1, 0], [], []>} : vector<16x64xbf16>, vector<16x64xbf16>, vector<16x16xf32> -> vector<16x16xf32>
    %135 = vector.broadcast %9 : f32 to vector<16x16xf32>
    %136 = arith.mulf %134, %135 : vector<16x16xf32>
    %cst_32 = arith.constant -1.000000e+30 : f32
    %137 = vector.broadcast %cst_32 : f32 to vector<16x16xf32>
    %138 = arith.select %12, %136, %137 : vector<16x16xi1>, vector<16x16xf32>
    %cst_33 = arith.constant dense<0xFF800000> : vector<16xf32>
    %139 = vector.multi_reduction <maximumf>, %138, %cst_33 [1] : vector<16x16xf32> to vector<16xf32>
    %140 = vector.shape_cast %139 : vector<16xf32> to vector<16x1xf32>
    %141 = vector.broadcast %140 : vector<16x1xf32> to vector<16x16xf32>
    %142 = arith.subf %138, %141 : vector<16x16xf32>
    %143 = math.exp %142 : vector<16x16xf32>
    %cst_34 = arith.constant dense<0.000000e+00> : vector<16xf32>
    %144 = vector.multi_reduction <add>, %143, %cst_34 [1] : vector<16x16xf32> to vector<16xf32>
    %145 = vector.shape_cast %144 : vector<16xf32> to vector<16x1xf32>
    %146 = tpu.reciprocal %145 {approx = true} : vector<16x1xf32> -> vector<16x1xf32>
    %147 = vector.broadcast %146 : vector<16x1xf32> to vector<16x16xf32>
    %148 = arith.mulf %143, %147 : vector<16x16xf32>
    %149 = arith.truncf %148 : vector<16x16xf32> to vector<16x16xbf16>
    %cst_35 = arith.constant dense<0.000000e+00> : vector<16x64xf32>
    %150 = tpu.matmul %149, %133, %cst_35 {dimension_numbers = #tpu.dot_dimension_numbers<[1], [0], [0], [1], [0, 0, 1, 1], [], []>} : vector<16x16xbf16>, vector<16x64xbf16>, vector<16x64xf32> -> vector<16x64xf32>
    %151 = tpu.concatenate %35, %58, %81, %104, %127, %150 in 1 : vector<16x64xf32>, vector<16x64xf32>, vector<16x64xf32>, vector<16x64xf32>, vector<16x64xf32>, vector<16x64xf32> -> vector<16x384xf32>
    %c0_36 = arith.constant 0 : index
    %c0_37 = arith.constant 0 : index
    %152 = vector.load %arg3[%c0_36, %c0_37] : memref<384x384xf32, #tpu.memory_space<vmem>>, vector<384x384xf32>
    %153 = arith.truncf %152 : vector<384x384xf32> to vector<384x384xbf16>
    %c0_38 = arith.constant 0 : index
    %c0_39 = arith.constant 0 : index
    %154 = vector.load %arg4[%c0_38, %c0_39] : memref<1x384xf32, #tpu.memory_space<vmem>>, vector<1x384xf32>
    %155 = arith.truncf %151 : vector<16x384xf32> to vector<16x384xbf16>
    %cst_40 = arith.constant dense<0.000000e+00> : vector<16x384xf32>
    %156 = tpu.matmul %155, %153, %cst_40 {dimension_numbers = #tpu.dot_dimension_numbers<[1], [0], [0], [1], [0, 0, 1, 1], [], []>} : vector<16x384xbf16>, vector<384x384xbf16>, vector<16x384xf32> -> vector<16x384xf32>
    %157 = vector.broadcast %154 : vector<1x384xf32> to vector<16x384xf32>
    %158 = arith.addf %156, %157 : vector<16x384xf32>
    %c0_41 = arith.constant 0 : index
    %c0_42 = arith.constant 0 : index
    %c0_43 = arith.constant 0 : index
    %159 = vector.load %arg5[%c0_41, %c0_42, %c0_43] : memref<1x16x384xf32, #tpu.memory_space<vmem>>, vector<1x16x384xf32>
    %160 = vector.shape_cast %159 : vector<1x16x384xf32> to vector<16x384xf32>
    %161 = vector.shape_cast %158 : vector<16x384xf32> to vector<1x16x384xf32>
    tpu.vector_store %arg5[%c0_41, %c0_42, %c0_43], %161 {strides = array<i32>} : memref<1x16x384xf32, #tpu.memory_space<vmem>>, vector<1x16x384xf32>,
    return
  }
  func.func @transform_0(%arg0: i32) -> (i32, i32, i32) {
    %c0_i32 = arith.constant 0 : i32
    %c0_i32_0 = arith.constant 0 : i32
    %c0_i32_1 = arith.constant 0 : i32
    return %arg0, %c0_i32, %c0_i32_0 : i32, i32, i32
  }
  func.func @transform_1(%arg0: i32) -> (i32, i32) {
    %c0_i32 = arith.constant 0 : i32
    %c0_i32_0 = arith.constant 0 : i32
    %c0_i32_1 = arith.constant 0 : i32
    return %c0_i32, %c0_i32_0 : i32, i32
  }
  func.func @transform_2(%arg0: i32) -> (i32, i32) {
    %c0_i32 = arith.constant 0 : i32
    %c0_i32_0 = arith.constant 0 : i32
    %c0_i32_1 = arith.constant 0 : i32
    return %c0_i32, %c0_i32_0 : i32, i32
  }
  func.func @transform_3(%arg0: i32) -> (i32, i32) {
    %c0_i32 = arith.constant 0 : i32
    %c0_i32_0 = arith.constant 0 : i32
    %c0_i32_1 = arith.constant 0 : i32
    return %c0_i32, %c0_i32_0 : i32, i32
  }
  func.func @transform_4(%arg0: i32) -> (i32, i32, i32) {
    %c0_i32 = arith.constant 0 : i32
    %c0_i32_0 = arith.constant 0 : i32
    %c0_i32_1 = arith.constant 0 : i32
    return %arg0, %c0_i32, %c0_i32_0 : i32, i32, i32
  }
}

</mosaic_0001>

<bundles_post_ra>
// kernel: tpu_custom_call.1
= control target key start
LH: loop header
LB: loop body
LE: loop exit
PB: predicated region body
PF: predicated region fallthrough
CT: control target
= control target key end

     0   :  { %9 = vsyncpa [#allocation3], 0  ;;  %s3835_s0 = inlined_call_operand.hbm [shape: f32[2,16,384], index: 0, kind: input, shape index: {}]   ;;  %s3836_s1 = inlined_call_operand.hbm [shape: f32[384,1152], index: 1, kind: input, shape index: {}]   ;;  %s3837_s2 = inlined_call_operand.hbm [shape: f32[384,384], index: 2, kind: input, shape index: {}]   ;;  %s3838_s3 = inlined_call_operand.hbm [shape: f32[1,384], index: 3, kind: input, shape index: {}]   ;;  %s3839_s4 = inlined_call_operand.hbm [shape: f32[2,16,384], index: 4, kind: output, shape index: {}]  }
   0x1   :  { %11 = vsyncpa [#allocation3 + $0x1], 0 }
   0x2   :  { %12 = vsyncpa [#allocation6], 0 }
   0x3   :  { %13 = vsyncpa [#allocation9], 0 }
   0x4   :  { %14 = vsyncpa [#allocation4], 0 }
   0x5   :  { %16 = vsyncpa [#allocation4 + $0x1], 0  ;;  %s3286_s15 = smov 0   ;;  %s3288_s16 = smov 0  }
   0x6   :  { %s3290_s17 = smov 0   ;;  %s3292_s18 = smov 0  }
   0x7 LB: > { %s3307_s19 = sadd.s32 4294967295, %s3244_s18   ;;  %s2654_s20 = sadd.s32 4294967294, %s3244_s18   ;;  %s3244_s18 = sphi %s3292_s18, %s3866_s18   ;;  %s3240_s17 = sphi %s3290_s17, %s3865_s17   ;;  %s3236_s16 = sphi %s3288_s16, %s3864_s16   ;;  %s3232_s15 = sphi %s3286_s15, %s3863_s15  }
   0x8   : > { %p42_p0 = scmp.ne.s32.totalorder %s3236_s16, %s3232_s15  ;;  %p3840_p1 = scmp.eq.s32.totalorder %s3307_s19, 0 }
   0x9   : > { %p135_p3 = scmp.eq.s32.totalorder %s2654_s20, 1  ;;  %p2655_p5 = scmp.ge.s32.totalorder %s3244_s18, 1 }
   0xa   : > { %p3316_p4 = por %p3840_p1, %p42_p0  ;;  %p142_p7 = scmp.lt.s32.totalorder %s3244_s18, 3 }
   0xb   : > { %p3321_p6 = por %p135_p3, %p42_p0  ;;  %s3246_s24 = smov [#allocation5]  }
   0xc   : > { %s3843_s21 = scalar_select %p3316_p4, 1, 0 }
   0xd   : > { %s3844_s22 = scalar_select %p3321_p6, 1, 0 }
   0xe   : > { %p3326_p8 = pnand %p2655_p5, %p142_p7  ;;  %s154_s25 = sshll.u32 %s3246_s24, 4  ;;  %s3330_s25 = int_to_ptr.vmem [resolvable:$true] %s154_s25 }
   0xf   : > { %s3247_s27 = smov [#allocation7]   ;;  %s3056_s5 = scalar_lea.hbm %s3836_s1, 55296 }
  0x10   : > { %s3845_s23 = scalar_select %p3326_p8, 1, 0 }
  0x11   : > { %p2922_p9 = pneg %p3326_p8  ;;  %s167_s28 = sshll.u32 %s3247_s27, 4  ;;  %s3341_s28 = int_to_ptr.vmem [resolvable:$true] %s167_s28 }
  0x12   : > { %p3057_p12 = scmp.ne.s32.totalorder %s3836_s1, %s3056_s5  ;;  %p3063_p5 = scmp.lt.u32.totalorder %s3056_s5, %s3836_s1 }
  0x13   : > { %p3337_p11 = pnand %p2922_p9, %p3840_p1 }
  0x15   : > { %p3351_p13 = pneg %p3337_p11 }
  0x17   : > { %p3059_p0 = pnand %p3351_p13, %p3057_p12 }
  0x19   : > { %p3060_p3 = pneg %p3059_p0 }
  0x1b   : > { %p3065_p7 = pnand %p3063_p5, %p3060_p3 }
  0x1d   : > { %3068 = shalt.err (!%p3065_p7)
}
  0x1e   : > { %s3069_s11 = scalar_lea.vmem %s3330_s25, 55296  ;;  %p3077_p2 = scmp.lt.s32.totalorder %s3330_s25, %s3330_s25 }
  0x1f   : > { %p3070_p9 = scmp.ne.s32.totalorder %s3330_s25, %s3069_s11  ;;  %p3078_p6 = scmp.lt.s32.totalorder %s3069_s11, %s3069_s11 }
  0x21   : > { %p3072_p10 = pnand %p3070_p9, %p3351_p13  ;;  %p3079_p12 = por %p3078_p6, %p3077_p2 }
  0x23   : > { %p3073_p1 = pneg %p3072_p10 }
  0x25   : > { %p3080_p0 = pnand %p3079_p12, %p3073_p1 }
  0x27   : > { %3083 = shalt.err (!%p3080_p0)
}
  0x28   : > { %s3248_s12 = smov 1152   ;;  %s3249_s13 = smov 72  }
  0x29   : > { %2925 = dma.hbm_to_vmem [thread:$0]  (!%p3337_p11), %s3836_s1, 55296, %s3330_s25, [#allocation6], %s3248_s12, %s3248_s12, %s3249_s13  }
  0x2a   : > { %s3084_s29 = scalar_lea.hbm %s3837_s2, 18432 }
  0x2b   : > { %p3085_p2 = scmp.ne.s32.totalorder %s3837_s2, %s3084_s29  ;;  %p3091_p10 = scmp.lt.u32.totalorder %s3084_s29, %s3837_s2 }
  0x2d   : > { %p3087_p1 = pnand %p3085_p2, %p3351_p13 }
  0x2f   : > { %p3088_p6 = pneg %p3087_p1 }
  0x31   : > { %p3093_p3 = pnand %p3091_p10, %p3088_p6 }
  0x33   : > { %3096 = shalt.err (!%p3093_p3)
}
  0x34   : > { %s3097_s25 = scalar_lea.vmem %s3341_s28, 18432  ;;  %p3105_p12 = scmp.lt.s32.totalorder %s3341_s28, %s3341_s28 }
  0x35   : > { %p3098_p5 = scmp.ne.s32.totalorder %s3341_s28, %s3097_s25  ;;  %p3106_p0 = scmp.lt.s32.totalorder %s3097_s25, %s3097_s25 }
  0x37   : > { %p3100_p7 = pnand %p3098_p5, %p3351_p13  ;;  %p3107_p2 = por %p3106_p0, %p3105_p12 }
  0x39   : > { %p3101_p9 = pneg %p3100_p7 }
  0x3b   : > { %p3108_p1 = pnand %p3107_p2, %p3101_p9 }
  0x3d   : > { %3111 = shalt.err (!%p3108_p1)
}
  0x3e   : > { %s3250_s9 = smov 384   ;;  %s3251_s10 = smov 24  }
  0x3f   : > { %2928 = dma.hbm_to_vmem [thread:$0]  (!%p3337_p11), %s3837_s2, 18432, %s3341_s28, [#allocation6], %s3250_s9, %s3250_s9, %s3251_s10  }
  0x40   : > { %s3252_s13 = smov [#allocation8]   ;;  %s3399_s20 = sadd.s32 1, %s3244_s18  }
  0x41   : > { %s181_s14 = sshll.u32 %s3252_s13, 4  ;;  %s3112_s29 = scalar_lea.hbm %s3838_s3, 48  ;;  %s182_s14 = int_to_ptr.vmem [resolvable:$true] %s181_s14 }
  0x42   : > { %p3113_p6 = scmp.ne.s32.totalorder %s3838_s3, %s3112_s29  ;;  %p3119_p5 = scmp.lt.u32.totalorder %s3112_s29, %s3838_s3 }
  0x44   : > { %p3115_p10 = pnand %p3113_p6, %p3351_p13 }
  0x46   : > { %p3116_p3 = pneg %p3115_p10 }
  0x48   : > { %p3121_p7 = pnand %p3119_p5, %p3116_p3 }
  0x4a   : > { %3124 = shalt.err (!%p3121_p7)
}
  0x4b   : > { %s3125_s28 = scalar_lea.vmem %s182_s14, 48  ;;  %s3132_s25 = scalar_lea.vmem %s182_s14, 64 }
  0x4c   : > { %p3126_p9 = scmp.ne.s32.totalorder %s182_s14, %s3125_s28  ;;  %p3133_p2 = scmp.lt.s32.totalorder %s182_s14, %s182_s14 }
  0x4d   : > { %p3134_p1 = scmp.lt.s32.totalorder %s3132_s25, %s3125_s28 }
  0x4e   : > { %p3128_p12 = pnand %p3126_p9, %p3351_p13 }
  0x4f   : > { %p3135_p4 = por %p3134_p1, %p3133_p2 }
  0x50   : > { %p3129_p0 = pneg %p3128_p12 }
  0x52   : > { %p3136_p8 = pnand %p3135_p4, %p3129_p0 }
  0x54   : > { %3139 = shalt.err (!%p3136_p8)
}
  0x55   : > { %2931 = dma.hbm_to_vmem [thread:$0]  (!%p3337_p11), %s3838_s3, 48, %s182_s14, [#allocation9]  }
  0x56   : > { %s26_s8 = ssub.s32 %s3244_s18, %s3399_s20  ;;  %s29_s13 = sadd.s32 1, %s3240_s17 }
  0x57   : > { %p27_p4 = scmp.eq.s32.totalorder %s26_s8, 0  ;;  %p36_p8 = scmp.ne.s32.totalorder %s3240_s17, %s3236_s16 }
  0x58   : > { %p37_p13 = scmp.eq.s32.totalorder %s3244_s18, 0  ;;  %p2943_p6 = scmp.lt.s32.totalorder %s3244_s18, 2 }
  0x59   : > { %s3427_s26 = scalar_select %p27_p4, %s3240_s17, %s29_s13  }
  0x5a   : > { %p38_p10 = por %p37_p13, %p36_p8  ;;  %p3848_p3 = scmp.eq.s32.totalorder %s3307_s19, 1 }
  0x5b   : > { %s192_s27 = sand.u32 1, %s3240_s17   ;;  %s2903_s29 = smul.u32 768, %s3244_s18 }
  0x5c   : > { %p3431_p5 = por %p3848_p3, %p36_p8  ;;  %s2902_s30 = smul.u32 48, %s192_s27 }
  0x5d   : > { %p3437_p7 = pnand %p2943_p6, %p38_p10  ;;  %s3444_s7 = scalar_lea.hbm %s3835_s0, %s2903_s29 }
  0x5e   : > { %s196_s28 = scalar_lea.vmem [#allocation2], %s2902_s30  ;;  %s3448_s11 = scalar_lea.sflag [#allocation3], %s192_s27 }
  0x5f   : > { %s203_s25 = sshll.u32 %s196_s28, 4  ;;  %s3140_s12 = scalar_lea.hbm %s3444_s7, 768  ;;  %s3446_s25 = int_to_ptr.vmem [resolvable:$true] %s203_s25 }
  0x60   : > { %p3141_p11 = scmp.ne.s32.totalorder %s3444_s7, %s3140_s12  ;;  %p3142_p9 = pneg %p3437_p7 }
  0x61   : > { %s3145_s29 = scalar_lea.hbm %s3835_s0, 1536  ;;  %p3146_p2 = scmp.lt.u32.totalorder %s3444_s7, %s3835_s0 }
  0x62   : > { %p3143_p12 = pnand %p3142_p9, %p3141_p11  ;;  %p3147_p1 = scmp.lt.u32.totalorder %s3145_s29, %s3140_s12 }
  0x63   : > { %p3149_p8 = scmp.lt.u32.totalorder %s3140_s12, %s3444_s7 }
  0x64   : > { %p3144_p0 = pneg %p3143_p12  ;;  %p3148_p4 = por %p3147_p1, %p3146_p2 }
  0x66   : > { %p3150_p13 = por %p3149_p8, %p3148_p4 }
  0x68   : > { %p3151_p6 = pnand %p3150_p13, %p3144_p0 }
  0x6a   : > { %3154 = shalt.err (!%p3151_p6)
}
  0x6b   : > { %s3155_s27 = scalar_lea.vmem %s3446_s25, 768  ;;  %s3253_s30 = smov [#allocation2]  }
  0x6c   : > { %p3156_p10 = scmp.ne.s32.totalorder %s3446_s25, %s3155_s27  ;;  %s3160_s28 = sshll.u32 %s3253_s30, 4  ;;  %s3161_s28 = int_to_ptr.vmem [resolvable:$false] %s3160_s28 }
  0x6d   : > { %s3162_s8 = scalar_lea.vmem %s3161_s28, 1536  ;;  %p3163_p12 = scmp.lt.s32.totalorder %s3446_s25, %s3161_s28 }
  0x6e   : > { %p3158_p3 = pnand %p3156_p10, %p3142_p9  ;;  %p3164_p2 = scmp.lt.s32.totalorder %s3162_s8, %s3155_s27 }
  0x70   : > { %p3159_p11 = pneg %p3158_p3  ;;  %p3165_p1 = por %p3164_p2, %p3163_p12 }
  0x72   : > { %p3166_p4 = pnand %p3165_p1, %p3159_p11 }
  0x74   : > { %3169 = shalt.err (!%p3166_p4)
}
  0x75   : > { %2935 = dma.hbm_to_vmem [thread:$0]  (!%p3437_p7), %s3444_s7, 768, %s3446_s25, %s3448_s11, %s3250_s9, %s3250_s9, %s3251_s10  }
  0x76   : > { %p3851_p9 = scmp.ne.s32.totalorder %s3845_s23, 0 }
  0x77   : > { %s3482_s12 = sand.u32 (!%p3851_p9), 1, %s3236_s16   ;;  %p3852_p0 = scmp.ne.s32.totalorder (!%p3851_p9), %s3843_s21, 0 }
  0x78   : > { %215 = sbr.rel (%p3851_p9) target bundleno = 2178 (0x882), region = 36  ;;  %s218_s29 = scalar_lea.sflag (!%p3851_p9), [#allocation3], %s3482_s12 }
  0x79   : > { %s2904_s13 = smul.u32 (!%p3851_p9), 48, %s3482_s12 }
  0x7b   : > { %s3488_s5 = scalar_lea.vmem (!%p3851_p9), [#allocation2], %s2904_s13 }
  0x7f   : > { %3215 = dma.done.wait (%p3852_p0), %s218_s29, 768  }
  0x80   : > { %3217 = vsyncadd (%p3852_p0), %s218_s29, 4294966528  ;;  %p3853_p7 = scmp.eq.s32.totalorder %s3307_s19, 0 }
  0x82   : > { %3219 = dma.done.wait (%p3853_p7), [#allocation6], 73728   ;;  %p3854_p8 = pmov %p3853_p7 }
  0x83   : > { %p3855_p13 = pmov %p3853_p7 }
  0x84   : > { %3221 = vsyncadd (%p3854_p8), [#allocation6], 4294893568 }
  0x85   : > { %3223 = dma.done.wait (%p3855_p13), [#allocation9], 48   ;;  %p3856_p6 = pmov %p3853_p7 }
  0x86   : > { %v269_v0 = vld [vmem:[#allocation5 + $0x8] sm:$0xff]  ;;  %v278_v1 = vld [vmem:[#allocation5 + $0x50] sm:$0xff]  ;;  %v271_v2 = vld [vmem:[#allocation5 + $0x18] sm:$0xff]  ;;  %vm3256_vm0 = vmmov 0   ;;  %vm1352_vm1 = vcmask 523264   ;;  %vm1404_vm3 = vcmask 130048  }
  0x87   : > { %3225 = vsyncadd (%p3856_p6), [#allocation9], 4294967248  ;;  %v701_v3 = vpack.c.bf16 %v278_v1, %v269_v0  ;;  %v280_v4 = vld [vmem:[#allocation5 + $0x60] sm:$0xff]  ;;  %v277_v6 = vld [vmem:[#allocation5 + $0x48] sm:$0xff]  ;;  %s3257_s21 = smov 64   ;;  %s257_s23 = scalar_lea.vmem [#allocation10], %s2904_s13 }
  0x88   : > { %v268_v5 = vld [vmem:[#allocation5] sm:$0xff]  ;;  %v703_v7 = vpack.c.bf16 %v280_v4, %v271_v2  ;;  %v270_v9 = vld [vmem:[#allocation5 + $0x10] sm:$0xff]  ;;  %v279_v10 = vld [vmem:[#allocation5 + $0x58] sm:$0xff]  ;;  %s2552_s9 = sshll.u32 %s257_s23, 4  ;;  %s2905_s10 = smul.u32 768, %s3307_s19  ;;  %s3786_s9 = int_to_ptr.vmem [resolvable:$true] %s2552_s9 }
  0x89   : > { %v700_v8 = vpack.c.bf16 %v277_v6, %v268_v5  ;;  %v287_v11 = vld [vmem:[#allocation5 + $0x98] sm:$0xff]  ;;  %916 = vmatprep.subr.bf16.mxu0 %v701_v3  ;;  %v702_v12 = vpack.c.bf16 %v279_v10, %v270_v9  ;;  %v296_v13 = vld [vmem:[#allocation5 + $0xe0] sm:$0xff]  ;;  %v289_v14 = vld [vmem:[#allocation5 + $0xa8] sm:$0xff]  ;;  %s2539_s11 = scalar_lea.sflag [#allocation4], %s3482_s12  ;;  %s3170_s14 = scalar_lea.vmem %s3786_s9, 768 }
  0x8a   : > { %v298_v15 = vld [vmem:[#allocation5 + $0xf0] sm:$0xff]  ;;  %1002 = vmatprep.subr.bf16.mxu1 %v703_v7  ;;  %v710_v16 = vpack.c.bf16 %v296_v13, %v287_v11  ;;  %v295_v19 = vld [vmem:[#allocation5 + $0xd8] sm:$0xff]  ;;  %v288_v20 = vld [vmem:[#allocation5 + $0xa0] sm:$0xff]  ;;  %s3791_s25 = scalar_lea.hbm %s3839_s4, %s2905_s10  ;;  %p3171_p10 = scmp.ne.s32.totalorder %s3786_s9, %s3170_s14 }
  0x8b   : > { %917 = vmatpush1.bf16.msra.mxu0 %v700_v8  ;;  %v712_v17 = vpack.c.bf16 %v298_v15, %v289_v14  ;;  %v286_v18 = vld [vmem:[#allocation5 + $0x90] sm:$0xff]  ;;  %1003 = vmatpush1.bf16.msra.mxu1 %v702_v12  ;;  %v297_v22 = vld [vmem:[#allocation5 + $0xe8] sm:$0xff]  ;;  %v307_v27 = vld [vmem:[#allocation5 + $0x138] sm:$0xff]  ;;  %s3258_s6 = smov [#allocation10]  }
  0x8c   : > { %v709_v21 = vpack.c.bf16 %v295_v19, %v286_v18  ;;  %v305_v23 = vld [vmem:[#allocation5 + $0x128] sm:$0xff]  ;;  %v314_v24 = vld [vmem:[#allocation5 + $0x170] sm:$0xff]  ;;  %918 = vmatprep.subr.bf16.mxu0 %v710_v16  ;;  %v711_v25 = vpack.c.bf16 %v297_v22, %v288_v20  ;;  %v316_v28 = vld [vmem:[#allocation5 + $0x180] sm:$0xff]  ;;  %p3172_p3 = pnand %p3171_p10, %p3431_p5  ;;  %s3174_s27 = sshll.u32 %s3258_s6, 4  ;;  %s3175_s27 = int_to_ptr.vmem [resolvable:$false] %s3174_s27 }
  0x8d   : > { %1004 = vmatprep.subr.bf16.mxu1 %v712_v17  ;;  %v719_v26 = vpack.c.bf16 %v314_v24, %v305_v23  ;;  %v304_v29 = vld [vmem:[#allocation5 + $0x120] sm:$0xff]  ;;  %v721_v30 = vpack.c.bf16 %v316_v28, %v307_v27  ;;  %v313_v31 = vld [vmem:[#allocation5 + $0x168] sm:$0xff]  ;;  %v306_v32 = vld [vmem:[#allocation5 + $0x130] sm:$0xff]  ;;  %s3176_s30 = scalar_lea.vmem %s3175_s27, 1536  ;;  %p3177_p12 = scmp.lt.s32.totalorder %s3786_s9, %s3175_s27 }
  0x8e   : > { %v315_v33 = vld [vmem:[#allocation5 + $0x178] sm:$0xff]  ;;  %v718_v34 = vpack.c.bf16 %v313_v31, %v304_v29  ;;  %v332_v36 = vld [vmem:[#allocation5 + $0x200] sm:$0xff]  ;;  %v325_v37 = vld [vmem:[#allocation5 + $0x1c8] sm:$0xff]  ;;  %p3173_p11 = pneg %p3172_p3  ;;  %p3178_p2 = scmp.lt.s32.totalorder %s3176_s30, %s3170_s14 }
  0x8f   : > { %919 = vmatpush1.bf16.msra.mxu0 %v709_v21  ;;  %v323_v35 = vld [vmem:[#allocation5 + $0x1b8] sm:$0xff]  ;;  %1005 = vmatpush1.bf16.msra.mxu1 %v711_v25  ;;  %v720_v38 = vpack.c.bf16 %v315_v33, %v306_v32  ;;  %v334_v40 = vld [vmem:[#allocation5 + $0x210] sm:$0xff]  ;;  %v324_v44 = vld [vmem:[#allocation5 + $0x1c0] sm:$0xff] }
  0x90   : > { %920 = vmatprep.subr.bf16.mxu0 %v719_v26  ;;  %v728_v39 = vpack.c.bf16 %v332_v36, %v323_v35  ;;  %v322_v41 = vld [vmem:[#allocation5 + $0x1b0] sm:$0xff]  ;;  %v331_v42 = vld [vmem:[#allocation5 + $0x1f8] sm:$0xff]  ;;  %1006 = vmatprep.subr.bf16.mxu1 %v721_v30  ;;  %v730_v43 = vpack.c.bf16 %v334_v40, %v325_v37  ;;  %v333_v45 = vld [vmem:[#allocation5 + $0x208] sm:$0xff]  ;;  %p3179_p1 = por %p3178_p2, %p3177_p12 }
  0x91   : > { %v341_v46 = vld [vmem:[#allocation5 + $0x248] sm:$0xff]  ;;  %v350_v47 = vld [vmem:[#allocation5 + $0x290] sm:$0xff]  ;;  %v343_v48 = vld [vmem:[#allocation5 + $0x258] sm:$0xff]  ;;  %v727_v50 = vpack.c.bf16 %v331_v42, %v322_v41  ;;  %v729_v51 = vpack.c.bf16 %v333_v45, %v324_v44 }
  0x92   : > { %v352_v49 = vld [vmem:[#allocation5 + $0x2a0] sm:$0xff]  ;;  %v737_v52 = vpack.c.bf16 %v350_v47, %v341_v46  ;;  %v349_v54 = vld [vmem:[#allocation5 + $0x288] sm:$0xff]  ;;  %v342_v55 = vld [vmem:[#allocation5 + $0x250] sm:$0xff]  ;;  %p3180_p4 = pnand %p3179_p1, %p3173_p11 }
  0x93   : > { %921 = vmatpush1.bf16.msra.mxu0 %v718_v34  ;;  %1007 = vmatpush1.bf16.msra.mxu1 %v720_v38  ;;  %v340_v53 = vld [vmem:[#allocation5 + $0x240] sm:$0xff]  ;;  %v739_v56 = vpack.c.bf16 %v352_v49, %v343_v48  ;;  %v351_v57 = vld [vmem:[#allocation5 + $0x298] sm:$0xff]  ;;  %v361_v60 = vld [vmem:[#allocation5 + $0x2e8] sm:$0xff] }
  0x94   : > { %922 = vmatprep.subr.bf16.mxu0 %v728_v39  ;;  %1008 = vmatprep.subr.bf16.mxu1 %v730_v43  ;;  %v359_v58 = vld [vmem:[#allocation5 + $0x2d8] sm:$0xff]  ;;  %v368_v59 = vld [vmem:[#allocation5 + $0x320] sm:$0xff]  ;;  %v370_v61 = vld [vmem:[#allocation5 + $0x330] sm:$0xff]  ;;  %v736_v62 = vpack.c.bf16 %v349_v54, %v340_v53  ;;  %v738_v63 = vpack.c.bf16 %v351_v57, %v342_v55 }
  0x95   : > { %v746_v0 = vpack.c.bf16 %v368_v59, %v359_v58  ;;  %v358_v1 = vld [vmem:[#allocation5 + $0x2d0] sm:$0xff]  ;;  %v367_v2 = vld [vmem:[#allocation5 + $0x318] sm:$0xff]  ;;  %v360_v3 = vld [vmem:[#allocation5 + $0x2e0] sm:$0xff]  ;;  %v748_v4 = vpack.c.bf16 %v370_v61, %v361_v60 }
  0x96   : > { %v369_v5 = vld [vmem:[#allocation5 + $0x328] sm:$0xff]  ;;  %v386_v7 = vld [vmem:[#allocation5 + $0x3b0] sm:$0xff]  ;;  %v379_v8 = vld [vmem:[#allocation5 + $0x378] sm:$0xff]  ;;  %v745_v10 = vpack.c.bf16 %v367_v2, %v358_v1 }
  0x97   : > { %923 = vmatpush1.bf16.msra.mxu0 %v727_v50  ;;  %1009 = vmatpush1.bf16.msra.mxu1 %v729_v51  ;;  %v377_v6 = vld [vmem:[#allocation5 + $0x368] sm:$0xff]  ;;  %v388_v9 = vld [vmem:[#allocation5 + $0x3c0] sm:$0xff]  ;;  %v747_v11 = vpack.c.bf16 %v369_v5, %v360_v3  ;;  %v378_v15 = vld [vmem:[#allocation5 + $0x370] sm:$0xff] }
  0x98   : > { %924 = vmatprep.subr.bf16.mxu0 %v737_v52  ;;  %1010 = vmatprep.subr.bf16.mxu1 %v739_v56  ;;  %v755_v12 = vpack.c.bf16 %v386_v7, %v377_v6  ;;  %v376_v13 = vld [vmem:[#allocation5 + $0x360] sm:$0xff]  ;;  %v385_v14 = vld [vmem:[#allocation5 + $0x3a8] sm:$0xff]  ;;  %v757_v16 = vpack.c.bf16 %v388_v9, %v379_v8  ;;  %v387_v17 = vld [vmem:[#allocation5 + $0x3b8] sm:$0xff] }
  0x99   : > { %v395_v18 = vld [vmem:[#allocation5 + $0x3f8] sm:$0xff]  ;;  %v404_v19 = vld [vmem:[#allocation5 + $0x440] sm:$0xff]  ;;  %v397_v20 = vld [vmem:[#allocation5 + $0x408] sm:$0xff]  ;;  %v754_v22 = vpack.c.bf16 %v385_v14, %v376_v13  ;;  %v756_v23 = vpack.c.bf16 %v387_v17, %v378_v15 }
  0x9a   : > { %v406_v21 = vld [vmem:[#allocation5 + $0x450] sm:$0xff]  ;;  %v764_v24 = vpack.c.bf16 %v404_v19, %v395_v18  ;;  %v403_v26 = vld [vmem:[#allocation5 + $0x438] sm:$0xff]  ;;  %v396_v27 = vld [vmem:[#allocation5 + $0x400] sm:$0xff] }
  0x9b   : > { %925 = vmatpush1.bf16.msra.mxu0 %v736_v62  ;;  %1011 = vmatpush1.bf16.msra.mxu1 %v738_v63  ;;  %v394_v25 = vld [vmem:[#allocation5 + $0x3f0] sm:$0xff]  ;;  %v766_v28 = vpack.c.bf16 %v406_v21, %v397_v20  ;;  %v405_v29 = vld [vmem:[#allocation5 + $0x448] sm:$0xff]  ;;  %v415_v32 = vld [vmem:[#allocation5 + $0x498] sm:$0xff] }
  0x9c   : > { %926 = vmatprep.subr.bf16.mxu0 %v746_v0  ;;  %1012 = vmatprep.subr.bf16.mxu1 %v748_v4  ;;  %v413_v30 = vld [vmem:[#allocation5 + $0x488] sm:$0xff]  ;;  %v422_v31 = vld [vmem:[#allocation5 + $0x4d0] sm:$0xff]  ;;  %v424_v33 = vld [vmem:[#allocation5 + $0x4e0] sm:$0xff]  ;;  %v763_v34 = vpack.c.bf16 %v403_v26, %v394_v25  ;;  %v765_v35 = vpack.c.bf16 %v405_v29, %v396_v27 }
  0x9d   : > { %v773_v36 = vpack.c.bf16 %v422_v31, %v413_v30  ;;  %v412_v37 = vld [vmem:[#allocation5 + $0x480] sm:$0xff]  ;;  %v421_v38 = vld [vmem:[#allocation5 + $0x4c8] sm:$0xff]  ;;  %v414_v39 = vld [vmem:[#allocation5 + $0x490] sm:$0xff]  ;;  %v775_v40 = vpack.c.bf16 %v424_v33, %v415_v32 }
  0x9e   : > { %v423_v41 = vld [vmem:[#allocation5 + $0x4d8] sm:$0xff]  ;;  %v440_v43 = vld [vmem:[#allocation5 + $0x560] sm:$0xff]  ;;  %v433_v44 = vld [vmem:[#allocation5 + $0x528] sm:$0xff]  ;;  %v772_v46 = vpack.c.bf16 %v421_v38, %v412_v37 }
  0x9f   : > { %927 = vmatpush1.bf16.msra.mxu0 %v745_v10  ;;  %1013 = vmatpush1.bf16.msra.mxu1 %v747_v11  ;;  %v431_v42 = vld [vmem:[#allocation5 + $0x518] sm:$0xff]  ;;  %v442_v45 = vld [vmem:[#allocation5 + $0x570] sm:$0xff]  ;;  %v774_v47 = vpack.c.bf16 %v423_v41, %v414_v39  ;;  %v432_v51 = vld [vmem:[#allocation5 + $0x520] sm:$0xff] }
  0xa0   : > { %928 = vmatprep.subr.bf16.mxu0 %v755_v12  ;;  %1014 = vmatprep.subr.bf16.mxu1 %v757_v16  ;;  %v782_v48 = vpack.c.bf16 %v440_v43, %v431_v42  ;;  %v430_v49 = vld [vmem:[#allocation5 + $0x510] sm:$0xff]  ;;  %v439_v50 = vld [vmem:[#allocation5 + $0x558] sm:$0xff]  ;;  %v784_v52 = vpack.c.bf16 %v442_v45, %v433_v44  ;;  %v441_v53 = vld [vmem:[#allocation5 + $0x568] sm:$0xff] }
  0xa1   : > { %v449_v54 = vld [vmem:[#allocation5 + $0x5a8] sm:$0xff]  ;;  %v458_v55 = vld [vmem:[#allocation5 + $0x5f0] sm:$0xff]  ;;  %v451_v56 = vld [vmem:[#allocation5 + $0x5b8] sm:$0xff]  ;;  %v781_v58 = vpack.c.bf16 %v439_v50, %v430_v49  ;;  %v783_v59 = vpack.c.bf16 %v441_v53, %v432_v51 }
  0xa2   : > { %v460_v57 = vld [vmem:[#allocation5 + $0x600] sm:$0xff]  ;;  %v791_v60 = vpack.c.bf16 %v458_v55, %v449_v54  ;;  %v457_v62 = vld [vmem:[#allocation5 + $0x5e8] sm:$0xff]  ;;  %v450_v63 = vld [vmem:[#allocation5 + $0x5b0] sm:$0xff] }
  0xa3   : > { %929 = vmatpush1.bf16.msra.mxu0 %v754_v22  ;;  %1015 = vmatpush1.bf16.msra.mxu1 %v756_v23  ;;  %v448_v61 = vld [vmem:[#allocation5 + $0x5a0] sm:$0xff]  ;;  %v793_v0 = vpack.c.bf16 %v460_v57, %v451_v56  ;;  %v459_v1 = vld [vmem:[#allocation5 + $0x5f8] sm:$0xff]  ;;  %v469_v4 = vld [vmem:[#allocation5 + $0x648] sm:$0xff] }
  0xa4   : > { %930 = vmatprep.subr.bf16.mxu0 %v764_v24  ;;  %1016 = vmatprep.subr.bf16.mxu1 %v766_v28  ;;  %v467_v2 = vld [vmem:[#allocation5 + $0x638] sm:$0xff]  ;;  %v476_v3 = vld [vmem:[#allocation5 + $0x680] sm:$0xff]  ;;  %v478_v5 = vld [vmem:[#allocation5 + $0x690] sm:$0xff]  ;;  %v790_v6 = vpack.c.bf16 %v457_v62, %v448_v61  ;;  %v792_v8 = vpack.c.bf16 %v459_v1, %v450_v63 }
  0xa5   : > { %v466_v7 = vld [vmem:[#allocation5 + $0x630] sm:$0xff]  ;;  %v800_v9 = vpack.c.bf16 %v476_v3, %v467_v2  ;;  %v475_v10 = vld [vmem:[#allocation5 + $0x678] sm:$0xff]  ;;  %v468_v11 = vld [vmem:[#allocation5 + $0x640] sm:$0xff]  ;;  %v802_v13 = vpack.c.bf16 %v478_v5, %v469_v4 }
  0xa6   : > { %v477_v12 = vld [vmem:[#allocation5 + $0x688] sm:$0xff]  ;;  %v494_v15 = vld [vmem:[#allocation5 + $0x710] sm:$0xff]  ;;  %v487_v17 = vld [vmem:[#allocation5 + $0x6d8] sm:$0xff]  ;;  %v799_v20 = vpack.c.bf16 %v475_v10, %v466_v7 }
  0xa7   : > { %931 = vmatpush1.bf16.msra.mxu0 %v763_v34  ;;  %1017 = vmatpush1.bf16.msra.mxu1 %v765_v35  ;;  %v485_v14 = vld [vmem:[#allocation5 + $0x6c8] sm:$0xff]  ;;  %v496_v18 = vld [vmem:[#allocation5 + $0x720] sm:$0xff]  ;;  %v801_v22 = vpack.c.bf16 %v477_v12, %v468_v11  ;;  %v486_v26 = vld [vmem:[#allocation5 + $0x6d0] sm:$0xff] }
  0xa8   : > { %932 = vmatprep.subr.bf16.mxu0 %v773_v36  ;;  %1018 = vmatprep.subr.bf16.mxu1 %v775_v40  ;;  %v260_v16 = vld [vmem:[%s3488_s5 + $0x8] sm:$0xff]  ;;  %v263_v19 = vld [vmem:[%s3488_s5 + $0x20] sm:$0xff]  ;;  %v809_v23 = vpack.c.bf16 %v494_v15, %v485_v14  ;;  %v811_v27 = vpack.c.bf16 %v496_v18, %v487_v17  ;;  %v262_v7 = vld [vmem:[%s3488_s5 + $0x18] sm:$0xff] }
  0xa9   : > { %v3504_v21 = vpack.c.bf16 %v263_v19, %v260_v16  ;;  %v484_v24 = vld [vmem:[#allocation5 + $0x6c0] sm:$0xff]  ;;  %v493_v25 = vld [vmem:[#allocation5 + $0x708] sm:$0xff]  ;;  %v495_v28 = vld [vmem:[#allocation5 + $0x718] sm:$0xff] }
  0xaa   : > { %v503_v29 = vld [vmem:[#allocation5 + $0x758] sm:$0xff]  ;;  %v512_v30 = vld [vmem:[#allocation5 + $0x7a0] sm:$0xff]  ;;  %v505_v31 = vld [vmem:[#allocation5 + $0x768] sm:$0xff]  ;;  %v808_v33 = vpack.c.bf16 %v493_v25, %v484_v24  ;;  %v810_v34 = vpack.c.bf16 %v495_v28, %v486_v26 }
  0xab   : > { %933 = vmatpush1.bf16.msra.mxu0 %v772_v46  ;;  %1019 = vmatpush1.bf16.msra.mxu1 %v774_v47  ;;  %v514_v32 = vld [vmem:[#allocation5 + $0x7b0] sm:$0xff]  ;;  %v818_v35 = vpack.c.bf16 %v512_v30, %v503_v29  ;;  %v511_v37 = vld [vmem:[#allocation5 + $0x798] sm:$0xff]  ;;  %v504_v38 = vld [vmem:[#allocation5 + $0x760] sm:$0xff] }
  0xac   : > { %934 = vmatprep.subr.bf16.mxu0 %v782_v48  ;;  %1020 = vmatprep.subr.bf16.mxu1 %v784_v52  ;;  %v502_v36 = vld [vmem:[#allocation5 + $0x750] sm:$0xff]  ;;  %v820_v39 = vpack.c.bf16 %v514_v32, %v505_v31  ;;  %v513_v40 = vld [vmem:[#allocation5 + $0x7a8] sm:$0xff]  ;;  %v523_v43 = vld [vmem:[#allocation5 + $0x7f8] sm:$0xff] }
  0xad   : > { %948 = vmatprep.mubr.bf16.mxu0 %v3504_v21  ;;  %1034 = vmatprep.mubr.bf16.mxu1 %v3504_v21  ;;  %v521_v41 = vld [vmem:[#allocation5 + $0x7e8] sm:$0xff]  ;;  %v530_v42 = vld [vmem:[#allocation5 + $0x830] sm:$0xff]  ;;  %v532_v44 = vld [vmem:[#allocation5 + $0x840] sm:$0xff]  ;;  %v817_v45 = vpack.c.bf16 %v511_v37, %v502_v36  ;;  %v819_v46 = vpack.c.bf16 %v513_v40, %v504_v38 }
  0xae   : > { %v827_v47 = vpack.c.bf16 %v530_v42, %v521_v41  ;;  %v520_v48 = vld [vmem:[#allocation5 + $0x7e0] sm:$0xff]  ;;  %v529_v49 = vld [vmem:[#allocation5 + $0x828] sm:$0xff]  ;;  %v522_v50 = vld [vmem:[#allocation5 + $0x7f0] sm:$0xff]  ;;  %v829_v51 = vpack.c.bf16 %v532_v44, %v523_v43  ;;  %v3254_v43 = vmov 0  }
  0xaf   : > { %935 = vmatpush1.bf16.msra.mxu0 %v781_v58  ;;  %1021 = vmatpush1.bf16.msra.mxu1 %v783_v59  ;;  %v531_v52 = vld [vmem:[#allocation5 + $0x838] sm:$0xff]  ;;  %v548_v54 = vld [vmem:[#allocation5 + $0x8c0] sm:$0xff]  ;;  %v541_v55 = vld [vmem:[#allocation5 + $0x888] sm:$0xff]  ;;  %v826_v57 = vpack.c.bf16 %v529_v49, %v520_v48 }
  0xb0   : > { %936 = vmatprep.subr.bf16.mxu0 %v791_v60  ;;  %1022 = vmatprep.subr.bf16.mxu1 %v793_v0  ;;  %v539_v53 = vld [vmem:[#allocation5 + $0x878] sm:$0xff]  ;;  %v550_v56 = vld [vmem:[#allocation5 + $0x8d0] sm:$0xff]  ;;  %v828_v58 = vpack.c.bf16 %v531_v52, %v522_v50  ;;  %v540_v62 = vld [vmem:[#allocation5 + $0x880] sm:$0xff] }
  0xb1   : > { %v836_v59 = vpack.c.bf16 %v548_v54, %v539_v53  ;;  %v538_v60 = vld [vmem:[#allocation5 + $0x870] sm:$0xff]  ;;  %v547_v61 = vld [vmem:[#allocation5 + $0x8b8] sm:$0xff]  ;;  %v838_v63 = vpack.c.bf16 %v550_v56, %v541_v55  ;;  %v549_v0 = vld [vmem:[#allocation5 + $0x8c8] sm:$0xff] }
  0xb2   : > { %v557_v1 = vld [vmem:[#allocation5 + $0x908] sm:$0xff]  ;;  %v566_v2 = vld [vmem:[#allocation5 + $0x950] sm:$0xff]  ;;  %v559_v3 = vld [vmem:[#allocation5 + $0x918] sm:$0xff]  ;;  %v835_v5 = vpack.c.bf16 %v547_v61, %v538_v60 }
  0xb3   : > { %937 = vmatpush1.bf16.msra.mxu0 %v790_v6  ;;  %1023 = vmatpush1.bf16.msra.mxu1 %v792_v8  ;;  %v568_v4 = vld [vmem:[#allocation5 + $0x960] sm:$0xff]  ;;  %v837_v8 = vpack.c.bf16 %v549_v0, %v540_v62  ;;  %v565_v11 = vld [vmem:[#allocation5 + $0x948] sm:$0xff]  ;;  %v558_v12 = vld [vmem:[#allocation5 + $0x910] sm:$0xff] }
  0xb4   : > { %938 = vmatprep.subr.bf16.mxu0 %v800_v9  ;;  %1024 = vmatprep.subr.bf16.mxu1 %v802_v13  ;;  %v259_v6 = vld [vmem:[%s3488_s5] sm:$0xff]  ;;  %v845_v9 = vpack.c.bf16 %v566_v2, %v557_v1  ;;  %v847_v13 = vpack.c.bf16 %v568_v4, %v559_v3  ;;  %v567_v14 = vld [vmem:[#allocation5 + $0x958] sm:$0xff]  ;;  %v577_v18 = vld [vmem:[#allocation5 + $0x9a8] sm:$0xff] }
  0xb5   : > { %v556_v10 = vld [vmem:[#allocation5 + $0x900] sm:$0xff]  ;;  %v575_v15 = vld [vmem:[#allocation5 + $0x998] sm:$0xff]  ;;  %v3510_v17 = vpack.c.bf16 %v262_v7, %v259_v6  ;;  %v586_v19 = vld [vmem:[#allocation5 + $0x9f0] sm:$0xff] }
  0xb6   : > { %v584_v16 = vld [vmem:[#allocation5 + $0x9e0] sm:$0xff]  ;;  %v574_v24 = vld [vmem:[#allocation5 + $0x990] sm:$0xff]  ;;  %v583_v25 = vld [vmem:[#allocation5 + $0x9d8] sm:$0xff] }
  0xb7   : > { %939 = vmatpush1.bf16.msra.mxu0 %v799_v20  ;;  %1025 = vmatpush1.bf16.msra.mxu1 %v801_v22  ;;  %v844_v20 = vpack.c.bf16 %v565_v11, %v556_v10  ;;  %v846_v22 = vpack.c.bf16 %v567_v14, %v558_v12  ;;  %v576_v26 = vld [vmem:[#allocation5 + $0x9a0] sm:$0xff]  ;;  %v585_v28 = vld [vmem:[#allocation5 + $0x9e8] sm:$0xff]  ;;  %v602_v30 = vld [vmem:[#allocation5 + $0xa70] sm:$0xff] }
  0xb8   : > { %940 = vmatprep.subr.bf16.mxu0 %v809_v23  ;;  %1026 = vmatprep.subr.bf16.mxu1 %v811_v27  ;;  %v854_v23 = vpack.c.bf16 %v584_v16, %v575_v15  ;;  %v856_v27 = vpack.c.bf16 %v586_v19, %v577_v18  ;;  %v593_v29 = vld [vmem:[#allocation5 + $0xa28] sm:$0xff]  ;;  %v595_v31 = vld [vmem:[#allocation5 + $0xa38] sm:$0xff]  ;;  %v604_v32 = vld [vmem:[#allocation5 + $0xa80] sm:$0xff] }
  0xb9   : > { %v592_v36 = vld [vmem:[#allocation5 + $0xa20] sm:$0xff]  ;;  %v601_v37 = vld [vmem:[#allocation5 + $0xa68] sm:$0xff]  ;;  %v594_v38 = vld [vmem:[#allocation5 + $0xa30] sm:$0xff] }
  0xba   : > { %v603_v40 = vld [vmem:[#allocation5 + $0xa78] sm:$0xff]  ;;  %v620_v42 = vld [vmem:[#allocation5 + $0xb00] sm:$0xff]  ;;  %v613_v44 = vld [vmem:[#allocation5 + $0xac8] sm:$0xff] }
  0xbb   : > { %941 = vmatpush1.bf16.msra.mxu0 %v808_v33  ;;  %1027 = vmatpush1.bf16.msra.mxu1 %v810_v34  ;;  %v853_v33 = vpack.c.bf16 %v583_v25, %v574_v24  ;;  %v855_v34 = vpack.c.bf16 %v585_v28, %v576_v26  ;;  %v611_v41 = vld [vmem:[#allocation5 + $0xab8] sm:$0xff]  ;;  %v610_v49 = vld [vmem:[#allocation5 + $0xab0] sm:$0xff]  ;;  %v621_v53 = vld [vmem:[#allocation5 + $0xb08] sm:$0xff] }
  0xbc   : > { %942 = vmatprep.subr.bf16.mxu0 %v818_v35  ;;  %1028 = vmatprep.subr.bf16.mxu1 %v820_v39  ;;  %v863_v35 = vpack.c.bf16 %v602_v30, %v593_v29  ;;  %v865_v39 = vpack.c.bf16 %v604_v32, %v595_v31  ;;  %v872_v48 = vpack.c.bf16 %v620_v42, %v611_v41  ;;  %v619_v50 = vld [vmem:[#allocation5 + $0xaf8] sm:$0xff]  ;;  %v629_v54 = vld [vmem:[#allocation5 + $0xb48] sm:$0xff]  ;;  %v638_v55 = vld [vmem:[#allocation5 + $0xb90] sm:$0xff] }
  0xbd   : > { %v631_v56 = vld [vmem:[#allocation5 + $0xb58] sm:$0xff]  ;;  %v881_v60 = vpack.c.bf16 %v638_v55, %v629_v54  ;;  %v628_v61 = vld [vmem:[#allocation5 + $0xb40] sm:$0xff]  ;;  %v637_v62 = vld [vmem:[#allocation5 + $0xb88] sm:$0xff] }
  0xbe   : > { %v639_v1 = vld [vmem:[#allocation5 + $0xb98] sm:$0xff]  ;;  %v656_v3 = vld [vmem:[#allocation5 + $0xc20] sm:$0xff]  ;;  %v649_v4 = vld [vmem:[#allocation5 + $0xbe8] sm:$0xff]  ;;  %v880_v6 = vpack.c.bf16 %v637_v62, %v628_v61 }
  0xbf   : > { %943 = vmatpush1.bf16.msra.mxu0 %v817_v45  ;;  %1029 = vmatpush1.bf16.msra.mxu1 %v819_v46  ;;  %v622_v45 = vld [vmem:[#allocation5 + $0xb10] sm:$0xff]  ;;  %v862_v46 = vpack.c.bf16 %v601_v37, %v592_v36  ;;  %v647_v2 = vld [vmem:[#allocation5 + $0xbd8] sm:$0xff]  ;;  %v648_v11 = vld [vmem:[#allocation5 + $0xbe0] sm:$0xff] }
  0xc0   : > { %944 = vmatprep.subr.bf16.mxu0 %v827_v47  ;;  %1030 = vmatprep.subr.bf16.mxu1 %v829_v51  ;;  %v864_v47 = vpack.c.bf16 %v603_v40, %v594_v38  ;;  %v612_v51 = vld [vmem:[#allocation5 + $0xac0] sm:$0xff]  ;;  %v874_v52 = vpack.c.bf16 %v622_v45, %v613_v44  ;;  %v655_v10 = vld [vmem:[#allocation5 + $0xc18] sm:$0xff]  ;;  %v665_v14 = vld [vmem:[#allocation5 + $0xc68] sm:$0xff] }
  0xc1   : > { %v674_v15 = vld [vmem:[#allocation5 + $0xcb0] sm:$0xff]  ;;  %v667_v16 = vld [vmem:[#allocation5 + $0xc78] sm:$0xff]  ;;  %v676_v18 = vld [vmem:[#allocation5 + $0xcc0] sm:$0xff] }
  0xc2   : > { %v673_v24 = vld [vmem:[#allocation5 + $0xca8] sm:$0xff]  ;;  %v666_v25 = vld [vmem:[#allocation5 + $0xc70] sm:$0xff]  ;;  %v901_v26 = vpack.c.bf16 %v676_v18, %v667_v16  ;;  %v683_v28 = vld [vmem:[#allocation5 + $0xcf8] sm:$0xff] }
  0xc3   : > { %945 = vmatpush1.bf16.msra.mxu0 %v826_v57  ;;  %1031 = vmatpush1.bf16.msra.mxu1 %v828_v58  ;;  %v640_v57 = vld [vmem:[#allocation5 + $0xba0] sm:$0xff]  ;;  %v871_v58 = vpack.c.bf16 %v619_v50, %v610_v49  ;;  %v685_v30 = vld [vmem:[#allocation5 + $0xd08] sm:$0xff]  ;;  %v694_v31 = vld [vmem:[#allocation5 + $0xd50] sm:$0xff] }
  0xc4   : > { %946 = vmatprep.subr.bf16.mxu0 %v836_v59  ;;  %1032 = vmatprep.subr.bf16.mxu1 %v838_v63  ;;  %v873_v59 = vpack.c.bf16 %v621_v53, %v612_v51  ;;  %v630_v63 = vld [vmem:[#allocation5 + $0xb50] sm:$0xff]  ;;  %v883_v0 = vpack.c.bf16 %v640_v57, %v631_v56  ;;  %v692_v29 = vld [vmem:[#allocation5 + $0xd40] sm:$0xff]  ;;  %v691_v36 = vld [vmem:[#allocation5 + $0xd38] sm:$0xff]  ;;  %v910_v38 = vpack.c.bf16 %v694_v31, %v685_v30 }
  0xc5   : > { %v882_v7 = vpack.c.bf16 %v639_v1, %v630_v63  ;;  %v684_v37 = vld [vmem:[#allocation5 + $0xd00] sm:$0xff]  ;;  %v273_v40 = vld [vmem:[#allocation5 + $0x28] sm:$0xff]  ;;  %v282_v41 = vld [vmem:[#allocation5 + $0x70] sm:$0xff] }
  0xc6   : > { %v275_v42 = vld [vmem:[#allocation5 + $0x38] sm:$0xff]  ;;  %v284_v44 = vld [vmem:[#allocation5 + $0x80] sm:$0xff]  ;;  %v705_v49 = vpack.c.bf16 %v282_v41, %v273_v40  ;;  %v281_v51 = vld [vmem:[#allocation5 + $0x68] sm:$0xff] }
  0xc7   : > { %947 = vmatpush1.bf16.msra.mxu0 %v835_v5  ;;  %1033 = vmatpush1.bf16.msra.mxu1 %v837_v8  ;;  %v658_v5 = vld [vmem:[#allocation5 + $0xc30] sm:$0xff]  ;;  %v890_v8 = vpack.c.bf16 %v656_v3, %v647_v2  ;;  %v272_v50 = vld [vmem:[#allocation5 + $0x20] sm:$0xff]  ;;  %v707_v54 = vpack.c.bf16 %v284_v44, %v275_v42  ;;  %v283_v56 = vld [vmem:[#allocation5 + $0x78] sm:$0xff] }
  0xc8   : > { %959 = vmatprep.subr.bf16.mxu0 %v845_v9  ;;  %1045 = vmatprep.subr.bf16.mxu1 %v847_v13  ;;  %v646_v9 = vld [vmem:[#allocation5 + $0xbd0] sm:$0xff]  ;;  %v892_v12 = vpack.c.bf16 %v658_v5, %v649_v4  ;;  %v657_v13 = vld [vmem:[#allocation5 + $0xc28] sm:$0xff]  ;;  %v300_v53 = vld [vmem:[#allocation5 + $0x100] sm:$0xff] }
  0xc9   : > { %v889_v19 = vpack.c.bf16 %v655_v10, %v646_v9  ;;  %v274_v55 = vld [vmem:[#allocation5 + $0x30] sm:$0xff]  ;;  %v299_v63 = vld [vmem:[#allocation5 + $0xf8] sm:$0xff]  ;;  %v292_v4 = vld [vmem:[#allocation5 + $0xc0] sm:$0xff] }
  0xca   : > { %949 = vmatmul.mubr.bf16.vlgmr.msra.gmra.mrb[0].mxu0 %v3510_v17  ;;  %1035 = vmatmul.mubr.bf16.vlgmr.msra.gmra.mrb[0].mxu1 %v3510_v17  ;;  %v290_v62 = vld [vmem:[#allocation5 + $0xb0] sm:$0xff]  ;;  %v706_v1 = vpack.c.bf16 %v283_v56, %v274_v55  ;;  %v301_v5 = vld [vmem:[#allocation5 + $0x108] sm:$0xff]  ;;  %v308_v10 = vld [vmem:[#allocation5 + $0x140] sm:$0xff] }
  0xcb   : > { %960 = vmatpush1.bf16.msra.mxu0 %v844_v20  ;;  %1046 = vmatpush1.bf16.msra.mxu1 %v846_v22  ;;  %v891_v20 = vpack.c.bf16 %v657_v13, %v648_v11  ;;  %v899_v22 = vpack.c.bf16 %v674_v15, %v665_v14  ;;  %v318_v2 = vld [vmem:[#allocation5 + $0x190] sm:$0xff]  ;;  %v317_v11 = vld [vmem:[#allocation5 + $0x188] sm:$0xff]  ;;  %v715_v13 = vpack.c.bf16 %v301_v5, %v292_v4  ;;  %v336_v14 = vld [vmem:[#allocation5 + $0x220] sm:$0xff] }
  0xcc   : > { %961 = vmatprep.subr.bf16.mxu0 %v854_v23  ;;  %1047 = vmatprep.subr.bf16.mxu1 %v856_v27  ;;  %v664_v23 = vld [vmem:[#allocation5 + $0xc60] sm:$0xff]  ;;  %v675_v27 = vld [vmem:[#allocation5 + $0xcb8] sm:$0xff]  ;;  %v310_v16 = vld [vmem:[#allocation5 + $0x150] sm:$0xff] }
  0xcd   : > { %991 = vmatprep.mubr.bf16.mxu0 %v3254_v43  ;;  %1077 = vmatprep.mubr.bf16.mxu1 %v3254_v43  ;;  %v898_v32 = vpack.c.bf16 %v673_v24, %v664_v23  ;;  %v319_v18 = vld [vmem:[#allocation5 + $0x198] sm:$0xff]  ;;  %v326_v24 = vld [vmem:[#allocation5 + $0x1d0] sm:$0xff]  ;;  %v328_v30 = vld [vmem:[#allocation5 + $0x1e0] sm:$0xff] }
  0xce   : > { %v337_v31 = vld [vmem:[#allocation5 + $0x228] sm:$0xff]  ;;  %v372_v40 = vld [vmem:[#allocation5 + $0x340] sm:$0xff]  ;;  %v346_v42 = vld [vmem:[#allocation5 + $0x270] sm:$0xff] }
  0xcf   : > { %962 = vmatpush1.bf16.msra.mxu0 %v853_v33  ;;  %1048 = vmatpush1.bf16.msra.mxu1 %v855_v34  ;;  %v900_v33 = vpack.c.bf16 %v675_v27, %v666_v25  ;;  %v908_v34 = vpack.c.bf16 %v692_v29, %v683_v28  ;;  %v335_v25 = vld [vmem:[#allocation5 + $0x218] sm:$0xff]  ;;  %v724_v27 = vpack.c.bf16 %v319_v18, %v310_v16  ;;  %v354_v28 = vld [vmem:[#allocation5 + $0x2b0] sm:$0xff]  ;;  %v364_v55 = vld [vmem:[#allocation5 + $0x300] sm:$0xff] }
  0xd0   : > { %963 = vmatprep.subr.bf16.mxu0 %v863_v35  ;;  %1049 = vmatprep.subr.bf16.mxu1 %v865_v39  ;;  %v682_v35 = vld [vmem:[#allocation5 + $0xcf0] sm:$0xff]  ;;  %v693_v39 = vld [vmem:[#allocation5 + $0xd48] sm:$0xff]  ;;  %v355_v44 = vld [vmem:[#allocation5 + $0x2b8] sm:$0xff] }
  0xd1   : > { %v907_v45 = vpack.c.bf16 %v691_v36, %v682_v35  ;;  %v344_v36 = vld [vmem:[#allocation5 + $0x260] sm:$0xff]  ;;  %v373_v56 = vld [vmem:[#allocation5 + $0x348] sm:$0xff]  ;;  %v382_v4 = vld [vmem:[#allocation5 + $0x390] sm:$0xff] }
  0xd2   : > { %v391_v5 = vld [vmem:[#allocation5 + $0x3d8] sm:$0xff]  ;;  %v400_v16 = vld [vmem:[#allocation5 + $0x420] sm:$0xff]  ;;  %v409_v18 = vld [vmem:[#allocation5 + $0x468] sm:$0xff] }
  0xd3   : > { %964 = vmatpush1.bf16.msra.mxu0 %v862_v46  ;;  %1050 = vmatpush1.bf16.msra.mxu1 %v864_v47  ;;  %v261_v46 = vld [vmem:[%s3488_s5 + $0x10] sm:$0xff]  ;;  %v264_v47 = vld [vmem:[%s3488_s5 + $0x28] sm:$0xff] }
  0xd4   : > { %965 = vmatprep.subr.bf16.mxu0 %v872_v48  ;;  %1051 = vmatprep.subr.bf16.mxu1 %v874_v52  ;;  %v909_v48 = vpack.c.bf16 %v693_v39, %v684_v37  ;;  %v291_v52 = vld [vmem:[#allocation5 + $0xb8] sm:$0xff]  ;;  %v3518_v57 = vpack.c.bf16 %v264_v47, %v261_v46  ;;  %v353_v37 = vld [vmem:[#allocation5 + $0x2a8] sm:$0xff]  ;;  %v733_v39 = vpack.c.bf16 %v337_v31, %v328_v30  ;;  %v374_v46 = vld [vmem:[#allocation5 + $0x350] sm:$0xff] }
  0xd5   : > { %v714_v61 = vpack.c.bf16 %v300_v53, %v291_v52  ;;  %v740_v47 = vpack.c.bf16 %v353_v37, %v344_v36  ;;  %v742_v52 = vpack.c.bf16 %v355_v44, %v346_v42  ;;  %v390_v53 = vld [vmem:[#allocation5 + $0x3d0] sm:$0xff]  ;;  %v427_v31 = vld [vmem:[#allocation5 + $0x4f8] sm:$0xff]  ;;  %v436_v42 = vld [vmem:[#allocation5 + $0x540] sm:$0xff] }
  0xd6   : > { %v418_v30 = vld [vmem:[#allocation5 + $0x4b0] sm:$0xff]  ;;  %v443_v37 = vld [vmem:[#allocation5 + $0x578] sm:$0xff]  ;;  %v445_v44 = vld [vmem:[#allocation5 + $0x588] sm:$0xff] }
  0xd7   : > { %966 = vmatpush1.bf16.msra.mxu0 %v871_v58  ;;  %1052 = vmatpush1.bf16.msra.mxu1 %v873_v59  ;;  %v293_v58 = vld [vmem:[#allocation5 + $0xc8] sm:$0xff]  ;;  %v302_v59 = vld [vmem:[#allocation5 + $0x110] sm:$0xff] }
  0xd8   : > { %967 = vmatprep.subr.bf16.mxu0 %v881_v60  ;;  %1053 = vmatprep.subr.bf16.mxu1 %v883_v0  ;;  %v704_v60 = vpack.c.bf16 %v281_v51, %v272_v50  ;;  %v309_v0 = vld [vmem:[#allocation5 + $0x148] sm:$0xff]  ;;  %v716_v3 = vpack.c.bf16 %v302_v59, %v293_v58  ;;  %v371_v50 = vld [vmem:[#allocation5 + $0x338] sm:$0xff]  ;;  %v392_v59 = vld [vmem:[#allocation5 + $0x3e0] sm:$0xff] }
  0xd9   : > { %v723_v9 = vpack.c.bf16 %v318_v2, %v309_v0  ;;  %v381_v51 = vld [vmem:[#allocation5 + $0x388] sm:$0xff]  ;;  %v383_v58 = vld [vmem:[#allocation5 + $0x398] sm:$0xff]  ;;  %v408_v2 = vld [vmem:[#allocation5 + $0x460] sm:$0xff] }
  0xda   : > { %v399_v0 = vld [vmem:[#allocation5 + $0x418] sm:$0xff]  ;;  %v434_v36 = vld [vmem:[#allocation5 + $0x530] sm:$0xff] }
  0xdb   : > { %968 = vmatpush1.bf16.msra.mxu0 %v880_v6  ;;  %1054 = vmatpush1.bf16.msra.mxu1 %v882_v7  ;;  %v311_v6 = vld [vmem:[#allocation5 + $0x158] sm:$0xff]  ;;  %v320_v7 = vld [vmem:[#allocation5 + $0x1a0] sm:$0xff] }
  0xdc   : > { %969 = vmatprep.subr.bf16.mxu0 %v890_v8  ;;  %1055 = vmatprep.subr.bf16.mxu1 %v892_v12  ;;  %v713_v8 = vpack.c.bf16 %v299_v63, %v290_v62  ;;  %v327_v12 = vld [vmem:[#allocation5 + $0x1d8] sm:$0xff]  ;;  %v725_v15 = vpack.c.bf16 %v320_v7, %v311_v6  ;;  %v380_v62 = vld [vmem:[#allocation5 + $0x380] sm:$0xff]  ;;  %v389_v63 = vld [vmem:[#allocation5 + $0x3c8] sm:$0xff] }
  0xdd   : > { %v732_v23 = vpack.c.bf16 %v336_v14, %v327_v12  ;;  %v401_v6 = vld [vmem:[#allocation5 + $0x428] sm:$0xff]  ;;  %v410_v7 = vld [vmem:[#allocation5 + $0x470] sm:$0xff] }
  0xde   : > { %v417_v12 = vld [vmem:[#allocation5 + $0x4a8] sm:$0xff]  ;;  %v426_v14 = vld [vmem:[#allocation5 + $0x4f0] sm:$0xff] }
  0xdf   : > { %970 = vmatpush1.bf16.msra.mxu0 %v889_v19  ;;  %1056 = vmatpush1.bf16.msra.mxu1 %v891_v20  ;;  %v329_v19 = vld [vmem:[#allocation5 + $0x1e8] sm:$0xff]  ;;  %v338_v20 = vld [vmem:[#allocation5 + $0x230] sm:$0xff] }
  0xe0   : > { %971 = vmatprep.subr.bf16.mxu0 %v899_v22  ;;  %1057 = vmatprep.subr.bf16.mxu1 %v901_v26  ;;  %v722_v22 = vpack.c.bf16 %v317_v11, %v308_v10  ;;  %v345_v26 = vld [vmem:[#allocation5 + $0x268] sm:$0xff]  ;;  %v734_v29 = vpack.c.bf16 %v338_v20, %v329_v19  ;;  %v398_v10 = vld [vmem:[#allocation5 + $0x410] sm:$0xff]  ;;  %v407_v11 = vld [vmem:[#allocation5 + $0x458] sm:$0xff] }
  0xe1   : > { %v741_v35 = vpack.c.bf16 %v354_v28, %v345_v26  ;;  %v419_v19 = vld [vmem:[#allocation5 + $0x4b8] sm:$0xff]  ;;  %v428_v20 = vld [vmem:[#allocation5 + $0x500] sm:$0xff] }
  0xe2   : > { %v435_v26 = vld [vmem:[#allocation5 + $0x538] sm:$0xff]  ;;  %v444_v28 = vld [vmem:[#allocation5 + $0x580] sm:$0xff] }
  0xe3   : > { %972 = vmatpush1.bf16.msra.mxu0 %v898_v32  ;;  %1058 = vmatpush1.bf16.msra.mxu1 %v900_v33  ;;  %v347_v32 = vld [vmem:[#allocation5 + $0x278] sm:$0xff]  ;;  %v356_v33 = vld [vmem:[#allocation5 + $0x2c0] sm:$0xff] }
  0xe4   : > { %973 = vmatprep.subr.bf16.mxu0 %v908_v34  ;;  %1059 = vmatprep.subr.bf16.mxu1 %v910_v38  ;;  %v731_v34 = vpack.c.bf16 %v335_v25, %v326_v24  ;;  %v363_v38 = vld [vmem:[#allocation5 + $0x2f8] sm:$0xff]  ;;  %v743_v41 = vpack.c.bf16 %v356_v33, %v347_v32  ;;  %v416_v24 = vld [vmem:[#allocation5 + $0x4a0] sm:$0xff]  ;;  %v425_v25 = vld [vmem:[#allocation5 + $0x4e8] sm:$0xff] }
  0xe5   : > { %v437_v32 = vld [vmem:[#allocation5 + $0x548] sm:$0xff]  ;;  %v446_v33 = vld [vmem:[#allocation5 + $0x590] sm:$0xff] }
  0xe7   : > { %974 = vmatpush1.bf16.msra.mxu0 %v907_v45  ;;  %1060 = vmatpush1.bf16.msra.mxu1 %v909_v48  ;;  %v365_v45 = vld [vmem:[#allocation5 + $0x308] sm:$0xff]  ;;  %v750_v48 = vpack.c.bf16 %v372_v40, %v363_v38  ;;  %v462_v40 = vld [vmem:[#allocation5 + $0x610] sm:$0xff] }
  0xe8   : > { %1088 = vmatprep.subr.bf16.mxu0 %v705_v49  ;;  %1174 = vmatprep.subr.bf16.mxu1 %v707_v54  ;;  %v362_v49 = vld [vmem:[#allocation5 + $0x2f0] sm:$0xff]  ;;  %v752_v54 = vpack.c.bf16 %v374_v46, %v365_v45  ;;  %v453_v38 = vld [vmem:[#allocation5 + $0x5c8] sm:$0xff]  ;;  %v455_v45 = vld [vmem:[#allocation5 + $0x5d8] sm:$0xff] }
  0xe9   : > { %v464_v46 = vld [vmem:[#allocation5 + $0x620] sm:$0xff] }
  0xea   : > { %992 = vmatmul.mubr.bf16.vlgmr.msra.gmra.mrb[0].mxu0 %v3518_v57  ;;  %1078 = vmatmul.mubr.bf16.vlgmr.msra.gmra.mrb[0].mxu1 %v3518_v57 }
  0xeb   : > { %1089 = vmatpush1.bf16.msra.mxu0 %v704_v60  ;;  %1175 = vmatpush1.bf16.msra.mxu1 %v706_v1  ;;  %v749_v60 = vpack.c.bf16 %v371_v50, %v362_v49  ;;  %v751_v1 = vpack.c.bf16 %v373_v56, %v364_v55  ;;  %v452_v49 = vld [vmem:[#allocation5 + $0x5c0] sm:$0xff]  ;;  %v461_v50 = vld [vmem:[#allocation5 + $0x608] sm:$0xff]  ;;  %v454_v55 = vld [vmem:[#allocation5 + $0x5d0] sm:$0xff] }
  0xec   : > { %1090 = vmatprep.subr.bf16.mxu0 %v714_v61  ;;  %1176 = vmatprep.subr.bf16.mxu1 %v716_v3  ;;  %v759_v61 = vpack.c.bf16 %v390_v53, %v381_v51  ;;  %v761_v3 = vpack.c.bf16 %v392_v59, %v383_v58  ;;  %v471_v51 = vld [vmem:[#allocation5 + $0x658] sm:$0xff]  ;;  %v480_v53 = vld [vmem:[#allocation5 + $0x6a0] sm:$0xff]  ;;  %v473_v58 = vld [vmem:[#allocation5 + $0x668] sm:$0xff] }
  0xed   : > { %1120 = vmatprep.mubr.bf16.mxu0 %v3504_v21  ;;  %1206 = vmatprep.mubr.bf16.mxu1 %v3504_v21  ;;  %v463_v56 = vld [vmem:[#allocation5 + $0x618] sm:$0xff]  ;;  %v482_v59 = vld [vmem:[#allocation5 + $0x6b0] sm:$0xff] }
  0xef   : > { %1091 = vmatpush1.bf16.msra.mxu0 %v713_v8  ;;  %1177 = vmatpush1.bf16.msra.mxu1 %v715_v13  ;;  %v758_v8 = vpack.c.bf16 %v389_v63, %v380_v62  ;;  %v760_v13 = vpack.c.bf16 %v391_v5, %v382_v4  ;;  %v470_v62 = vld [vmem:[#allocation5 + $0x650] sm:$0xff]  ;;  %v479_v63 = vld [vmem:[#allocation5 + $0x698] sm:$0xff]  ;;  %v472_v4 = vld [vmem:[#allocation5 + $0x660] sm:$0xff] }
  0xf0   : > { %1092 = vmatprep.subr.bf16.mxu0 %v723_v9  ;;  %1178 = vmatprep.subr.bf16.mxu1 %v725_v15  ;;  %v768_v9 = vpack.c.bf16 %v408_v2, %v399_v0  ;;  %v770_v15 = vpack.c.bf16 %v410_v7, %v401_v6  ;;  %v489_v0 = vld [vmem:[#allocation5 + $0x6e8] sm:$0xff]  ;;  %v498_v2 = vld [vmem:[#allocation5 + $0x730] sm:$0xff]  ;;  %v491_v6 = vld [vmem:[#allocation5 + $0x6f8] sm:$0xff] }
  0xf1   : > { %v481_v5 = vld [vmem:[#allocation5 + $0x6a8] sm:$0xff]  ;;  %v500_v7 = vld [vmem:[#allocation5 + $0x740] sm:$0xff] }
  0xf3   : > { %1093 = vmatpush1.bf16.msra.mxu0 %v722_v22  ;;  %1179 = vmatpush1.bf16.msra.mxu1 %v724_v27  ;;  %v767_v22 = vpack.c.bf16 %v407_v11, %v398_v10  ;;  %v769_v27 = vpack.c.bf16 %v409_v18, %v400_v16  ;;  %v488_v10 = vld [vmem:[#allocation5 + $0x6e0] sm:$0xff]  ;;  %v497_v11 = vld [vmem:[#allocation5 + $0x728] sm:$0xff]  ;;  %v490_v16 = vld [vmem:[#allocation5 + $0x6f0] sm:$0xff] }
  0xf4   : > { %1094 = vmatprep.subr.bf16.mxu0 %v732_v23  ;;  %1180 = vmatprep.subr.bf16.mxu1 %v734_v29  ;;  %v777_v23 = vpack.c.bf16 %v426_v14, %v417_v12  ;;  %v779_v29 = vpack.c.bf16 %v428_v20, %v419_v19  ;;  %v507_v12 = vld [vmem:[#allocation5 + $0x778] sm:$0xff]  ;;  %v516_v14 = vld [vmem:[#allocation5 + $0x7c0] sm:$0xff]  ;;  %v509_v19 = vld [vmem:[#allocation5 + $0x788] sm:$0xff] }
  0xf5   : > { %v499_v18 = vld [vmem:[#allocation5 + $0x738] sm:$0xff]  ;;  %v518_v20 = vld [vmem:[#allocation5 + $0x7d0] sm:$0xff] }
  0xf7   : > { %1095 = vmatpush1.bf16.msra.mxu0 %v731_v34  ;;  %1181 = vmatpush1.bf16.msra.mxu1 %v733_v39  ;;  %v776_v34 = vpack.c.bf16 %v425_v25, %v416_v24  ;;  %v778_v39 = vpack.c.bf16 %v427_v31, %v418_v30  ;;  %v506_v24 = vld [vmem:[#allocation5 + $0x770] sm:$0xff]  ;;  %v515_v25 = vld [vmem:[#allocation5 + $0x7b8] sm:$0xff]  ;;  %v508_v30 = vld [vmem:[#allocation5 + $0x780] sm:$0xff] }
  0xf8   : > { %1096 = vmatprep.subr.bf16.mxu0 %v741_v35  ;;  %1182 = vmatprep.subr.bf16.mxu1 %v743_v41  ;;  %v786_v35 = vpack.c.bf16 %v444_v28, %v435_v26  ;;  %v788_v41 = vpack.c.bf16 %v446_v33, %v437_v32  ;;  %v525_v26 = vld [vmem:[#allocation5 + $0x808] sm:$0xff]  ;;  %v534_v28 = vld [vmem:[#allocation5 + $0x850] sm:$0xff]  ;;  %v527_v32 = vld [vmem:[#allocation5 + $0x818] sm:$0xff] }
  0xf9   : > { %v517_v31 = vld [vmem:[#allocation5 + $0x7c8] sm:$0xff]  ;;  %v536_v33 = vld [vmem:[#allocation5 + $0x860] sm:$0xff] }
  0xfb   : > { %1097 = vmatpush1.bf16.msra.mxu0 %v740_v47  ;;  %1183 = vmatpush1.bf16.msra.mxu1 %v742_v52  ;;  %v785_v47 = vpack.c.bf16 %v443_v37, %v434_v36  ;;  %v787_v52 = vpack.c.bf16 %v445_v44, %v436_v42  ;;  %v524_v36 = vld [vmem:[#allocation5 + $0x800] sm:$0xff]  ;;  %v533_v37 = vld [vmem:[#allocation5 + $0x848] sm:$0xff]  ;;  %v526_v42 = vld [vmem:[#allocation5 + $0x810] sm:$0xff] }
  0xfc   : > { %1098 = vmatprep.subr.bf16.mxu0 %v750_v48  ;;  %1184 = vmatprep.subr.bf16.mxu1 %v752_v54  ;;  %v795_v48 = vpack.c.bf16 %v462_v40, %v453_v38  ;;  %v797_v54 = vpack.c.bf16 %v464_v46, %v455_v45  ;;  %v543_v38 = vld [vmem:[#allocation5 + $0x898] sm:$0xff]  ;;  %v552_v40 = vld [vmem:[#allocation5 + $0x8e0] sm:$0xff]  ;;  %v545_v45 = vld [vmem:[#allocation5 + $0x8a8] sm:$0xff] }
  0xfd   : > { %v535_v44 = vld [vmem:[#allocation5 + $0x858] sm:$0xff]  ;;  %v554_v46 = vld [vmem:[#allocation5 + $0x8f0] sm:$0xff] }
  0xff   : > { %1099 = vmatpush1.bf16.msra.mxu0 %v749_v60  ;;  %1185 = vmatpush1.bf16.msra.mxu1 %v751_v1  ;;  %v794_v60 = vpack.c.bf16 %v461_v50, %v452_v49  ;;  %v796_v1 = vpack.c.bf16 %v463_v56, %v454_v55  ;;  %v542_v49 = vld [vmem:[#allocation5 + $0x890] sm:$0xff]  ;;  %v551_v50 = vld [vmem:[#allocation5 + $0x8d8] sm:$0xff]  ;;  %v544_v55 = vld [vmem:[#allocation5 + $0x8a0] sm:$0xff] }
 0x100   : > { %1100 = vmatprep.subr.bf16.mxu0 %v759_v61  ;;  %1186 = vmatprep.subr.bf16.mxu1 %v761_v3  ;;  %v804_v61 = vpack.c.bf16 %v480_v53, %v471_v51  ;;  %v806_v3 = vpack.c.bf16 %v482_v59, %v473_v58  ;;  %v561_v51 = vld [vmem:[#allocation5 + $0x928] sm:$0xff]  ;;  %v570_v53 = vld [vmem:[#allocation5 + $0x970] sm:$0xff]  ;;  %v563_v58 = vld [vmem:[#allocation5 + $0x938] sm:$0xff] }
 0x101   : > { %v553_v56 = vld [vmem:[#allocation5 + $0x8e8] sm:$0xff]  ;;  %v572_v59 = vld [vmem:[#allocation5 + $0x980] sm:$0xff] }
 0x103   : > { %1101 = vmatpush1.bf16.msra.mxu0 %v758_v8  ;;  %1187 = vmatpush1.bf16.msra.mxu1 %v760_v13  ;;  %v803_v8 = vpack.c.bf16 %v479_v63, %v470_v62  ;;  %v805_v13 = vpack.c.bf16 %v481_v5, %v472_v4  ;;  %v560_v62 = vld [vmem:[#allocation5 + $0x920] sm:$0xff]  ;;  %v569_v63 = vld [vmem:[#allocation5 + $0x968] sm:$0xff]  ;;  %v562_v4 = vld [vmem:[#allocation5 + $0x930] sm:$0xff] }
 0x104   : > { %1102 = vmatprep.subr.bf16.mxu0 %v768_v9  ;;  %1188 = vmatprep.subr.bf16.mxu1 %v770_v15  ;;  %v813_v9 = vpack.c.bf16 %v498_v2, %v489_v0  ;;  %v815_v15 = vpack.c.bf16 %v500_v7, %v491_v6  ;;  %v841_v0 = vpack.c.bf16 %v553_v56, %v544_v55  ;;  %v588_v2 = vld [vmem:[#allocation5 + $0xa00] sm:$0xff]  ;;  %v571_v5 = vld [vmem:[#allocation5 + $0x978] sm:$0xff]  ;;  %v581_v7 = vld [vmem:[#allocation5 + $0x9c8] sm:$0xff] }
 0x105   : > { %v848_v6 = vpack.c.bf16 %v569_v63, %v560_v62  ;;  %v634_v55 = vld [vmem:[#allocation5 + $0xb70] sm:$0xff]  ;;  %v643_v56 = vld [vmem:[#allocation5 + $0xbb8] sm:$0xff] }
 0x106   : > { %v650_v62 = vld [vmem:[#allocation5 + $0xbf0] sm:$0xff]  ;;  %v659_v63 = vld [vmem:[#allocation5 + $0xc38] sm:$0xff] }
 0x107   : > { %1103 = vmatpush1.bf16.msra.mxu0 %v767_v22  ;;  %1189 = vmatpush1.bf16.msra.mxu1 %v769_v27  ;;  %v812_v22 = vpack.c.bf16 %v497_v11, %v488_v10  ;;  %v814_v27 = vpack.c.bf16 %v499_v18, %v490_v16  ;;  %v578_v10 = vld [vmem:[#allocation5 + $0x9b0] sm:$0xff]  ;;  %v587_v11 = vld [vmem:[#allocation5 + $0x9f8] sm:$0xff]  ;;  %v580_v16 = vld [vmem:[#allocation5 + $0x9c0] sm:$0xff] }
 0x108   : > { %1104 = vmatprep.subr.bf16.mxu0 %v777_v23  ;;  %1190 = vmatprep.subr.bf16.mxu1 %v779_v29  ;;  %v822_v23 = vpack.c.bf16 %v516_v14, %v507_v12  ;;  %v824_v29 = vpack.c.bf16 %v518_v20, %v509_v19  ;;  %v597_v12 = vld [vmem:[#allocation5 + $0xa48] sm:$0xff]  ;;  %v850_v14 = vpack.c.bf16 %v571_v5, %v562_v4  ;;  %v599_v20 = vld [vmem:[#allocation5 + $0xa58] sm:$0xff]  ;;  %v652_v4 = vld [vmem:[#allocation5 + $0xc00] sm:$0xff] }
 0x109   : > { %v589_v18 = vld [vmem:[#allocation5 + $0xa08] sm:$0xff]  ;;  %v857_v19 = vpack.c.bf16 %v587_v11, %v578_v10  ;;  %v668_v10 = vld [vmem:[#allocation5 + $0xc80] sm:$0xff] }
 0x10a   : > { %v661_v5 = vld [vmem:[#allocation5 + $0xc48] sm:$0xff] }
 0x10b   : > { %1105 = vmatpush1.bf16.msra.mxu0 %v776_v34  ;;  %1191 = vmatpush1.bf16.msra.mxu1 %v778_v39  ;;  %v821_v34 = vpack.c.bf16 %v515_v25, %v506_v24  ;;  %v823_v39 = vpack.c.bf16 %v517_v31, %v508_v30  ;;  %v596_v24 = vld [vmem:[#allocation5 + $0xa40] sm:$0xff]  ;;  %v605_v25 = vld [vmem:[#allocation5 + $0xa88] sm:$0xff]  ;;  %v598_v30 = vld [vmem:[#allocation5 + $0xa50] sm:$0xff] }
 0x10c   : > { %1106 = vmatprep.subr.bf16.mxu0 %v786_v35  ;;  %1192 = vmatprep.subr.bf16.mxu1 %v788_v41  ;;  %v831_v35 = vpack.c.bf16 %v534_v28, %v525_v26  ;;  %v833_v41 = vpack.c.bf16 %v536_v33, %v527_v32  ;;  %v615_v26 = vld [vmem:[#allocation5 + $0xad8] sm:$0xff]  ;;  %v859_v28 = vpack.c.bf16 %v589_v18, %v580_v16  ;;  %v617_v33 = vld [vmem:[#allocation5 + $0xae8] sm:$0xff]  ;;  %v670_v16 = vld [vmem:[#allocation5 + $0xc90] sm:$0xff] }
 0x10d   : > { %v607_v31 = vld [vmem:[#allocation5 + $0xa98] sm:$0xff]  ;;  %v866_v32 = vpack.c.bf16 %v605_v25, %v596_v24  ;;  %v677_v11 = vld [vmem:[#allocation5 + $0xcc8] sm:$0xff]  ;;  %v686_v24 = vld [vmem:[#allocation5 + $0xd10] sm:$0xff] }
 0x10e   : > { %v679_v18 = vld [vmem:[#allocation5 + $0xcd8] sm:$0xff] }
 0x10f   : > { %1107 = vmatpush1.bf16.msra.mxu0 %v785_v47  ;;  %1193 = vmatpush1.bf16.msra.mxu1 %v787_v52  ;;  %v830_v47 = vpack.c.bf16 %v533_v37, %v524_v36  ;;  %v832_v52 = vpack.c.bf16 %v535_v44, %v526_v42  ;;  %v614_v36 = vld [vmem:[#allocation5 + $0xad0] sm:$0xff]  ;;  %v623_v37 = vld [vmem:[#allocation5 + $0xb18] sm:$0xff]  ;;  %v616_v42 = vld [vmem:[#allocation5 + $0xae0] sm:$0xff] }
 0x110   : > { %1108 = vmatprep.subr.bf16.mxu0 %v795_v48  ;;  %1194 = vmatprep.subr.bf16.mxu1 %v797_v54  ;;  %v840_v48 = vpack.c.bf16 %v552_v40, %v543_v38  ;;  %v842_v54 = vpack.c.bf16 %v554_v46, %v545_v45  ;;  %v633_v38 = vld [vmem:[#allocation5 + $0xb68] sm:$0xff]  ;;  %v868_v40 = vpack.c.bf16 %v607_v31, %v598_v30  ;;  %v635_v46 = vld [vmem:[#allocation5 + $0xb78] sm:$0xff]  ;;  %v688_v30 = vld [vmem:[#allocation5 + $0xd20] sm:$0xff] }
 0x111   : > { %v625_v44 = vld [vmem:[#allocation5 + $0xb28] sm:$0xff]  ;;  %v875_v45 = vpack.c.bf16 %v623_v37, %v614_v36  ;;  %v695_v25 = vld [vmem:[#allocation5 + $0xd58] sm:$0xff]  ;;  %v438_v37 = vld [vmem:[#allocation5 + $0x550] sm:$0xff] }
 0x112   : > { %v697_v31 = vld [vmem:[#allocation5 + $0xd68] sm:$0xff] }
 0x113   : > { %1109 = vmatpush1.bf16.msra.mxu0 %v794_v60  ;;  %1195 = vmatpush1.bf16.msra.mxu1 %v796_v1  ;;  %v839_v60 = vpack.c.bf16 %v551_v50, %v542_v49  ;;  %v579_v1 = vld [vmem:[#allocation5 + $0x9b8] sm:$0xff]  ;;  %v632_v49 = vld [vmem:[#allocation5 + $0xb60] sm:$0xff]  ;;  %v641_v50 = vld [vmem:[#allocation5 + $0xba8] sm:$0xff]  ;;  %v913_v36 = vpack.c.bf16 %v697_v31, %v688_v30 }
 0x114   : > { %1110 = vmatprep.subr.bf16.mxu0 %v804_v61  ;;  %1196 = vmatprep.subr.bf16.mxu1 %v806_v3  ;;  %v849_v61 = vpack.c.bf16 %v570_v53, %v561_v51  ;;  %v851_v3 = vpack.c.bf16 %v572_v59, %v563_v58  ;;  %v651_v51 = vld [vmem:[#allocation5 + $0xbf8] sm:$0xff]  ;;  %v877_v53 = vpack.c.bf16 %v625_v44, %v616_v42  ;;  %v653_v59 = vld [vmem:[#allocation5 + $0xc08] sm:$0xff]  ;;  %v294_v44 = vld [vmem:[#allocation5 + $0xd0] sm:$0xff] }
 0x115   : > { %v884_v58 = vpack.c.bf16 %v641_v50, %v632_v49  ;;  %v3255_v49 = vmov 0.0   ;;  %v582_v50 = vld [vmem:[#allocation5 + $0x9d0] sm:$0xff] }
 0x116   : > { %v546_v31 = vld [vmem:[#allocation5 + $0x8b0] sm:$0xff] }
 0x117   : > { %1111 = vmatpush1.bf16.msra.mxu0 %v803_v8  ;;  %1197 = vmatpush1.bf16.msra.mxu1 %v805_v13  ;;  %v590_v8 = vld [vmem:[#allocation5 + $0xa10] sm:$0xff] }
 0x118   : > { %1112 = vmatprep.subr.bf16.mxu0 %v813_v9  ;;  %1198 = vmatprep.subr.bf16.mxu1 %v815_v15  ;;  %v858_v9 = vpack.c.bf16 %v588_v2, %v579_v1  ;;  %v606_v13 = vld [vmem:[#allocation5 + $0xa90] sm:$0xff]  ;;  %v860_v15 = vpack.c.bf16 %v590_v8, %v581_v7  ;;  %v886_v2 = vpack.c.bf16 %v643_v56, %v634_v55  ;;  %v671_v7 = vld [vmem:[#allocation5 + $0xc98] sm:$0xff]  ;;  %v680_v8 = vld [vmem:[#allocation5 + $0xce0] sm:$0xff] }
 0x119   : > { %v678_v1 = vld [vmem:[#allocation5 + $0xcd0] sm:$0xff]  ;;  %v321_v55 = vld [vmem:[#allocation5 + $0x1a8] sm:$0xff] }
 0x11b   : > { %1113 = vmatpush1.bf16.msra.mxu0 %v812_v22  ;;  %1199 = vmatpush1.bf16.msra.mxu1 %v814_v27  ;;  %v608_v22 = vld [vmem:[#allocation5 + $0xaa0] sm:$0xff] }
 0x11c   : > { %1114 = vmatprep.subr.bf16.mxu0 %v822_v23  ;;  %1200 = vmatprep.subr.bf16.mxu1 %v824_v29  ;;  %v867_v23 = vpack.c.bf16 %v606_v13, %v597_v12  ;;  %v624_v27 = vld [vmem:[#allocation5 + $0xb20] sm:$0xff]  ;;  %v869_v29 = vpack.c.bf16 %v608_v22, %v599_v20  ;;  %v687_v12 = vld [vmem:[#allocation5 + $0xd18] sm:$0xff]  ;;  %v689_v20 = vld [vmem:[#allocation5 + $0xd28] sm:$0xff] }
 0x11d   : > { %v696_v13 = vld [vmem:[#allocation5 + $0xd60] sm:$0xff]  ;;  %v698_v22 = vld [vmem:[#allocation5 + $0xd70] sm:$0xff] }
 0x11f   : > { %1115 = vmatpush1.bf16.msra.mxu0 %v821_v34  ;;  %1201 = vmatpush1.bf16.msra.mxu1 %v823_v39  ;;  %v626_v34 = vld [vmem:[#allocation5 + $0xb30] sm:$0xff] }
 0x120   : > { %1116 = vmatprep.subr.bf16.mxu0 %v831_v35  ;;  %1202 = vmatprep.subr.bf16.mxu1 %v833_v41  ;;  %v876_v35 = vpack.c.bf16 %v624_v27, %v615_v26  ;;  %v642_v39 = vld [vmem:[#allocation5 + $0xbb0] sm:$0xff]  ;;  %v878_v41 = vpack.c.bf16 %v626_v34, %v617_v33  ;;  %v904_v26 = vpack.c.bf16 %v679_v18, %v670_v16  ;;  %v420_v27 = vld [vmem:[#allocation5 + $0x4c0] sm:$0xff] }
 0x121   : > { %v276_v34 = vld [vmem:[#allocation5 + $0x40] sm:$0xff]  ;;  %v366_v18 = vld [vmem:[#allocation5 + $0x310] sm:$0xff] }
 0x123   : > { %1117 = vmatpush1.bf16.msra.mxu0 %v830_v47  ;;  %1203 = vmatpush1.bf16.msra.mxu1 %v832_v52  ;;  %v644_v47 = vld [vmem:[#allocation5 + $0xbc0] sm:$0xff] }
 0x124   : > { %1118 = vmatprep.subr.bf16.mxu0 %v840_v48  ;;  %1204 = vmatprep.subr.bf16.mxu1 %v842_v54  ;;  %v885_v48 = vpack.c.bf16 %v642_v39, %v633_v38  ;;  %v660_v52 = vld [vmem:[#allocation5 + $0xc40] sm:$0xff]  ;;  %v887_v54 = vpack.c.bf16 %v644_v47, %v635_v46  ;;  %v447_v38 = vld [vmem:[#allocation5 + $0x598] sm:$0xff] }
 0x125   : > { %v564_v39 = vld [vmem:[#allocation5 + $0x940] sm:$0xff]  ;;  %v789_v42 = vpack.c.bf16 %v447_v38, %v438_v37  ;;  %v402_v37 = vld [vmem:[#allocation5 + $0x430] sm:$0xff]  ;;  %v411_v38 = vld [vmem:[#allocation5 + $0x478] sm:$0xff] }
 0x126   : > { %v456_v47 = vld [vmem:[#allocation5 + $0x5e0] sm:$0xff] }
 0x127   : > { %1119 = vmatpush1.bf16.msra.mxu0 %v839_v60  ;;  %1205 = vmatpush1.bf16.msra.mxu1 %v841_v0  ;;  %v662_v60 = vld [vmem:[#allocation5 + $0xc50] sm:$0xff]  ;;  %v669_v0 = vld [vmem:[#allocation5 + $0xc88] sm:$0xff] }
 0x128   : > { %1131 = vmatprep.subr.bf16.mxu0 %v849_v61  ;;  %1217 = vmatprep.subr.bf16.mxu1 %v851_v3  ;;  %v894_v61 = vpack.c.bf16 %v660_v52, %v651_v51  ;;  %v896_v3 = vpack.c.bf16 %v662_v60, %v653_v59  ;;  %v591_v51 = vld [vmem:[#allocation5 + $0xa18] sm:$0xff]  ;;  %v600_v60 = vld [vmem:[#allocation5 + $0xa60] sm:$0xff] }
 0x129   : > { %v861_v56 = vpack.c.bf16 %v591_v51, %v582_v50  ;;  %v483_v59 = vld [vmem:[#allocation5 + $0x6b8] sm:$0xff] }
 0x12a   : > { %1121 = vmatmul.mubr.bf16.vlgmr.msra.gmra.mrb[4].mxu0 %v3510_v17  ;;  %1207 = vmatmul.mubr.bf16.vlgmr.msra.gmra.mrb[4].mxu1 %v3510_v17 }
 0x12b   : > { %1132 = vmatpush1.bf16.msra.mxu0 %v848_v6  ;;  %1163 = vmatprep.mubr.bf16.mxu0 %v3254_v43  ;;  %v893_v6 = vpack.c.bf16 %v659_v63, %v650_v62  ;;  %v330_v63 = vld [vmem:[#allocation5 + $0x1f0] sm:$0xff] }
 0x12c   : > { %1133 = vmatprep.subr.bf16.mxu0 %v858_v9  ;;  %1218 = vmatpush1.bf16.msra.mxu1 %v850_v14  ;;  %v903_v9 = vpack.c.bf16 %v678_v1, %v669_v0  ;;  %v895_v14 = vpack.c.bf16 %v661_v5, %v652_v4  ;;  %v339_v0 = vld [vmem:[#allocation5 + $0x238] sm:$0xff]  ;;  %v618_v4 = vld [vmem:[#allocation5 + $0xaf0] sm:$0xff] }
 0x12d   : > { %1249 = vmatprep.mubr.bf16.mxu1 %v3254_v43  ;;  %1219 = vmatprep.subr.bf16.mxu1 %v860_v15  ;;  %v905_v15 = vpack.c.bf16 %v680_v8, %v671_v7  ;;  %v627_v5 = vld [vmem:[#allocation5 + $0xb38] sm:$0xff]  ;;  %v348_v8 = vld [vmem:[#allocation5 + $0x280] sm:$0xff] }
 0x12f   : > { %1134 = vmatpush1.bf16.msra.mxu0 %v857_v19  ;;  %v902_v19 = vpack.c.bf16 %v677_v11, %v668_v10  ;;  %v879_v10 = vpack.c.bf16 %v627_v5, %v618_v4  ;;  %v510_v11 = vld [vmem:[#allocation5 + $0x790] sm:$0xff] }
 0x130   : > { %1135 = vmatprep.subr.bf16.mxu0 %v867_v23  ;;  %1220 = vmatpush1.bf16.msra.mxu1 %v859_v28  ;;  %v912_v23 = vpack.c.bf16 %v696_v13, %v687_v12  ;;  %v429_v28 = vld [vmem:[#allocation5 + $0x508] sm:$0xff]  ;;  %v519_v12 = vld [vmem:[#allocation5 + $0x7d8] sm:$0xff]  ;;  %v636_v13 = vld [vmem:[#allocation5 + $0xb80] sm:$0xff] }
 0x131   : > { %1221 = vmatprep.subr.bf16.mxu1 %v869_v29  ;;  %v914_v29 = vpack.c.bf16 %v698_v22, %v689_v20  ;;  %v780_v33 = vpack.c.bf16 %v429_v28, %v420_v27  ;;  %v825_v16 = vpack.c.bf16 %v519_v12, %v510_v11  ;;  %v528_v22 = vld [vmem:[#allocation5 + $0x820] sm:$0xff] }
 0x132   : > { %v384_v28 = vld [vmem:[#allocation5 + $0x3a0] sm:$0xff] }
 0x133   : > { %1136 = vmatpush1.bf16.msra.mxu0 %v866_v32  ;;  %v911_v32 = vpack.c.bf16 %v695_v25, %v686_v24  ;;  %v654_v24 = vld [vmem:[#allocation5 + $0xc10] sm:$0xff]  ;;  %v663_v25 = vld [vmem:[#allocation5 + $0xc58] sm:$0xff] }
 0x134   : > { %1137 = vmatprep.subr.bf16.mxu0 %v876_v35  ;;  %1222 = vmatpush1.bf16.msra.mxu1 %v868_v40  ;;  %v285_v35 = vld [vmem:[#allocation5 + $0x88] sm:$0xff]  ;;  %v897_v30 = vpack.c.bf16 %v663_v25, %v654_v24 }
 0x135   : > { %1223 = vmatprep.subr.bf16.mxu1 %v878_v41  ;;  %v573_v40 = vld [vmem:[#allocation5 + $0x988] sm:$0xff]  ;;  %v708_v41 = vpack.c.bf16 %v285_v35, %v276_v34 }
 0x136   : > { %v852_v46 = vpack.c.bf16 %v573_v40, %v564_v39  ;;  %v681_v34 = vld [vmem:[#allocation5 + $0xce8] sm:$0xff]  ;;  %v690_v40 = vld [vmem:[#allocation5 + $0xd30] sm:$0xff] }
 0x137   : > { %1138 = vmatpush1.bf16.msra.mxu0 %v875_v45  ;;  %v303_v45 = vld [vmem:[#allocation5 + $0x118] sm:$0xff] }
 0x138   : > { %1139 = vmatprep.subr.bf16.mxu0 %v885_v48  ;;  %1224 = vmatpush1.bf16.msra.mxu1 %v877_v53  ;;  %v465_v48 = vld [vmem:[#allocation5 + $0x628] sm:$0xff]  ;;  %v717_v52 = vpack.c.bf16 %v303_v45, %v294_v44 }
 0x139   : > { %1225 = vmatprep.subr.bf16.mxu1 %v887_v54  ;;  %v798_v53 = vpack.c.bf16 %v465_v48, %v456_v47  ;;  %v312_v54 = vld [vmem:[#allocation5 + $0x160] sm:$0xff] }
 0x13b   : > { %1140 = vmatpush1.bf16.msra.mxu0 %v884_v58  ;;  %v474_v58 = vld [vmem:[#allocation5 + $0x670] sm:$0xff] }
 0x13c   : > { %1141 = vmatprep.subr.bf16.mxu0 %v894_v61  ;;  %1226 = vmatpush1.bf16.msra.mxu1 %v886_v2  ;;  %v609_v61 = vld [vmem:[#allocation5 + $0xaa8] sm:$0xff]  ;;  %v807_v62 = vpack.c.bf16 %v483_v59, %v474_v58  ;;  %v492_v2 = vld [vmem:[#allocation5 + $0x700] sm:$0xff] }
 0x13d   : > { %1227 = vmatprep.subr.bf16.mxu1 %v896_v3  ;;  %v870_v1 = vpack.c.bf16 %v609_v61, %v600_v60  ;;  %v501_v3 = vld [vmem:[#allocation5 + $0x748] sm:$0xff] }
 0x13e   : > { %v816_v7 = vpack.c.bf16 %v501_v3, %v492_v2 }
 0x13f   : > { %1142 = vmatpush1.bf16.msra.mxu0 %v893_v6  ;;  %v735_v6 = vpack.c.bf16 %v339_v0, %v330_v63 }
 0x140   : > { %1143 = vmatprep.subr.bf16.mxu0 %v903_v9  ;;  %1228 = vmatpush1.bf16.msra.mxu1 %v895_v14  ;;  %v357_v9 = vld [vmem:[#allocation5 + $0x2c8] sm:$0xff] }
 0x141   : > { %1229 = vmatprep.subr.bf16.mxu1 %v905_v15  ;;  %v645_v14 = vld [vmem:[#allocation5 + $0xbc8] sm:$0xff]  ;;  %v744_v15 = vpack.c.bf16 %v357_v9, %v348_v8 }
 0x142   : > { %v888_v20 = vpack.c.bf16 %v645_v14, %v636_v13 }
 0x143   : > { %1144 = vmatpush1.bf16.msra.mxu0 %v902_v19  ;;  %v375_v19 = vld [vmem:[#allocation5 + $0x358] sm:$0xff] }
 0x144   : > { %1145 = vmatprep.subr.bf16.mxu0 %v912_v23  ;;  %1230 = vmatpush1.bf16.msra.mxu1 %v904_v26  ;;  %v537_v23 = vld [vmem:[#allocation5 + $0x868] sm:$0xff]  ;;  %v753_v26 = vpack.c.bf16 %v375_v19, %v366_v18 }
 0x145   : > { %1231 = vmatprep.subr.bf16.mxu1 %v914_v29  ;;  %v834_v27 = vpack.c.bf16 %v537_v23, %v528_v22  ;;  %v393_v29 = vld [vmem:[#allocation5 + $0x3e8] sm:$0xff] }
 0x146   : > { %v762_v35 = vpack.c.bf16 %v393_v29, %v384_v28 }
 0x147   : > { %1146 = vmatpush1.bf16.msra.mxu0 %v911_v32  ;;  %v555_v32 = vld [vmem:[#allocation5 + $0x8f8] sm:$0xff] }
 0x148   : > { %2680 = vmatprep.subr.bf16.mxu0 %v780_v33  ;;  %1232 = vmatpush1.bf16.msra.mxu1 %v913_v36  ;;  %v672_v33 = vld [vmem:[#allocation5 + $0xca0] sm:$0xff]  ;;  %v843_v36 = vpack.c.bf16 %v555_v32, %v546_v31 }
 0x149   : > { %2766 = vmatprep.subr.bf16.mxu1 %v3255_v49  ;;  %v906_v39 = vpack.c.bf16 %v681_v34, %v672_v33 }
 0x14a   : > { %1164 = vmatmul.mubr.bf16.vlgmr.msra.gmra.mrb[4].mxu0 %v3518_v57 }
 0x14b   : > { %2681 = vmatpush3.bf16.msra.mxu0 %v708_v41  ;;  %1292 = vmatprep.mubr.bf16.mxu0 %v3504_v21  ;;  %v726_v21 = vpack.c.bf16 %v321_v55, %v312_v54  ;;  %v699_v41 = vld [vmem:[#allocation5 + $0xd78] sm:$0xff] }
 0x14c   : > { %1250 = vmatmul.mubr.bf16.vlgmr.msra.gmra.mrb[4].mxu1 %v3518_v57  ;;  %2682 = vmatprep.subr.bf16.mxu0 %v789_v42  ;;  %v771_v42 = vpack.c.bf16 %v411_v38, %v402_v37  ;;  %v915_v44 = vpack.c.bf16 %v699_v41, %v690_v40 }
 0x14d   : > { %2767 = vmatpush3.bf16.msra.mxu1 %v852_v46  ;;  %2782 = vmatprep.mubr.msk.bf16.mxu1 %vm3256_vm0, %v3255_v49 }
 0x14e   : > { %2768 = vmatprep.subr.bf16.mxu1 %v3255_v49 }
 0x14f   : > { %2683 = vmatpush3.bf16.msra.mxu0 %v717_v52 }
 0x150   : > { %2684 = vmatprep.subr.bf16.mxu0 %v798_v53 }
 0x151   : > { %2769 = vmatpush3.bf16.msra.mxu1 %v861_v56 }
 0x152   : > { %2770 = vmatprep.subr.bf16.mxu1 %v3255_v49 }
 0x153   : > { %2685 = vmatpush3.bf16.msra.mxu0 %v726_v21 }
 0x154   : > { %2686 = vmatprep.subr.bf16.mxu0 %v807_v62 }
 0x155   : > { %2771 = vmatpush3.bf16.msra.mxu1 %v870_v1 }
 0x156   : > { %2772 = vmatprep.subr.bf16.mxu1 %v3255_v49 }
 0x157   : > { %2687 = vmatpush3.bf16.msra.mxu0 %v735_v6 }
 0x158   : > { %2688 = vmatprep.subr.bf16.mxu0 %v816_v7 }
 0x159   : > { %2773 = vmatpush3.bf16.msra.mxu1 %v879_v10 }
 0x15a   : > { %2774 = vmatprep.subr.bf16.mxu1 %v3255_v49 }
 0x15b   : > { %2689 = vmatpush3.bf16.msra.mxu0 %v744_v15 }
 0x15c   : > { %2690 = vmatprep.subr.bf16.mxu0 %v825_v16 }
 0x15d   : > { %2775 = vmatpush3.bf16.msra.mxu1 %v888_v20  ;;  %v1342_v20 = vlaneseq }
 0x15e   : > { %2776 = vmatprep.subr.bf16.mxu1 %v3255_v49 }
 0x15f   : > { %2691 = vmatpush3.bf16.msra.mxu0 %v753_v26  ;;  %v3580_v22 = vshrl.u32 %v1342_v20, 7  ;;  %v1346_v23 = vand.u32 127, %v1342_v20 }
 0x160   : > { %2692 = vmatprep.subr.bf16.mxu0 %v834_v27 }
 0x161   : > { %2777 = vmatpush3.bf16.msra.mxu1 %v897_v30  ;;  %v1344_v24 = vadd.s32 8, %v3580_v22  ;;  %vm3584_vm2 = vcmp.le.s32.totalorder %v1346_v23, %v3580_v22 }
 0x162   : > { %2778 = vmatprep.subr.bf16.mxu1 %v3255_v49 }
 0x163   : > { %2693 = vmatpush3.bf16.msra.mxu0 %v762_v35  ;;  %vm3588_vm4 = vcmp.le.s32.totalorder %v1346_v23, %v1344_v24 }
 0x164   : > { %2694 = vmatprep.subr.bf16.mxu0 %v843_v36 }
 0x165   : > { %2779 = vmatpush3.bf16.msra.mxu1 %v906_v39 }
 0x166   : > { %2780 = vmatprep.subr.bf16.mxu1 %v3255_v49 }
 0x167   : > { %2695 = vmatpush3.bf16.msra.mxu0 %v771_v42 }
 0x168   : > { %2810 = vmatprep.subr.bf16.mxu0 %v3255_v49 }
 0x169   : > { %2781 = vmatpush3.bf16.msra.mxu1 %v915_v44 }
 0x16a   : > { %1293 = vmatmul.mubr.bf16.vlgmr.msra.gmra.mrb[8].mxu0 %v3510_v17  ;;  %2786 = vmatprep.subr.bf16.mxu1 %v3255_v49 }
 0x16b   : > { %2812 = vmatprep.mubr.msk.bf16.mxu0 %vm3256_vm0, %v3255_v49 }
 0x16c   : > { %2783 = vmatmul.mubr.bf16.vlgmr.msra.gmra.mrb[8].mxu1 %v3518_v57 }
 0x16d   : > { %2788 = vmatprep.mubr.msk.bf16.mxu1 %vm3256_vm0, %v3255_v49 }
 0x1bd   : > { %v993_v45 = vpop.f32.mrb[0].mxu0  ;;  %v1079_v46 = vpop.f32.mrb[0].mxu1 }
 0x1be   : > { %v995_v47 = vpop.f32.mrb[1].mxu0  ;;  %v1081_v48 = vpop.f32.mrb[1].mxu1 }
 0x1bf   : > { %v997_v50 = vpop.f32.mrb[2].mxu0  ;;  %v1083_v52 = vpop.f32.mrb[2].mxu1 }
 0x1c0   : > { %v3549_v51 = vpack.c.bf16 %v997_v50, %v993_v45  ;;  %v999_v53 = vpop.f32.mrb[3].mxu0  ;;  %v3551_v17 = vpack.c.bf16 %v1083_v52, %v1079_v46  ;;  %v1085_v55 = vpop.f32.mrb[3].mxu1 }
 0x1c1   : > { %v3553_v54 = vpack.c.bf16 %v999_v53, %v995_v47  ;;  %v1350_v56 = vpack.c.bf16 %v1085_v55, %v1081_v48 }
 0x1c3   : > { %v1357_v57 = vsel %vm1352_vm1, %v1350_v56, 0 }
 0x1c4   : > { %2787 = vmatpush3.bf16.xpose.msra.mxu1 %v1357_v57 }
 0x1c5   : > { %2792 = vmatprep.subr.bf16.mxu1 %v3255_v49 }
 0x1cb   : > { %2789 = vmatmul.mubr.msk.bf16.vlgmr.msra.gmra.mrb[12].mxu1 %vm1352_vm1, %v3549_v51 }
 0x1cc   : > { %2794 = vmatprep.mubr.msk.bf16.mxu1 %vm3256_vm0, %v3255_v49 }
 0x21d   : > { %v1165_v58 = vpop.f32.mrb[4].mxu0 }
 0x21e   : > { %v1167_v59 = vpop.f32.mrb[5].mxu0 }
 0x21f   : > { %v1169_v60 = vpop.f32.mrb[6].mxu0  ;;  %v1251_v61 = vpop.f32.mrb[4].mxu1 }
 0x220   : > { %v3561_v21 = vpack.c.bf16 %v1169_v60, %v1165_v58  ;;  %v1253_v62 = vpop.f32.mrb[5].mxu1  ;;  %v1171_v63 = vpop.f32.mrb[7].mxu0 }
 0x221   : > { %v1255_v0 = vpop.f32.mrb[6].mxu1  ;;  %v3563_v1 = vpack.c.bf16 %v1171_v63, %v1167_v59 }
 0x222   : > { %v1607_v2 = vsel %vm1352_vm1, %v3561_v21, 0  ;;  %v3567_v3 = vpack.c.bf16 %v1255_v0, %v1251_v61  ;;  %v1257_v4 = vpop.f32.mrb[7].mxu1 }
 0x223   : > { %2811 = vmatpush3.bf16.xpose.msra.mxu0 %v1607_v2  ;;  %v3569_v5 = vpack.c.bf16 %v1257_v4, %v1253_v62  ;;  %v1856_v2 = vsel %vm1352_vm1, %v3563_v1, 0 }
 0x224   : > { %2793 = vmatpush3.bf16.msra.mxu1 %v3567_v3  ;;  %2822 = vmatprep.subr.bf16.mxu0 %v3255_v49 }
 0x225   : > { %2798 = vmatprep.subr.bf16.mxu1 %v3255_v49 }
 0x22a   : > { %2813 = vmatmul.mubr.msk.bf16.vlgmr.msra.gmra.mrb[12].mxu0 %vm1352_vm1, %v3553_v54 }
 0x22b   : > { %2824 = vmatprep.mubr.msk.bf16.mxu0 %vm3256_vm0, %v3255_v49 }
 0x23d   : > { %v2696_v6 = vpop.f32.mrb[8].mxu0 }
 0x23e   : > { %v2697_v7 = vpop.f32.mrb[9].mxu0 }
 0x23f   : > { %v2698_v8 = vadd.f32 %v2697_v7, %v2696_v6  ;;  %v2699_v9 = vpop.f32.mrb[10].mxu0  ;;  %v1335_v10 = vpop.f32.mrb[8].mxu1 }
 0x240   : > { %v2700_v11 = vpop.f32.mrb[11].mxu0  ;;  %v2784_v12 = vpop.f32.mrb[9].mxu1 }
 0x241   : > { %v1336_v13 = vadd.f32 %v2698_v8, %v1335_v10  ;;  %v2701_v14 = vadd.f32 %v2700_v11, %v2699_v9  ;;  %v1338_v15 = vpop.f32.mrb[10].mxu1 }
 0x242   : > { %v2785_v16 = vpop.f32.mrb[11].mxu1 }
 0x243   : > { %v1339_v18 = vadd.f32 %v2701_v14, %v1338_v15 }
 0x245   : > { %v3578_v19 = vpack.c.bf16 %v1339_v18, %v1336_v13 }
 0x29e   : > { %v1393_v25 = vpop.f32.mrb[12].mxu1 }
 0x29f   : > { %v1400_v27 = vmul.f32 0.05103104, %v1393_v25  ;;  %v2790_v28 = vpop.f32.mrb[13].mxu1 }
 0x2a0   : > { %v1396_v29 = vpop.f32.mrb[14].mxu1 }
 0x2a1   : > { %v1401_v31 = vmul.f32 0.05103104, %v1396_v29  ;;  %v2791_v32 = vpop.f32.mrb[15].mxu1  ;;  %v1402_v33 = vsel %vm3584_vm2, %v1400_v27, -1e+30 }
 0x2a2   : > { %v1405_v34 = vsel %vm1404_vm3, %v1402_v33, -inf }
 0x2a3   : > { %1406 = vmax.xlane.f32.xlu0 %v1405_v34  ;;  %v1403_v35 = vsel %vm3588_vm4, %v1401_v31, -1e+30 }
 0x2a4   : > { %v1408_v36 = vsel %vm1404_vm3, %v1403_v35, -inf }
 0x2a7   : > { %1409 = vmax.xlane.f32.xlu0 %v1408_v36 }
 0x2bd   : > { %1476 = vrot.lane.b32.xlu0 %v1350_v56, %s3257_s21 }
 0x2c1   : > { %1974 = vrot.lane.b32.xlu0 %v3563_v1, %s3257_s21 }
 0x2fd   : > { %v3601_v37 = vpop.f32.mrb[12].mxu0 }
 0x2fe   : > { %v2814_v38 = vpop.f32.mrb[13].mxu0  ;;  %v1650_v15 = vmul.f32 0.05103104, %v3601_v37 }
 0x2ff   : > { %v3603_v39 = vpop.f32.mrb[14].mxu0 }
 0x300   : > { %v2815_v40 = vpop.f32.mrb[15].mxu0  ;;  %v1651_v34 = vmul.f32 0.05103104, %v3603_v39  ;;  %v1652_v36 = vsel %vm3584_vm2, %v1650_v15, -1e+30 }
 0x330   : > { %v1407_v41 = vpop.xlane.xlu0 %1406 }
 0x331   : > { %v1411_v42 = vsub.f32 %v1402_v33, %v1407_v41  ;;  %v1654_v41 = vsel %vm1404_vm3, %v1652_v36, -inf }
 0x333   : > { %v1413_v44 = vmul.f32 1.442695, %v1411_v42 }
 0x334   : > { %v1410_v45 = vpop.xlane.xlu0 %1409 }
 0x335   : > { %3008 = vpow2.f32 %v1413_v44  ;;  %v1412_v46 = vsub.f32 %v1403_v35, %v1410_v45  ;;  %v1653_v44 = vsel %vm3588_vm4, %v1651_v34, -1e+30 }
 0x337   : > { %v1415_v47 = vmul.f32 1.442695, %v1412_v46 }
 0x338   : > { %v1477_v62 = vpop.permute.xlu0 %1476 }
 0x339   : > { %3010 = vpow2.f32 %v1415_v47  ;;  %v1482_v63 = vsel %vm1352_vm1, %v1477_v62, 0 }
 0x33c   : > { %v1975_v4 = vpop.permute.xlu0 %1974 }
 0x33d   : > { %v1980_v6 = vsel %vm1352_vm1, %v1975_v4, 0 }
 0x33f   : > { %v3009_v48 = vpop.eup %3008 }
 0x340   : > { %v1417_v50 = vsel %vm1404_vm3, %v3009_v48, 0.0 }
 0x341   : > { %1418 = vadd.xlane.f32.xlu1 %v1417_v50 }
 0x343   : > { %v3011_v52 = vpop.eup %3010 }
 0x344   : > { %v1420_v53 = vsel %vm1404_vm3, %v3011_v52, 0.0 }
 0x345   : > { %1421 = vadd.xlane.f32.xlu1 %v1420_v53  ;;  %v1657_v53 = vsel %vm1404_vm3, %v1653_v44, -inf }
 0x356   : > { %1473 = vrot.lane.b32.xlu1 %v3549_v51, %s3257_s21 }
 0x35a   : > { %1725 = vrot.lane.b32.xlu1 %v3561_v21, %s3257_s21 }
 0x35e   : > { %1722 = vrot.lane.b32.xlu1 %v3553_v54, %s3257_s21 }
 0x362   : > { %1971 = vrot.lane.b32.xlu1 %v3551_v17, %s3257_s21 }
 0x3ce   : > { %v1419_v55 = vpop.xlane.xlu1 %1418 }
 0x3cf   : > { %3012 = vrcp.f32 %v1419_v55 }
 0x3d2   : > { %v1422_v56 = vpop.xlane.xlu1 %1421 }
 0x3d3   : > { %3014 = vrcp.f32 %v1422_v56 }
 0x3d6   : > { %v1474_v57 = vpop.permute.xlu1 %1473 }
 0x3d9   : > { %v3013_v59 = vpop.eup %3012 }
 0x3da   : > { %v1726_v58 = vpop.permute.xlu1 %1725  ;;  %v1425_v61 = vmul.f32 %v3013_v59, %v3009_v48 }
 0x3db   : > { %v1731_v60 = vsel %vm1352_vm1, %v1726_v58, 0 }
 0x3dc   : > { %2823 = vmatpush3.bf16.xpose.msra.mxu0 %v1731_v60 }
 0x3dd   : > { %v3015_v51 = vpop.eup %3014  ;;  %2834 = vmatprep.subr.bf16.mxu0 %v3255_v49 }
 0x3de   : > { %v1426_v21 = vmul.f32 %v3015_v51, %v3011_v52  ;;  %v1723_v0 = vpop.permute.xlu1 %1722 }
 0x3e0   : > { %v1427_v54 = vpack.c.bf16 %v1426_v21, %v1425_v61 }
 0x3e2   : > { %2795 = vmatmul.mubr.msk.bf16.vlgmr.msra.gmra.mrb[16].mxu1 %vm1404_vm3, %v1427_v54  ;;  %v1972_v1 = vpop.permute.xlu1 %1971 }
 0x3e3   : > { %2799 = vmatpush3.bf16.xpose.msra.mxu1 %v1482_v63  ;;  %2825 = vmatmul.mubr.msk.bf16.vlgmr.msra.gmra.mrb[16].mxu0 %vm1352_vm1, %v1723_v0 }
 0x3e4   : > { %2835 = vmatpush3.bf16.xpose.msra.mxu0 %v1856_v2  ;;  %2800 = vmatprep.mubr.msk.bf16.mxu1 %vm3256_vm0, %v3255_v49 }
 0x3e5   : > { %2836 = vmatprep.mubr.msk.bf16.mxu0 %vm3256_vm0, %v3255_v49  ;;  %2846 = vmatprep.subr.bf16.mxu0 %v3255_v49 }
 0x3e6   : > { %2804 = vmatprep.subr.bf16.mxu1 %v3255_v49 }
 0x3ea   : > { %2801 = vmatmul.mubr.msk.bf16.vlgmr.msra.gmra.mrb[20].mxu1 %vm1352_vm1, %v1474_v57 }
 0x3eb   : > { %2837 = vmatmul.mubr.msk.bf16.vlgmr.msra.gmra.mrb[20].mxu0 %vm1352_vm1, %v3551_v17  ;;  %2806 = vmatprep.mubr.msk.bf16.mxu1 %vm3256_vm0, %v3255_v49 }
 0x3ec   : > { %2847 = vmatpush3.bf16.xpose.msra.mxu0 %v1980_v6  ;;  %2848 = vmatprep.mubr.msk.bf16.mxu0 %vm3256_vm0, %v3255_v49 }
 0x3f3   : > { %2849 = vmatmul.mubr.msk.bf16.vlgmr.msra.gmra.mrb[24].mxu0 %vm1352_vm1, %v1972_v1 }
 0x4b5   : > { %v3637_v7 = vpop.f32.mrb[16].mxu1 }
 0x4b6   : > { %v2796_v8 = vpop.f32.mrb[17].mxu1  ;;  %v1767_v9 = vpop.f32.mrb[16].mxu0 }
 0x4b7   : > { %v3639_v10 = vpop.f32.mrb[18].mxu1  ;;  %v2826_v11 = vpop.f32.mrb[17].mxu0  ;;  %v1774_v42 = vmul.f32 0.05103104, %v1767_v9 }
 0x4b8   : > { %v2797_v12 = vpop.f32.mrb[19].mxu1  ;;  %v1770_v13 = vpop.f32.mrb[18].mxu0 }
 0x4b9   : > { %v2827_v17 = vpop.f32.mrb[19].mxu0  ;;  %v1775_v23 = vmul.f32 0.05103104, %v1770_v13  ;;  %v1776_v56 = vsel %vm3584_vm2, %v1774_v42, -1e+30 }
 0x4ba   : > { %v1778_v59 = vsel %vm1404_vm3, %v1776_v56, -inf }
 0x4bb   : > { %v1777_v40 = vsel %vm3588_vm4, %v1775_v23, -1e+30 }
 0x4bc   : > { %v1781_v46 = vsel %vm1404_vm3, %v1777_v40, -inf }
 0x4bd   : > { %v1518_v14 = vpop.f32.mrb[20].mxu1 }
 0x4be   : > { %v1525_v16 = vmul.f32 0.05103104, %v1518_v14  ;;  %v2802_v18 = vpop.f32.mrb[21].mxu1  ;;  %v1892_v20 = vpop.f32.mrb[20].mxu0 }
 0x4bf   : > { %v1521_v24 = vpop.f32.mrb[22].mxu1  ;;  %v2838_v25 = vpop.f32.mrb[21].mxu0  ;;  %v1899_v55 = vmul.f32 0.05103104, %v1892_v20 }
 0x4c0   : > { %v1526_v27 = vmul.f32 0.05103104, %v1521_v24  ;;  %v2803_v28 = vpop.f32.mrb[23].mxu1  ;;  %v1895_v29 = vpop.f32.mrb[22].mxu0  ;;  %v1527_v31 = vsel %vm3584_vm2, %v1525_v16, -1e+30 }
 0x4c1   : > { %v2839_v32 = vpop.f32.mrb[23].mxu0  ;;  %v1529_v33 = vsel %vm1404_vm3, %v1527_v31, -inf  ;;  %v1900_v38 = vmul.f32 0.05103104, %v1895_v29  ;;  %v1901_v51 = vsel %vm3584_vm2, %v1899_v55, -1e+30 }
 0x4c2   : > { %1530 = vmax.xlane.f32.xlu0 %v1529_v33  ;;  %v3648_v35 = vsel %vm3588_vm4, %v1526_v27, -1e+30  ;;  %v1903_v21 = vsel %vm1404_vm3, %v1901_v51, -inf }
 0x4c3   : > { %v1532_v37 = vsel %vm1404_vm3, %v3648_v35, -inf  ;;  %v1902_v48 = vsel %vm3588_vm4, %v1900_v38, -1e+30 }
 0x4c4   : > { %1533 = vmax.xlane.f32.xlu1 %v1532_v37  ;;  %v1906_v57 = vsel %vm1404_vm3, %v1902_v48, -inf }
 0x4c6   : > { %1655 = vmax.xlane.f32.xlu0 %v1654_v41  ;;  %v2016_v39 = vpop.f32.mrb[24].mxu0 }
 0x4c7   : > { %v2850_v45 = vpop.f32.mrb[25].mxu0  ;;  %v2023_v60 = vmul.f32 0.05103104, %v2016_v39 }
 0x4c8   : > { %1782 = vmax.xlane.f32.xlu1 %v1781_v46  ;;  %v2019_v47 = vpop.f32.mrb[26].mxu0 }
 0x4c9   : > { %v2024_v50 = vmul.f32 0.05103104, %v2019_v47  ;;  %v2851_v52 = vpop.f32.mrb[27].mxu0  ;;  %v3678_v62 = vsel %vm3584_vm2, %v2023_v60, -1e+30 }
 0x4ca   : > { %1658 = vmax.xlane.f32.xlu0 %v1657_v53  ;;  %v2027_v30 = vsel %vm1404_vm3, %v3678_v62, -inf }
 0x4cb   : > { %v3668_v58 = vsel %vm3588_vm4, %v2024_v50, -1e+30 }
 0x4cc   : > { %1907 = vmax.xlane.f32.xlu1 %v1906_v57  ;;  %v2030_v61 = vsel %vm1404_vm3, %v3668_v58, -inf }
 0x4ce   : > { %1779 = vmax.xlane.f32.xlu0 %v1778_v59 }
 0x4d0   : > { %2031 = vmax.xlane.f32.xlu1 %v2030_v61 }
 0x4d2   : > { %1904 = vmax.xlane.f32.xlu0 %v1903_v21 }
 0x4d6   : > { %2028 = vmax.xlane.f32.xlu0 %v2027_v30 }
 0x54f   : > { %v1531_v54 = vpop.xlane.xlu0 %1530 }
 0x550   : > { %v1535_v11 = vsub.f32 %v1527_v31, %v1531_v54 }
 0x551   : > { %v1534_v63 = vpop.xlane.xlu1 %1533 }
 0x552   : > { %v1537_v15 = vmul.f32 1.442695, %v1535_v11  ;;  %v1536_v25 = vsub.f32 %v3648_v35, %v1534_v63 }
 0x553   : > { %v1656_v0 = vpop.xlane.xlu0 %1655 }
 0x554   : > { %v1660_v2 = vsub.f32 %v1652_v36, %v1656_v0  ;;  %v1539_v32 = vmul.f32 1.442695, %v1536_v25 }
 0x555   : > { %v1783_v4 = vpop.xlane.xlu1 %1782 }
 0x556   : > { %v1662_v6 = vmul.f32 1.442695, %v1660_v2  ;;  %v1785_v1 = vsub.f32 %v1777_v40, %v1783_v4 }
 0x557   : > { %v1659_v8 = vpop.xlane.xlu0 %1658 }
 0x558   : > { %3016 = vpow2.f32 %v1662_v6  ;;  %v1661_v9 = vsub.f32 %v1653_v44, %v1659_v8  ;;  %v1788_v12 = vmul.f32 1.442695, %v1785_v1 }
 0x559   : > { %v1908_v26 = vpop.xlane.xlu1 %1907 }
 0x55a   : > { %v1664_v13 = vmul.f32 1.442695, %v1661_v9  ;;  %v1910_v16 = vsub.f32 %v1902_v48, %v1908_v26 }
 0x55b   : > { %v1780_v17 = vpop.xlane.xlu0 %1779 }
 0x55c   : > { %3018 = vpow2.f32 %v1664_v13  ;;  %v1784_v14 = vsub.f32 %v1776_v56, %v1780_v17  ;;  %v1913_v27 = vmul.f32 1.442695, %v1910_v16 }
 0x55d   : > { %3020 = vpow2.f32 %v1788_v12  ;;  %v2032_v52 = vpop.xlane.xlu1 %2031 }
 0x55e   : > { %v1786_v18 = vmul.f32 1.442695, %v1784_v14  ;;  %v2034_v53 = vsub.f32 %v3668_v58, %v2032_v52 }
 0x55f   : > { %v1905_v20 = vpop.xlane.xlu0 %1904 }
 0x560   : > { %3022 = vpow2.f32 %v1786_v18  ;;  %v1909_v23 = vsub.f32 %v1901_v51, %v1905_v20  ;;  %v2037_v55 = vmul.f32 1.442695, %v2034_v53  ;;  %v2140_v53 = vld [vmem:[#allocation7 + $0x60] sm:$0xff] }
 0x561   : > { %3024 = vpow2.f32 %v1537_v15 }
 0x562   : > { %v3682_v24 = vpop.eup %3016  ;;  %v1911_v28 = vmul.f32 1.442695, %v1909_v23 }
 0x563   : > { %v1666_v29 = vsel %vm1404_vm3, %v3682_v24, 0.0  ;;  %v2029_v47 = vpop.xlane.xlu0 %2028 }
 0x564   : > { %3026 = vpow2.f32 %v1911_v28  ;;  %1667 = vadd.xlane.f32.xlu0 %v1666_v29  ;;  %v2033_v48 = vsub.f32 %v3678_v62, %v2029_v47  ;;  %v2141_v47 = vld [vmem:[#allocation7 + $0x68] sm:$0xff] }
 0x565   : > { %3028 = vpow2.f32 %v1913_v27 }
 0x566   : > { %v3687_v31 = vpop.eup %3018  ;;  %3030 = vpow2.f32 %v1539_v32  ;;  %v2035_v50 = vmul.f32 1.442695, %v2033_v48  ;;  %v2144_v48 = vld [vmem:[#allocation7 + $0x80] sm:$0xff] }
 0x567   : > { %v1669_v33 = vsel %vm1404_vm3, %v3687_v31, 0.0  ;;  %v3691_v34 = vpop.eup %3020  ;;  %v2279_v52 = vpack.c.bf16 %v2144_v48, %v2141_v47 }
 0x568   : > { %1670 = vadd.xlane.f32.xlu1 %v1669_v33  ;;  %v1793_v37 = vsel %vm1404_vm3, %v3691_v34, 0.0  ;;  %3032 = vpow2.f32 %v2035_v50 }
 0x569   : > { %3034 = vpow2.f32 %v2037_v55  ;;  %v2143_v55 = vld [vmem:[#allocation7 + $0x78] sm:$0xff] }
 0x56a   : > { %v3693_v36 = vpop.eup %3022 }
 0x56b   : > { %v1790_v35 = vsel %vm1404_vm3, %v3693_v36, 0.0  ;;  %v3025_v38 = vpop.eup %3024 }
 0x56c   : > { %1791 = vadd.xlane.f32.xlu0 %v1790_v35  ;;  %1794 = vadd.xlane.f32.xlu1 %v1793_v37  ;;  %v1541_v41 = vsel %vm1404_vm3, %v3025_v38, 0.0  ;;  %v2132_v35 = vld [vmem:[#allocation7 + $0x20] sm:$0xff] }
 0x56d   : > { %v2128_v37 = vld [vmem:[#allocation7] sm:$0xff] }
 0x56e   : > { %v3699_v40 = vpop.eup %3026 }
 0x56f   : > { %v1915_v42 = vsel %vm1404_vm3, %v3699_v40, 0.0  ;;  %v3704_v39 = vpop.eup %3028 }
 0x570   : > { %1542 = vadd.xlane.f32.xlu0 %v1541_v41  ;;  %1916 = vadd.xlane.f32.xlu1 %v1915_v42  ;;  %v1918_v44 = vsel %vm1404_vm3, %v3704_v39, 0.0  ;;  %v3031_v45 = vpop.eup %3030  ;;  %v2135_v41 = vld [vmem:[#allocation7 + $0x38] sm:$0xff]  ;;  %v2138_v42 = vld [vmem:[#allocation7 + $0x50] sm:$0xff] }
 0x571   : > { %v1544_v46 = vsel %vm1404_vm3, %v3031_v45, 0.0 }
 0x572   : > { %v3715_v56 = vpop.eup %3032 }
 0x573   : > { %v2039_v57 = vsel %vm1404_vm3, %v3715_v56, 0.0 }
 0x574   : > { %1919 = vadd.xlane.f32.xlu1 %v1918_v44  ;;  %v2276_v44 = vpack.c.bf16 %v2138_v42, %v2135_v41 }
 0x578   : > { %1545 = vadd.xlane.f32.xlu1 %v1544_v46  ;;  %v2137_v46 = vld [vmem:[#allocation7 + $0x48] sm:$0xff] }
 0x586   : > { %1553 = vrot.lane.b32.xlu0 %v3567_v3, %s3257_s21  ;;  %v3719_v3 = vpop.eup %3034 }
 0x587   : > { %v2042_v59 = vsel %vm1404_vm3, %v3719_v3, 0.0 }
 0x589   : > { %1802 = vrot.lane.b32.xlu1 %v3569_v5, %s3257_s21 }
 0x5a5   : > { %2040 = vadd.xlane.f32.xlu0 %v2039_v57  ;;  %v2150_v57 = vld [vmem:[#allocation7 + $0xb0] sm:$0xff] }
 0x5ad   : > { %2043 = vadd.xlane.f32.xlu1 %v2042_v59 }
 0x5bb   : > { %2051 = vrot.lane.b32.xlu0 %v3578_v19, %s3257_s21 }
 0x5f1   : > { %v1668_v60 = vpop.xlane.xlu0 %1667 }
 0x5f5   : > { %v1671_v58 = vpop.xlane.xlu1 %1670 }
 0x5f9   : > { %v1792_v51 = vpop.xlane.xlu0 %1791  ;;  %v1795_v61 = vpop.xlane.xlu1 %1794 }
 0x5fd   : > { %v1543_v21 = vpop.xlane.xlu0 %1542  ;;  %v1917_v62 = vpop.xlane.xlu1 %1916 }
 0x5fe   : > { %3036 = vrcp.f32 %v1543_v21  ;;  %v2178_v21 = vld [vmem:[#allocation7 + $0x190] sm:$0xff] }
 0x601   : > { %v1554_v30 = vpop.permute.xlu0 %1553  ;;  %v1920_v54 = vpop.xlane.xlu1 %1919 }
 0x602   : > { %2805 = vmatpush3.bf16.msra.mxu1 %v1554_v30 }
 0x603   : > { %2816 = vmatprep.subr.bf16.mxu1 %v3255_v49 }
 0x605   : > { %v1546_v63 = vpop.xlane.xlu1 %1545 }
 0x606   : > { %3038 = vrcp.f32 %v1546_v63 }
 0x607   : > { %3040 = vrcp.f32 %v1671_v58  ;;  %v2149_v58 = vld [vmem:[#allocation7 + $0xa8] sm:$0xff] }
 0x608   : > { %3042 = vrcp.f32 %v1668_v60  ;;  %v3037_v0 = vpop.eup %3036  ;;  %v2146_v60 = vld [vmem:[#allocation7 + $0x90] sm:$0xff] }
 0x609   : > { %3044 = vrcp.f32 %v1792_v51  ;;  %v1549_v4 = vmul.f32 %v3037_v0, %v3025_v38  ;;  %v1803_v14 = vpop.permute.xlu1 %1802  ;;  %v2153_v51 = vld [vmem:[#allocation7 + $0xc8] sm:$0xff]  ;;  %v2281_v30 = vpack.c.bf16 %v2149_v58, %v2146_v60  ;;  %v2130_v0 = vld [vmem:[#allocation7 + $0x10] sm:$0xff] }
 0x60a   : > { %3046 = vrcp.f32 %v1795_v61  ;;  %v2156_v61 = vld [vmem:[#allocation7 + $0xe0] sm:$0xff]  ;;  %v2142_v58 = vld [vmem:[#allocation7 + $0x70] sm:$0xff] }
 0x60b   : > { %3048 = vrcp.f32 %v1920_v54  ;;  %v2152_v54 = vld [vmem:[#allocation7 + $0xc0] sm:$0xff] }
 0x60c   : > { %3050 = vrcp.f32 %v1917_v62  ;;  %v2181_v62 = vld [vmem:[#allocation7 + $0x1a8] sm:$0xff] }
 0x60d   : > { %v2298_v63 = vpack.c.bf16 %v2181_v62, %v2178_v21  ;;  %v2195_v21 = vld [vmem:[#allocation7 + $0x218] sm:$0xff]  ;;  %v2198_v62 = vld [vmem:[#allocation7 + $0x230] sm:$0xff] }
 0x610   : > { %v3039_v2 = vpop.eup %3038 }
 0x611   : > { %v1550_v6 = vmul.f32 %v3039_v2, %v3031_v45  ;;  %v3041_v8 = vpop.eup %3040  ;;  %v2134_v45 = vld [vmem:[#allocation7 + $0x30] sm:$0xff]  ;;  %v2285_v2 = vpack.c.bf16 %v2156_v61, %v2153_v51  ;;  %v2145_v51 = vld [vmem:[#allocation7 + $0x88] sm:$0xff] }
 0x612   : > { %v3043_v9 = vpop.eup %3042  ;;  %v1675_v11 = vmul.f32 %v3041_v8, %v3687_v31  ;;  %v2275_v50 = vpack.c.bf16 %v2137_v46, %v2134_v45  ;;  %v2162_v8 = vld [vmem:[#allocation7 + $0x110] sm:$0xff]  ;;  %v2183_v45 = vld [vmem:[#allocation7 + $0x1b8] sm:$0xff]  ;;  %v2280_v61 = vpack.c.bf16 %v2145_v51, %v2142_v58  ;;  %v2220_v58 = vld [vmem:[#allocation7 + $0x2e0] sm:$0xff] }
 0x613   : > { %v1551_v1 = vpack.c.bf16 %v1550_v6, %v1549_v4  ;;  %v1674_v12 = vmul.f32 %v3043_v9, %v3682_v24  ;;  %v3045_v13 = vpop.eup %3044  ;;  %v2155_v4 = vld [vmem:[#allocation7 + $0xd8] sm:$0xff]  ;;  %v2186_v46 = vld [vmem:[#allocation7 + $0x1d0] sm:$0xff] }
 0x614   : > { %v3047_v17 = vpop.eup %3046  ;;  %v2159_v6 = vld [vmem:[#allocation7 + $0xf8] sm:$0xff]  ;;  %v2300_v48 = vpack.c.bf16 %v2186_v46, %v2183_v45 }
 0x615   : > { %2807 = vmatmul.mubr.msk.bf16.vlgmr.msra.gmra.mrb[24].mxu1 %vm1404_vm3, %v1551_v1  ;;  %v1676_v26 = vpack.c.bf16 %v1675_v11, %v1674_v12  ;;  %v1799_v15 = vmul.f32 %v3047_v17, %v3691_v34  ;;  %v3049_v18 = vpop.eup %3048  ;;  %v2133_v1 = vld [vmem:[#allocation7 + $0x28] sm:$0xff]  ;;  %v2184_v11 = vld [vmem:[#allocation7 + $0x1c0] sm:$0xff]  ;;  %v2187_v12 = vld [vmem:[#allocation7 + $0x1d8] sm:$0xff] }
 0x616   : > { %2817 = vmatpush3.bf16.msra.mxu1 %v3569_v5  ;;  %2818 = vmatprep.mubr.msk.bf16.mxu1 %vm3256_vm0, %v3255_v49  ;;  %v1798_v5 = vmul.f32 %v3045_v13, %v3693_v36  ;;  %v3051_v20 = vpop.eup %3050  ;;  %v1924_v23 = vmul.f32 %v3049_v18, %v3704_v39  ;;  %v2129_v36 = vld [vmem:[#allocation7 + $0x8] sm:$0xff]  ;;  %v2274_v9 = vpack.c.bf16 %v2133_v1, %v2130_v0  ;;  %v2139_v17 = vld [vmem:[#allocation7 + $0x58] sm:$0xff]  ;;  %v2158_v18 = vld [vmem:[#allocation7 + $0xf0] sm:$0xff] }
 0x617   : > { %2828 = vmatprep.subr.bf16.mxu1 %v3255_v49  ;;  %v1923_v24 = vmul.f32 %v3051_v20, %v3699_v40  ;;  %v2273_v38 = vpack.c.bf16 %v2132_v35, %v2129_v36  ;;  %v2131_v40 = vld [vmem:[#allocation7 + $0x18] sm:$0xff]  ;;  %v2301_v13 = vpack.c.bf16 %v2187_v12, %v2184_v11  ;;  %v2161_v20 = vld [vmem:[#allocation7 + $0x108] sm:$0xff]  ;;  %v2170_v35 = vld [vmem:[#allocation7 + $0x150] sm:$0xff] }
 0x618   : > { %v1800_v16 = vpack.c.bf16 %v1799_v15, %v1798_v5  ;;  %v2272_v39 = vpack.c.bf16 %v2131_v40, %v2128_v37  ;;  %v2190_v15 = vld [vmem:[#allocation7 + $0x1f0] sm:$0xff]  ;;  %v2173_v37 = vld [vmem:[#allocation7 + $0x168] sm:$0xff]  ;;  %v2180_v40 = vld [vmem:[#allocation7 + $0x1a0] sm:$0xff] }
 0x619   : > { %v1925_v25 = vpack.c.bf16 %v1924_v23, %v1923_v24  ;;  %2364 = vmatprep.subr.bf16.mxu0 %v2273_v38  ;;  %v2193_v23 = vld [vmem:[#allocation7 + $0x208] sm:$0xff]  ;;  %v2293_v41 = vpack.c.bf16 %v2173_v37, %v2170_v35  ;;  %v2194_v0 = vld [vmem:[#allocation7 + $0x210] sm:$0xff]  ;;  %v2148_v1 = vld [vmem:[#allocation7 + $0xa0] sm:$0xff] }
 0x61a   : > { %2365 = vmatpush1.bf16.msra.mxu0 %v2272_v39  ;;  %v2165_v24 = vld [vmem:[#allocation7 + $0x128] sm:$0xff]  ;;  %v2176_v39 = vld [vmem:[#allocation7 + $0x180] sm:$0xff]  ;;  %v2163_v35 = vld [vmem:[#allocation7 + $0x118] sm:$0xff] }
 0x61b   : > { %2366 = vmatprep.subr.bf16.mxu0 %v2276_v44  ;;  %v2177_v38 = vld [vmem:[#allocation7 + $0x188] sm:$0xff]  ;;  %v2179_v44 = vld [vmem:[#allocation7 + $0x198] sm:$0xff]  ;;  %v2204_v12 = vld [vmem:[#allocation7 + $0x260] sm:$0xff] }
 0x61c   : > { %v2297_v42 = vpack.c.bf16 %v2180_v40, %v2177_v38  ;;  %v2296_v47 = vpack.c.bf16 %v2179_v44, %v2176_v39  ;;  %v2201_v11 = vld [vmem:[#allocation7 + $0x248] sm:$0xff]  ;;  %v2216_v38 = vld [vmem:[#allocation7 + $0x2c0] sm:$0xff] }
 0x61d   : > { %2819 = vmatmul.mubr.msk.bf16.vlgmr.msra.gmra.mrb[28].mxu1 %vm1404_vm3, %v1676_v26  ;;  %v2136_v26 = vld [vmem:[#allocation7 + $0x40] sm:$0xff]  ;;  %v2213_v37 = vld [vmem:[#allocation7 + $0x2a8] sm:$0xff] }
 0x61e   : > { %2829 = vmatpush3.bf16.msra.mxu1 %v1803_v14  ;;  %2830 = vmatprep.mubr.msk.bf16.mxu1 %vm3256_vm0, %v3255_v49  ;;  %v2284_v14 = vpack.c.bf16 %v2155_v4, %v2152_v54  ;;  %v2277_v5 = vpack.c.bf16 %v2139_v17, %v2136_v26  ;;  %v2306_v54 = vpack.c.bf16 %v2198_v62, %v2195_v21  ;;  %v2205_v17 = vld [vmem:[#allocation7 + $0x268] sm:$0xff]  ;;  %v2212_v44 = vld [vmem:[#allocation7 + $0x2a0] sm:$0xff]  ;;  %v2223_v21 = vld [vmem:[#allocation7 + $0x2f8] sm:$0xff] }
 0x61f   : > { %2840 = vmatprep.subr.bf16.mxu1 %v3255_v49  ;;  %2367 = vmatpush1.bf16.msra.mxu0 %v2275_v50  ;;  %v2182_v50 = vld [vmem:[#allocation7 + $0x1b0] sm:$0xff]  ;;  %v2309_v26 = vpack.c.bf16 %v2204_v12, %v2201_v11  ;;  %v2217_v39 = vld [vmem:[#allocation7 + $0x2c8] sm:$0xff]  ;;  %v2315_v46 = vpack.c.bf16 %v2216_v38, %v2213_v37  ;;  %v2227_v38 = vld [vmem:[#allocation7 + $0x318] sm:$0xff] }
 0x620   : > { %2368 = vmatprep.subr.bf16.mxu0 %v2279_v52  ;;  %v2185_v52 = vld [vmem:[#allocation7 + $0x1c8] sm:$0xff]  ;;  %v2218_v62 = vld [vmem:[#allocation7 + $0x2d0] sm:$0xff] }
 0x625   : > { %2831 = vmatmul.mubr.msk.bf16.vlgmr.msra.gmra.mrb[32].mxu1 %vm1404_vm3, %v1800_v16  ;;  %v2288_v16 = vpack.c.bf16 %v2162_v8, %v2159_v6  ;;  %v2151_v8 = vld [vmem:[#allocation7 + $0xb8] sm:$0xff] }
 0x626   : > { %2841 = vmatpush3.bf16.msra.mxu1 %v3578_v19  ;;  %2842 = vmatprep.mubr.msk.bf16.mxu1 %vm3256_vm0, %v3255_v49 }
 0x627   : > { %2852 = vmatprep.subr.bf16.mxu1 %v3255_v49 }
 0x62d   : > { %2843 = vmatmul.mubr.msk.bf16.vlgmr.msra.gmra.mrb[36].mxu1 %vm1404_vm3, %v1925_v25  ;;  %v2168_v25 = vld [vmem:[#allocation7 + $0x140] sm:$0xff] }
 0x62e   : > { %2854 = vmatprep.mubr.msk.bf16.mxu1 %vm3256_vm0, %v3255_v49 }
 0x632   : > { %v2041_v27 = vpop.xlane.xlu0 %2040 }
 0x633   : > { %3052 = vrcp.f32 %v2041_v27  ;;  %v2304_v27 = vpack.c.bf16 %v2193_v23, %v2190_v15  ;;  %v2207_v23 = vld [vmem:[#allocation7 + $0x278] sm:$0xff] }
 0x636   : > { %v2052_v28 = vpop.permute.xlu0 %2051 }
 0x637   : > { %2853 = vmatpush3.bf16.msra.mxu1 %v2052_v28  ;;  %v2287_v28 = vpack.c.bf16 %v2161_v20, %v2158_v18  ;;  %v2154_v18 = vld [vmem:[#allocation7 + $0xd0] sm:$0xff]  ;;  %v2157_v20 = vld [vmem:[#allocation7 + $0xe8] sm:$0xff] }
 0x638   : > { %2735 = vmatprep.subr.bf16.mxu1 %v2298_v63  ;;  %v2199_v63 = vld [vmem:[#allocation7 + $0x238] sm:$0xff] }
 0x63a   : > { %v2044_v19 = vpop.xlane.xlu1 %2043 }
 0x63b   : > { %3054 = vrcp.f32 %v2044_v19  ;;  %v2291_v19 = vpack.c.bf16 %v2168_v25, %v2165_v24  ;;  %v2286_v24 = vpack.c.bf16 %v2157_v20, %v2154_v18  ;;  %v2210_v25 = vld [vmem:[#allocation7 + $0x290] sm:$0xff] }
 0x63d   : > { %v3053_v29 = vpop.eup %3052 }
 0x63e   : > { %v2047_v32 = vmul.f32 %v3053_v29, %v3715_v56  ;;  %v2147_v56 = vld [vmem:[#allocation7 + $0x98] sm:$0xff]  ;;  %v2164_v29 = vld [vmem:[#allocation7 + $0x120] sm:$0xff] }
 0x63f   : > { %v2282_v59 = vpack.c.bf16 %v2150_v57, %v2147_v56  ;;  %v2299_v56 = vpack.c.bf16 %v2185_v52, %v2182_v50 }
 0x645   : > { %v3055_v31 = vpop.eup %3054 }
 0x646   : > { %v2048_v33 = vmul.f32 %v3055_v31, %v3719_v3  ;;  %v2278_v3 = vpack.c.bf16 %v2143_v55, %v2140_v53  ;;  %v2167_v31 = vld [vmem:[#allocation7 + $0x138] sm:$0xff]  ;;  %v2189_v53 = vld [vmem:[#allocation7 + $0x1e8] sm:$0xff]  ;;  %v2192_v55 = vld [vmem:[#allocation7 + $0x200] sm:$0xff] }
 0x647   : > { %v2303_v57 = vpack.c.bf16 %v2192_v55, %v2189_v53  ;;  %v2166_v55 = vld [vmem:[#allocation7 + $0x130] sm:$0xff] }
 0x648   : > { %v2049_v34 = vpack.c.bf16 %v2048_v33, %v2047_v32  ;;  %2369 = vmatpush1.bf16.msra.mxu0 %v2278_v3  ;;  %v2171_v32 = vld [vmem:[#allocation7 + $0x158] sm:$0xff]  ;;  %v2174_v33 = vld [vmem:[#allocation7 + $0x170] sm:$0xff]  ;;  %v2188_v3 = vld [vmem:[#allocation7 + $0x1e0] sm:$0xff] }
 0x649   : > { %2370 = vmatprep.subr.bf16.mxu0 %v2282_v59  ;;  %v2294_v36 = vpack.c.bf16 %v2174_v33, %v2171_v32  ;;  %v2191_v59 = vld [vmem:[#allocation7 + $0x1f8] sm:$0xff]  ;;  %v2209_v32 = vld [vmem:[#allocation7 + $0x288] sm:$0xff]  ;;  %v2160_v33 = vld [vmem:[#allocation7 + $0x100] sm:$0xff] }
 0x64a   : > { %2855 = vmatmul.mubr.msk.bf16.vlgmr.msra.gmra.mrb[40].mxu1 %vm1404_vm3, %v2049_v34  ;;  %v2290_v34 = vpack.c.bf16 %v2167_v31, %v2164_v29  ;;  %v2302_v60 = vpack.c.bf16 %v2191_v59, %v2188_v3  ;;  %v2206_v31 = vld [vmem:[#allocation7 + $0x270] sm:$0xff]  ;;  %v2219_v59 = vld [vmem:[#allocation7 + $0x2d8] sm:$0xff] }
 0x64b   : > { %2736 = vmatpush3.bf16.msra.mxu1 %v2274_v9  ;;  %v2283_v9 = vpack.c.bf16 %v2151_v8, %v2148_v1  ;;  %v2225_v8 = vld [vmem:[#allocation7 + $0x308] sm:$0xff] }
 0x64c   : > { %2371 = vmatpush1.bf16.msra.mxu0 %v2281_v30  ;;  %2737 = vmatprep.subr.bf16.mxu1 %v2301_v13  ;;  %v2196_v30 = vld [vmem:[#allocation7 + $0x220] sm:$0xff]  ;;  %v2202_v13 = vld [vmem:[#allocation7 + $0x250] sm:$0xff] }
 0x64d   : > { %2372 = vmatprep.subr.bf16.mxu0 %v2285_v2  ;;  %v2197_v2 = vld [vmem:[#allocation7 + $0x228] sm:$0xff]  ;;  %v2307_v4 = vpack.c.bf16 %v2199_v63, %v2196_v30  ;;  %v2310_v15 = vpack.c.bf16 %v2205_v17, %v2202_v13  ;;  %v2319_v63 = vpack.c.bf16 %v2223_v21, %v2220_v58  ;;  %v2239_v58 = vld [vmem:[#allocation7 + $0x378] sm:$0xff] }
 0x64e   : > { %v2305_v6 = vpack.c.bf16 %v2197_v2, %v2194_v0  ;;  %v2221_v30 = vld [vmem:[#allocation7 + $0x2e8] sm:$0xff]  ;;  %v2172_v2 = vld [vmem:[#allocation7 + $0x160] sm:$0xff]  ;;  %v2243_v21 = vld [vmem:[#allocation7 + $0x398] sm:$0xff] }
 0x64f   : > { %2738 = vmatpush3.bf16.msra.mxu1 %v2277_v5  ;;  %v2203_v5 = vld [vmem:[#allocation7 + $0x258] sm:$0xff]  ;;  %v2317_v0 = vpack.c.bf16 %v2221_v30, %v2218_v62  ;;  %v2246_v62 = vld [vmem:[#allocation7 + $0x3b0] sm:$0xff] }
 0x650   : > { %2373 = vmatpush1.bf16.msra.mxu0 %v2284_v14  ;;  %2739 = vmatprep.subr.bf16.mxu1 %v2304_v27  ;;  %v2200_v14 = vld [vmem:[#allocation7 + $0x240] sm:$0xff] }
 0x651   : > { %2374 = vmatprep.subr.bf16.mxu0 %v2288_v16  ;;  %v2308_v16 = vpack.c.bf16 %v2203_v5, %v2200_v14  ;;  %v2208_v27 = vld [vmem:[#allocation7 + $0x280] sm:$0xff] }
 0x653   : > { %2740 = vmatpush3.bf16.msra.mxu1 %v2280_v61 }
 0x654   : > { %2375 = vmatpush1.bf16.msra.mxu0 %v2287_v28  ;;  %2741 = vmatprep.subr.bf16.mxu1 %v2307_v4  ;;  %v2211_v28 = vld [vmem:[#allocation7 + $0x298] sm:$0xff] }
 0x655   : > { %2376 = vmatprep.subr.bf16.mxu0 %v2291_v19  ;;  %v2312_v19 = vpack.c.bf16 %v2210_v25, %v2207_v23  ;;  %v2313_v29 = vpack.c.bf16 %v2211_v28, %v2208_v27  ;;  %v2175_v4 = vld [vmem:[#allocation7 + $0x178] sm:$0xff] }
 0x656   : > { %v2295_v1 = vpack.c.bf16 %v2175_v4, %v2172_v2  ;;  %v2245_v2 = vld [vmem:[#allocation7 + $0x3a8] sm:$0xff]  ;;  %v2244_v4 = vld [vmem:[#allocation7 + $0x3a0] sm:$0xff] }
 0x657   : > { %2742 = vmatpush3.bf16.msra.mxu1 %v2283_v9  ;;  %v2228_v9 = vld [vmem:[#allocation7 + $0x320] sm:$0xff] }
 0x658   : > { %2377 = vmatpush1.bf16.msra.mxu0 %v2290_v34  ;;  %2743 = vmatprep.subr.bf16.mxu1 %v2310_v15  ;;  %v2321_v11 = vpack.c.bf16 %v2228_v9, %v2225_v8  ;;  %v2252_v8 = vld [vmem:[#allocation7 + $0x3e0] sm:$0xff] }
 0x659   : > { %2378 = vmatprep.subr.bf16.mxu0 %v2294_v36  ;;  %v2311_v36 = vpack.c.bf16 %v2209_v32, %v2206_v31 }
 0x65b   : > { %2744 = vmatpush3.bf16.msra.mxu1 %v2286_v24 }
 0x65c   : > { %2379 = vmatpush1.bf16.msra.mxu0 %v2293_v41  ;;  %v2289_v41 = vpack.c.bf16 %v2163_v35, %v2160_v33  ;;  %2745 = vmatprep.subr.bf16.mxu1 %v2313_v29 }
 0x65d   : > { %2380 = vmatprep.subr.bf16.mxu0 %v2297_v42  ;;  %v2214_v42 = vld [vmem:[#allocation7 + $0x2b0] sm:$0xff] }
 0x65f   : > { %2746 = vmatpush3.bf16.msra.mxu1 %v2289_v41  ;;  %v2229_v41 = vld [vmem:[#allocation7 + $0x328] sm:$0xff] }
 0x660   : > { %2381 = vmatpush1.bf16.msra.mxu0 %v2296_v47  ;;  %v2316_v47 = vpack.c.bf16 %v2217_v39, %v2214_v42  ;;  %v2231_v42 = vld [vmem:[#allocation7 + $0x338] sm:$0xff]  ;;  %v2234_v39 = vld [vmem:[#allocation7 + $0x350] sm:$0xff] }
 0x661   : > { %2382 = vmatprep.subr.bf16.mxu0 %v2300_v48  ;;  %v2215_v48 = vld [vmem:[#allocation7 + $0x2b8] sm:$0xff] }
 0x662   : > { %v2314_v53 = vpack.c.bf16 %v2215_v48, %v2212_v44  ;;  %2747 = vmatprep.subr.bf16.mxu1 %v2316_v47  ;;  %v2230_v48 = vld [vmem:[#allocation7 + $0x330] sm:$0xff] }
 0x664   : > { %2383 = vmatpush1.bf16.msra.mxu0 %v2299_v56  ;;  %v2169_v56 = vld [vmem:[#allocation7 + $0x148] sm:$0xff] }
 0x665   : > { %2384 = vmatprep.subr.bf16.mxu0 %v2303_v57  ;;  %v2292_v57 = vpack.c.bf16 %v2169_v56, %v2166_v55  ;;  %v2237_v55 = vld [vmem:[#allocation7 + $0x368] sm:$0xff]  ;;  %v2240_v56 = vld [vmem:[#allocation7 + $0x380] sm:$0xff] }
 0x667   : > { %2748 = vmatpush3.bf16.msra.mxu1 %v2292_v57 }
 0x668   : > { %2385 = vmatpush1.bf16.msra.mxu0 %v2302_v60  ;;  %v2222_v60 = vld [vmem:[#allocation7 + $0x2f0] sm:$0xff]  ;;  %2749 = vmatprep.subr.bf16.mxu1 %v2319_v63 }
 0x669   : > { %2386 = vmatprep.subr.bf16.mxu0 %v2306_v54  ;;  %v2318_v61 = vpack.c.bf16 %v2222_v60, %v2219_v59  ;;  %v2236_v59 = vld [vmem:[#allocation7 + $0x360] sm:$0xff]  ;;  %v2327_v60 = vpack.c.bf16 %v2240_v56, %v2237_v55  ;;  %v2242_v63 = vld [vmem:[#allocation7 + $0x390] sm:$0xff] }
 0x66a   : > { %v2326_v30 = vpack.c.bf16 %v2239_v58, %v2236_v59 }
 0x66b   : > { %2750 = vmatpush3.bf16.msra.mxu1 %v2295_v1  ;;  %v2249_v1 = vld [vmem:[#allocation7 + $0x3c8] sm:$0xff] }
 0x66c   : > { %2387 = vmatpush1.bf16.msra.mxu0 %v2305_v6  ;;  %2858 = vmatprep.subr.bf16.mxu1 %v3255_v49 }
 0x66d   : > { %2388 = vmatprep.subr.bf16.mxu0 %v2309_v26 }
 0x670   : > { %2389 = vmatpush1.bf16.msra.mxu0 %v2308_v16 }
 0x671   : > { %2390 = vmatprep.subr.bf16.mxu0 %v2312_v19 }
 0x674   : > { %2391 = vmatpush1.bf16.msra.mxu0 %v2311_v36  ;;  %v2224_v36 = vld [vmem:[#allocation7 + $0x300] sm:$0xff] }
 0x675   : > { %2392 = vmatprep.subr.bf16.mxu0 %v2315_v46  ;;  %v2320_v47 = vpack.c.bf16 %v2227_v38, %v2224_v36  ;;  %v2263_v36 = vld [vmem:[#allocation7 + $0x438] sm:$0xff] }
 0x676   : > { %v2267_v38 = vld [vmem:[#allocation7 + $0x458] sm:$0xff] }
 0x678   : > { %2393 = vmatpush1.bf16.msra.mxu0 %v2314_v53  ;;  %v2235_v53 = vld [vmem:[#allocation7 + $0x358] sm:$0xff] }
 0x679   : > { %2394 = vmatprep.subr.bf16.mxu0 %v2318_v61  ;;  %v2241_v61 = vld [vmem:[#allocation7 + $0x388] sm:$0xff] }
 0x67c   : > { %2395 = vmatpush1.bf16.msra.mxu0 %v2317_v0  ;;  %v2330_v0 = vpack.c.bf16 %v2246_v62, %v2243_v21  ;;  %v2351_v21 = vsub.s32 0, %v3580_v22 }
 0x67d   : > { %2407 = vmatprep.subr.bf16.mxu0 %v2321_v11  ;;  %v2248_v11 = vld [vmem:[#allocation7 + $0x3c0] sm:$0xff] }
 0x6e8   : > { %v1593_v34 = vpop.f32.mrb[24].mxu1 }
 0x6e9   : > { %v2808_v40 = vpop.f32.mrb[25].mxu1 }
 0x6ea   : > { %v1596_v45 = vpop.f32.mrb[26].mxu1  ;;  %v2226_v40 = vld [vmem:[#allocation7 + $0x310] sm:$0xff] }
 0x6eb   : > { %v2998_v50 = vpack.i.bf16 %v1596_v45, %v1593_v34  ;;  %v2809_v52 = vpop.f32.mrb[27].mxu1 }
 0x6ec   : > { %v2232_v52 = vld [vmem:[#allocation7 + $0x340] sm:$0xff] }
 0x6ed   : > { %2999 = vrot.lane.b32.xlu0 %v2998_v50, %s3257_s21  ;;  %v2324_v50 = vpack.c.bf16 %v2234_v39, %v2231_v42  ;;  %v2266_v39 = vld [vmem:[#allocation7 + $0x450] sm:$0xff] }
 0x6f0   : > { %v1714_v3 = vpop.f32.mrb[28].mxu1 }
 0x6f1   : > { %v2820_v51 = vpop.f32.mrb[29].mxu1 }
 0x6f2   : > { %v1717_v54 = vpop.f32.mrb[30].mxu1  ;;  %v2238_v51 = vld [vmem:[#allocation7 + $0x370] sm:$0xff] }
 0x6f3   : > { %v2821_v6 = vpop.f32.mrb[31].mxu1 }
 0x6f4   : > { %v2247_v6 = vld [vmem:[#allocation7 + $0x3b8] sm:$0xff] }
 0x6f5   : > { %v2331_v9 = vpack.c.bf16 %v2247_v6, %v2244_v4 }
 0x6f8   : > { %v1842_v12 = vpop.f32.mrb[32].mxu1 }
 0x6f9   : > { %v2832_v13 = vpop.f32.mrb[33].mxu1 }
 0x6fa   : > { %v1845_v26 = vpop.f32.mrb[34].mxu1  ;;  %v2251_v13 = vld [vmem:[#allocation7 + $0x3d8] sm:$0xff] }
 0x6fb   : > { %v2993_v17 = vpack.i.bf16 %v1845_v26, %v1842_v12  ;;  %v2833_v14 = vpop.f32.mrb[35].mxu1  ;;  %v2333_v12 = vpack.c.bf16 %v2252_v8, %v2249_v1  ;;  %v2250_v26 = vld [vmem:[#allocation7 + $0x3d0] sm:$0xff] }
 0x6fc   : > { %v2255_v14 = vld [vmem:[#allocation7 + $0x3f8] sm:$0xff] }
 0x6fd   : > { %2994 = vrot.lane.b32.xlu1 %v2993_v17, %s3257_s21  ;;  %v2253_v17 = vld [vmem:[#allocation7 + $0x3e8] sm:$0xff] }
 0x700   : > { %v3755_v5 = vpop.f32.mrb[36].mxu1 }
 0x701   : > { %v2844_v15 = vpop.f32.mrb[37].mxu1 }
 0x702   : > { %v3757_v16 = vpop.f32.mrb[38].mxu1  ;;  %v2258_v15 = vld [vmem:[#allocation7 + $0x410] sm:$0xff] }
 0x703   : > { %v2845_v18 = vpop.f32.mrb[39].mxu1 }
 0x704   : > { %v2332_v18 = vpack.c.bf16 %v2251_v13, %v2248_v11 }
 0x71d   : > { %v2091_v20 = vpop.f32.mrb[40].mxu1 }
 0x71e   : > { %v2856_v23 = vpop.f32.mrb[41].mxu1 }
 0x71f   : > { %v2094_v24 = vpop.f32.mrb[42].mxu1  ;;  %v2254_v23 = vld [vmem:[#allocation7 + $0x3f0] sm:$0xff] }
 0x720   : > { %v3003_v25 = vpack.i.bf16 %v2094_v24, %v2091_v20  ;;  %v2857_v27 = vpop.f32.mrb[43].mxu1  ;;  %v2334_v20 = vpack.c.bf16 %v2253_v17, %v2250_v26  ;;  %v2336_v24 = vpack.c.bf16 %v2258_v15, %v2255_v14 }
 0x721   : > { %v2256_v27 = vld [vmem:[#allocation7 + $0x400] sm:$0xff] }
 0x722   : > { %3004 = vrot.lane.b32.xlu1 %v3003_v25, %s3257_s21  ;;  %v2257_v25 = vld [vmem:[#allocation7 + $0x408] sm:$0xff] }
 0x75f   : > { %v3000_v28 = vpop.permute.xlu0 %2999 }
 0x760   : > { %v3002_v19 = vunpack.i.h.bf16 %v3000_v28  ;;  %v3001_v29 = vunpack.i.l.bf16 %v3000_v28  ;;  %v2259_v28 = vld [vmem:[#allocation7 + $0x418] sm:$0xff] }
 0x762   : > { %v2123_v31 = vsel %vm1352_vm1, %v3639_v10, %v3002_v19  ;;  %v2122_v32 = vsel %vm1352_vm1, %v3637_v7, %v3001_v29  ;;  %v2322_v10 = vpack.c.bf16 %v2229_v41, %v2226_v40  ;;  %v2233_v7 = vld [vmem:[#allocation7 + $0x348] sm:$0xff]  ;;  %v2264_v29 = vld [vmem:[#allocation7 + $0x440] sm:$0xff]  ;;  %v2270_v40 = vld [vmem:[#allocation7 + $0x470] sm:$0xff] }
 0x763   : > { %v2345_v33 = vpack.c.bf16 %v2123_v31, %v2122_v32  ;;  %v2323_v57 = vpack.c.bf16 %v2233_v7, %v2230_v48  ;;  %v2261_v19 = vld [vmem:[#allocation7 + $0x428] sm:$0xff]  ;;  %v2335_v31 = vpack.c.bf16 %v2257_v25, %v2254_v23  ;;  %v2337_v32 = vpack.c.bf16 %v2259_v28, %v2256_v27 }
 0x76f   : > { %v2995_v34 = vpop.permute.xlu1 %2994 }
 0x770   : > { %v2997_v35 = vunpack.i.h.bf16 %v2995_v34  ;;  %v2996_v37 = vunpack.i.l.bf16 %v2995_v34  ;;  %v2339_v34 = vpack.c.bf16 %v2264_v29, %v2261_v19 }
 0x772   : > { %v2124_v44 = vsel %vm1352_vm1, %v1714_v3, %v2996_v37  ;;  %v2125_v45 = vsel %vm1352_vm1, %v1717_v54, %v2997_v35  ;;  %v2325_v3 = vpack.c.bf16 %v2235_v53, %v2232_v52  ;;  %v2328_v54 = vpack.c.bf16 %v2241_v61, %v2238_v51  ;;  %v2262_v35 = vld [vmem:[#allocation7 + $0x430] sm:$0xff]  ;;  %v2265_v37 = vld [vmem:[#allocation7 + $0x448] sm:$0xff]  ;;  %v2344_v61 = vld [vmem:[#allocation8] sm:$0x7] }
 0x773   : > { %v2346_v46 = vpack.c.bf16 %v2125_v45, %v2124_v44  ;;  %v2340_v42 = vpack.c.bf16 %v2265_v37, %v2262_v35  ;;  %v2342_v44 = vpack.c.bf16 %v2270_v40, %v2267_v38  ;;  %v2269_v45 = vld [vmem:[#allocation7 + $0x468] sm:$0xff]  ;;  %v2359_v51 = vsub.s32 2, %v3580_v22 }
 0x775   : > { %2396 = vmatprep.mubr.bf16.mxu0 %v2346_v46  ;;  %2482 = vmatprep.mubr.bf16.mxu1 %v2346_v46  ;;  %v2268_v46 = vld [vmem:[#allocation7 + $0x460] sm:$0xff]  ;;  %v2360_v62 = vrot.slane %v2344_v61, %v2359_v51 }
 0x776   : > { %2397 = vmatmul.mubr.bf16.vlgmr.msra.gmra.mrb[28].mxu0 %v2345_v33  ;;  %2483 = vmatmul.mubr.bf16.vlgmr.msra.gmra.mrb[44].mxu1 %v2345_v33  ;;  %v2260_v33 = vld [vmem:[#allocation7 + $0x420] sm:$0xff] }
 0x777   : > { %2408 = vmatpush1.bf16.msra.mxu0 %v2320_v47  ;;  %2859 = vmatpush3.bf16.msra.mxu1 %v2322_v10  ;;  %v2338_v41 = vpack.c.bf16 %v2263_v36, %v2260_v33  ;;  %v2271_v47 = vld [vmem:[#allocation7 + $0x478] sm:$0xff]  ;;  %v2341_v10 = vpack.c.bf16 %v2269_v45, %v2266_v39 }
 0x778   : > { %2409 = vmatprep.subr.bf16.mxu0 %v2324_v50  ;;  %2860 = vmatprep.subr.bf16.mxu1 %v3255_v49  ;;  %v2343_v48 = vpack.c.bf16 %v2271_v47, %v2268_v46 }
 0x779   : > { %2439 = vmatprep.mubr.bf16.mxu0 %v3254_v43  ;;  %2874 = vmatprep.mubr.msk.bf16.mxu1 %vm3256_vm0, %v3255_v49  ;;  %v2329_v43 = vpack.c.bf16 %v2245_v2, %v2242_v63 }
 0x77b   : > { %2410 = vmatpush1.bf16.msra.mxu0 %v2323_v57  ;;  %2861 = vmatpush3.bf16.msra.mxu1 %v2325_v3 }
 0x77c   : > { %2411 = vmatprep.subr.bf16.mxu0 %v2327_v60  ;;  %2862 = vmatprep.subr.bf16.mxu1 %v3255_v49 }
 0x77f   : > { %2412 = vmatpush1.bf16.msra.mxu0 %v2326_v30  ;;  %2863 = vmatpush3.bf16.msra.mxu1 %v2328_v54 }
 0x780   : > { %2413 = vmatprep.subr.bf16.mxu0 %v2330_v0  ;;  %2864 = vmatprep.subr.bf16.mxu1 %v3255_v49 }
 0x783   : > { %2414 = vmatpush1.bf16.msra.mxu0 %v2329_v43  ;;  %2865 = vmatpush3.bf16.msra.mxu1 %v2331_v9 }
 0x784   : > { %2415 = vmatprep.subr.bf16.mxu0 %v2333_v12  ;;  %2866 = vmatprep.subr.bf16.mxu1 %v3255_v49 }
 0x787   : > { %2416 = vmatpush1.bf16.msra.mxu0 %v2332_v18  ;;  %2867 = vmatpush3.bf16.msra.mxu1 %v2334_v20 }
 0x788   : > { %2417 = vmatprep.subr.bf16.mxu0 %v2336_v24  ;;  %2868 = vmatprep.subr.bf16.mxu1 %v3255_v49 }
 0x78b   : > { %2418 = vmatpush1.bf16.msra.mxu0 %v2335_v31  ;;  %2869 = vmatpush3.bf16.msra.mxu1 %v2337_v32 }
 0x78c   : > { %2419 = vmatprep.subr.bf16.mxu0 %v2339_v34  ;;  %2870 = vmatprep.subr.bf16.mxu1 %v3255_v49 }
 0x78f   : > { %2420 = vmatpush1.bf16.msra.mxu0 %v2338_v41  ;;  %2871 = vmatpush3.bf16.msra.mxu1 %v2340_v42 }
 0x790   : > { %2421 = vmatprep.subr.bf16.mxu0 %v2342_v44  ;;  %2872 = vmatprep.subr.bf16.mxu1 %v3255_v49 }
 0x793   : > { %2422 = vmatpush1.bf16.msra.mxu0 %v2341_v10  ;;  %2873 = vmatpush3.bf16.msra.mxu1 %v2343_v48 }
 0x794   : > { %v3005_v50 = vpop.permute.xlu1 %3004 }
 0x795   : > { %v3007_v7 = vunpack.i.h.bf16 %v3005_v50  ;;  %v3006_v52 = vunpack.i.l.bf16 %v3005_v50 }
 0x797   : > { %v2127_v53 = vsel %vm1352_vm1, %v3757_v16, %v3007_v7  ;;  %v2126_v55 = vsel %vm1352_vm1, %v3755_v5, %v3006_v52  ;;  %v2355_v16 = vsub.s32 1, %v3580_v22  ;;  %v2352_v5 = vrot.slane %v2344_v61, %v2351_v21 }
 0x798   : > { %v2347_v56 = vpack.c.bf16 %v2127_v53, %v2126_v55 }
 0x799   : > { %v2356_v30 = vrot.slane %v2344_v61, %v2355_v16 }
 0x79a   : > { %2440 = vmatmul.mubr.bf16.vlgmr.msra.gmra.mrb[28].mxu0 %v2347_v56  ;;  %2875 = vmatmul.mubr.bf16.vlgmr.msra.gmra.mrb[48].mxu1 %v2347_v56 }
 0x849   : > { %v2751_v57 = vpop.f32.mrb[44].mxu1 }
 0x84a   : > { %v2752_v3 = vpop.f32.mrb[45].mxu1 }
 0x84b   : > { %v2753_v59 = vadd.f32 %v2752_v3, %v2751_v57  ;;  %v2754_v49 = vpop.f32.mrb[46].mxu1 }
 0x84c   : > { %v2755_v60 = vpop.f32.mrb[47].mxu1 }
 0x84d   : > { %v2756_v58 = vadd.f32 %v2755_v60, %v2754_v49  ;;  %v2485_v54 = vadd.f32 %v2753_v59, %v2360_v62 }
 0x84f   : > { %v2488_v8 = vadd.f32 %v2756_v58, %v2360_v62 }
 0x86d   : > { %v2441_v63 = vpop.f32.mrb[28].mxu0  ;;  %v2525_v0 = vpop.f32.mrb[48].mxu1 }
 0x86e   : > { %v2878_v2 = vadd.f32 %v2441_v63, %v2352_v5  ;;  %v2526_v4 = vadd.f32 %v2525_v0, %v2485_v54  ;;  %v2443_v6 = vpop.f32.mrb[29].mxu0  ;;  %v2876_v1 = vpop.f32.mrb[49].mxu1 }
 0x86f   : > { %v2879_v43 = vadd.f32 %v2443_v6, %v2356_v30  ;;  %v2445_v22 = vpop.f32.mrb[30].mxu0  ;;  %v2528_v9 = vpop.f32.mrb[50].mxu1 }
 0x870   : > { %2532 = vst [vmem:[%s257_s23] sm:$0xff] %v2878_v2  ;;  %2534 = vst [vmem:[%s257_s23 + $0x10] sm:$0xff] %v2526_v4  ;;  %v2880_v11 = vadd.f32 %v2445_v22, %v2352_v5  ;;  %v2529_v12 = vadd.f32 %v2528_v9, %v2488_v8  ;;  %v2447_v13 = vpop.f32.mrb[31].mxu0  ;;  %v2877_v26 = vpop.f32.mrb[51].mxu1 }
 0x871   : > { %2533 = vst [vmem:[%s257_s23 + $0x8] sm:$0xff] %v2879_v43  ;;  %v2881_v17 = vadd.f32 %v2447_v13, %v2356_v30 }
 0x872   : > { %2535 = vst [vmem:[%s257_s23 + $0x18] sm:$0xff] %v2880_v11  ;;  %2537 = vst [vmem:[%s257_s23 + $0x28] sm:$0xff] %v2529_v12 }
 0x873   : > { %2536 = vst [vmem:[%s257_s23 + $0x20] sm:$0xff] %v2881_v17 }
 0x874   : > { %3183 = shalt.err (!%p3180_p4)
}
 0x875   : > { %s3184_s28 = scalar_lea.hbm %s3791_s25, 768  ;;  %s3188_s29 = scalar_lea.hbm %s3839_s4, 1536 }
 0x876   : > { %p3185_p9 = scmp.ne.s32.totalorder %s3791_s25, %s3184_s28  ;;  %p3189_p8 = scmp.lt.u32.totalorder %s3791_s25, %s3839_s4 }
 0x877   : > { %p3190_p13 = scmp.lt.u32.totalorder %s3188_s29, %s3184_s28  ;;  %p3192_p10 = scmp.lt.u32.totalorder %s3184_s28, %s3791_s25 }
 0x878   : > { %p3186_p0 = pnand %p3185_p9, %p3431_p5 }
 0x879   : > { %p3191_p6 = por %p3190_p13, %p3189_p8 }
 0x87a   : > { %p3187_p7 = pneg %p3186_p0 }
 0x87b   : > { %p3193_p3 = por %p3192_p10, %p3191_p6 }
 0x87d   : > { %p3194_p11 = pnand %p3193_p3, %p3187_p7 }
 0x87f   : > { %3197 = shalt.err (!%p3194_p11)
}
 0x880   : > { %s3259_s23 = smov 384   ;;  %s3260_s10 = smov 24  }
 0x881   : > { %2920 = dma.vmem_to_hbm [thread:$0]  (%p3431_p5), %s3786_s9, 768, %s3791_s25, %s2539_s11, %s3259_s23, %s3259_s23, %s3260_s10  }
 0x882 PF: > { %s2567_s19 = sand.u32 1, %s3232_s15   ;;  %p3861_p12 = scmp.ne.s32.totalorder %s3844_s22, 0 }
 0x883   : > { %p3862_p2 = scmp.ge.s32.totalorder %s3244_s18, 2  ;;  %s2568_s7 = scalar_lea.sflag [#allocation4], %s2567_s19 }
 0x885   : > { %p2937_p1 = pnand %p3862_p2, %p3861_p12 }
 0x887   : > { %3227 = dma.done.wait (!%p2937_p1), %s2568_s7, 768  }
 0x888   : > { %3229 = vsyncadd (!%p2937_p1), %s2568_s7, 4294966528  ;;  %p19_p4 = scmp.ge.s32.totalorder %s3399_s20, 4   ;;  %s3863_s15 = smov %s3236_s16 }
 0x889   : > { %s3864_s16 = smov %s3240_s17  ;;  %s3865_s17 = smov %s3427_s26 }
 0x88a   : > { %s3866_s18 = smov %s3399_s20  ;;  %21 = sbr.rel (!%p19_p4) target bundleno = 7 (0x7), region = 93 }
 0x891   :  { %2573 = vsyncpa [#allocation3], 1 }
 0x892   :  { %2575 = vsyncpa [#allocation3 + $0x1], 1 }
 0x893   :  { %2576 = vsyncpa [#allocation6], 1 }
 0x894   :  { %2577 = vsyncpa [#allocation9], 1 }
 0x895   :  { %2578 = vsyncpa [#allocation4], 1 }
 0x896   :  { %2580 = vsyncpa [#allocation4 + $0x1], 1 }

</bundles_post_ra>
